<compile_context>
chip_gen: v6e
topology: v6e:2x2x1
jax: 0.10.0
libtpu: 0.0.40
codegen_flags: <defaults>
</compile_context>

<pallas_src>
import numpy as np
import jax
import jax.numpy as jnp
from jax import lax
from jax.experimental import pallas as pl
from jax.experimental.pallas import tpu as pltpu

BN_EPS = 1e-5

_OFFSETS = tuple((dy, dx) for dy in (-1, 0, 1) for dx in (-1, 0, 1))


def _pick_exp_dtype():
    # bf16 for the (HW, HW) exp tensor on v6e / v7x (bf16 VPU/EUP, 256x256 bf16
    # MXU); f32 on v5e (no bf16 VPU/EUP) and on anything we cannot identify.
    try:
        kind = jax.devices()[0].device_kind.lower()
    except Exception:
        return jnp.float32
    if ("v6" in kind) or ("v7" in kind) or ("7x" in kind):
        return jnp.bfloat16
    return jnp.float32


_EXP_DTYPE = _pick_exp_dtype()


# ----------------------------------------------------------------------------
# Grid-invariant constants, built once in the wrapper (VMEM-resident inputs).
# ----------------------------------------------------------------------------
def _build_tap_masks(H, W, nb):
    """(8, nb*H*W) 0/1 masks for the 8 non-center 3x3 taps (zero-pad halo)."""
    HW = H * W
    p = np.arange(nb * HW)
    q = p % HW
    h, w = q // W, q % W
    rows = []
    for dy, dx in _OFFSETS:
        if dy == 0 and dx == 0:
            continue
        ok = (h + dy >= 0) & (h + dy < H) & (w + dx >= 0) & (w + dx < W)
        rows.append(ok.astype(np.float32))
    return jnp.asarray(np.stack(rows))


def _build_pool_sel(H, W, nb):
    """(nb*H*W, nb*Hp*Wp) one-hot selector: column j picks flat pos (2h', 2w')."""
    Hp, Wp = H // 2, W // 2
    HW, HWp = H * W, Hp * Wp
    sel = np.zeros((nb * HW, nb * HWp), np.float32)
    for b in range(nb):
        for hp in range(Hp):
            for wp in range(Wp):
                sel[b * HW + 2 * hp * W + 2 * wp, b * HWp + hp * Wp + wp] = 1.0
    return jnp.asarray(sel)


# ----------------------------------------------------------------------------
# Fused kernel: conv1+BN+ReLU -> conv2+BN+ReLU -> self-attention -> maxpool(2)
# All activations are channel-major (C, nb*H*W); nb images per grid step.
# ----------------------------------------------------------------------------
def _make_fused_kernel(H, W, nb, exp_dtype):
    HW = H * W
    nbHW = nb * HW

    def kernel(masks_ref, sel_ref, x_ref, w1_ref, b1_ref, w2_ref, b2_ref,
               wqk_ref, wv_ref, wo_ref, o_ref):
        f32 = jnp.float32
        masks = masks_ref[...]                                # (8, nb*HW), read once

        def conv_bn_relu(x, w_ref, b_ref):
            # im2col via XLU lane rolls + precomputed halo masks; one MXU matmul.
            taps, m = [], 0
            for dy, dx in _OFFSETS:
                if dy == 0 and dx == 0:
                    taps.append(x)
                else:
                    off = dy * W + dx
                    shifted = pltpu.roll(x, shift=(-off) % nbHW, axis=1)
                    taps.append(shifted * masks[m:m + 1, :])
                    m += 1
            patches = jnp.concatenate(taps, axis=0)           # (9*Cin, nb*HW)
            y = jnp.dot(w_ref[...], patches, preferred_element_type=f32)
            return jnp.maximum(y + b_ref[...], 0.0)           # BN scale folded into w

        x = x_ref[...]                                        # (Cin_pad, nb*HW)
        h1 = conv_bn_relu(x, w1_ref, b1_ref)                  # (Cmid, nb*HW)
        feat = conv_bn_relu(h1, w2_ref, b2_ref)               # (C,    nb*HW)

        # ---- self-attention over the HW positions, channel-major throughout ----
        kprime = jnp.dot(wqk_ref[...], feat, preferred_element_type=f32)  # (C, nb*HW)
        v = jnp.dot(wv_ref[...], feat, preferred_element_type=f32)        # (C, nb*HW)

        y_parts = []
        for b in range(nb):                                   # per-image attention
            sl = slice(b * HW, (b + 1) * HW)
            fb, kb, vb = feat[:, sl], kprime[:, sl], v[:, sl]
            # sT[q, p] = scores[p, q]: softmax runs over q (the sublane axis), so
            # the ctx matmul below is a plain A @ B with no big transposes.
            sT = lax.dot_general(kb, fb, (((0,), (0,)), ((), ())),
                                 preferred_element_type=f32)          # (HW, HW)
            sT = sT - jnp.max(sT, axis=0, keepdims=True)
            e = jnp.exp(sT).astype(exp_dtype)
            # deferred softmax normalization: ctx and row sums first, then one
            # exact divide over only the (C, HW) ctx (never the (HW, HW) tensor).
            l_row = jnp.sum(e, axis=0, keepdims=True, dtype=f32)       # (1, HW)
            ctx = jnp.dot(vb.astype(exp_dtype), e,
                          preferred_element_type=f32)                  # (C, HW)
            ctx = ctx / l_row
            y_parts.append(jnp.dot(wo_ref[...], ctx, preferred_element_type=f32))
        y = y_parts[0] if nb == 1 else jnp.concatenate(y_parts, axis=1)  # (C, nb*HW)

        # ---- MaxPool2d(2): two XLU pair-max rolls + one-hot selection matmul ----
        cm = jnp.maximum(y, pltpu.roll(y, shift=nbHW - 1, axis=1))    # max(w, w+1)
        pm = jnp.maximum(cm, pltpu.roll(cm, shift=nbHW - W, axis=1))  # + max(h, h+1)
        o_ref[...] = jnp.dot(pm, sel_ref[...],
                             preferred_element_type=f32).astype(o_ref.dtype)

    return kernel


def cnn_attention_block_forward(x_nchw, kp):
    N, Cin, H, W = x_nchw.shape
    assert H % 2 == 0 and W % 2 == 0, "MaxPool2d(2) path assumes even H, W"
    HW, Hp, Wp = H * W, H // 2, W // 2
    HWp = Hp * Wp
    cin_pad = kp['w1_flat'].shape[1] // 9
    Cmid = kp['w1_flat'].shape[0]
    C = kp['w2_flat'].shape[0]

    # images per grid step: smallest divisor of N giving a lane-dense output slab
    # (nb*HWp % 128 == 0); prefer one that also keeps the grid >= 2 (v7x: 2 TCs).
    divisors = [d for d in range(1, N + 1) if N % d == 0]
    dense = [d for d in divisors if (d * HWp) % 128 == 0]
    both = [d for d in dense if (N // d) >= 2]
    nb = (both or dense or [1])[0]

    # channel-major slab (Cin_pad, N*HW); the tiny wrapper-side transpose/pad is
    # layout plumbing (a few KiB), not kernel work.
    x_slab = jnp.transpose(x_nchw.reshape(N, Cin, HW), (1, 0, 2)).reshape(Cin, N * HW)
    if cin_pad != Cin:
        x_slab = jnp.pad(x_slab, ((0, cin_pad - Cin), (0, 0)))

    masks = _build_tap_masks(H, W, nb)        # (8, nb*HW)
    sel = _build_pool_sel(H, W, nb)           # (nb*HW, nb*HWp)

    const = lambda g: (0, 0)
    out = pl.pallas_call(
        _make_fused_kernel(H, W, nb, _EXP_DTYPE),
        out_shape=jax.ShapeDtypeStruct((C, N * HWp), jnp.float32),
        grid=(N // nb,),
        in_specs=[
            pl.BlockSpec((8, nb * HW), const),                   # halo masks
            pl.BlockSpec((nb * HW, nb * HWp), const),            # pool selector
            pl.BlockSpec((cin_pad, nb * HW), lambda g: (0, g)),  # input slab
            pl.BlockSpec((Cmid, 9 * cin_pad), const),            # conv1 (BN folded)
            pl.BlockSpec((Cmid, 1), const),
            pl.BlockSpec((C, 9 * Cmid), const),                  # conv2 (BN folded)
            pl.BlockSpec((C, 1), const),
            pl.BlockSpec((C, C), const),                         # Wq^T Wk / sqrt(C)
            pl.BlockSpec((C, C), const),                         # Wv
            pl.BlockSpec((C, C), const),                         # Wo
        ],
        out_specs=pl.BlockSpec((C, nb * HWp), lambda g: (0, g)),
        compiler_params=pltpu.CompilerParams(
            dimension_semantics=("parallel",)),
    )(masks, sel, x_slab,
      kp['w1_flat'], kp['bias1'], kp['w2_flat'], kp['bias2'],
      kp['wqk'], kp['wv'], kp['wo'])

    # (C, N*HWp) -> NCHW
    return jnp.transpose(out.reshape(C, N, Hp, Wp), (1, 0, 2, 3))


cnn_attention_block = jax.jit(cnn_attention_block_forward)


# ----------------------------------------------------------------------------
# Parameter setup / folding
# ----------------------------------------------------------------------------
def init_params(key, in_cn, mid_cn, out_cn):
    ks = jax.random.split(key, 16)

    def conv_bn(kw, kb, kg, kbe, km, kv, cin, cout):
        return dict(
            w=0.2 * jax.random.normal(kw, (cout, cin, 3, 3), jnp.float32),
            b=0.1 * jax.random.normal(kb, (cout,), jnp.float32),
            gamma=1.0 + 0.1 * jax.random.normal(kg, (cout,), jnp.float32),
            beta=0.1 * jax.random.normal(kbe, (cout,), jnp.float32),
            mean=0.05 * jax.random.normal(km, (cout,), jnp.float32),
            var=0.5 + jax.random.uniform(kv, (cout,), jnp.float32),
        )

    return dict(
        l1=conv_bn(*ks[0:6], in_cn, mid_cn),
        l2=conv_bn(*ks[6:12], mid_cn, out_cn),
        wq=0.2 * jax.random.normal(ks[12], (out_cn, out_cn), jnp.float32),
        wk=0.2 * jax.random.normal(ks[13], (out_cn, out_cn), jnp.float32),
        wv=0.2 * jax.random.normal(ks[14], (out_cn, out_cn), jnp.float32),
        wo=0.2 * jax.random.normal(ks[15], (out_cn, out_cn), jnp.float32),
    )


def _fold_conv_bn(layer, cin_pad):
    """Conv weight (Cout, Cin, 3, 3) + inference-mode BN -> (Cout, 9*cin_pad)
    im2col weight with the BN scale folded in, plus a (Cout, 1) bias."""
    w = layer['w']
    cout, cin = w.shape[0], w.shape[1]
    if cin_pad != cin:
        w = jnp.pad(w, ((0, 0), (0, cin_pad - cin), (0, 0), (0, 0)))
    scale = layer['gamma'] / jnp.sqrt(layer['var'] + BN_EPS)
    # (ky, kx, cin, cout) -> (9*cin_pad, cout) -> (cout, 9*cin_pad)
    w_flat = jnp.transpose(w, (2, 3, 1, 0)).reshape(9 * cin_pad, cout).T
    w_flat = w_flat * scale[:, None]                 # fold BN scale into weights
    bias = (layer['b'] - layer['mean']) * scale + layer['beta']
    return w_flat, bias[:, None]


def make_kernel_params(p):
    cin = p['l1']['w'].shape[1]
    cmid = p['l2']['w'].shape[1]
    cin_pad = max(8, -(-cin // 8) * 8)     # sublane-align conv1's im2col taps
    w1, b1 = _fold_conv_bn(p['l1'], cin_pad)
    w2, b2 = _fold_conv_bn(p['l2'], cmid)
    C = p['wq'].shape[0]
    wqk = (p['wq'].T @ p['wk']) / (C ** 0.5)   # scores = feat^T (Wq^T Wk/sqrt(C)) feat
    return dict(w1_flat=w1, bias1=b1, w2_flat=w2, bias2=b2,
                wqk=wqk, wv=p['wv'], wo=p['wo'])


# ----------------------------------------------------------------------------
# Pure-JAX reference (same math, no Pallas) for a correctness check
# ----------------------------------------------------------------------------
def reference_forward(x_nchw, p):
    x = jnp.transpose(x_nchw, (0, 2, 3, 1))

    def conv_bn_relu_ref(x, layer):
        w_hwio = jnp.transpose(layer['w'], (2, 3, 1, 0))
        y = lax.conv_general_dilated(x, w_hwio, (1, 1), 'SAME',
                                     dimension_numbers=('NHWC', 'HWIO', 'NHWC'))
        y = y + layer['b']
        y = (y - layer['mean']) / jnp.sqrt(layer['var'] + BN_EPS) * layer['gamma'] + layer['beta']
        return jnp.maximum(y, 0.0)

    y = conv_bn_relu_ref(x, p['l1'])
    y = conv_bn_relu_ref(y, p['l2'])
    N, H, W, C = y.shape
    X = y.reshape(N, H * W, C)
    Q, K, V = X @ p['wq'].T, X @ p['wk'].T, X @ p['wv'].T
    A = jax.nn.softmax(jnp.einsum('npc,nqc->npq', Q, K) / (C ** 0.5), axis=-1)
    out = jnp.einsum('npq,nqc->npc', A, V)
    Y = (out @ p['wo'].T).reshape(N, H, W, C)
    pooled = Y.reshape(N, H // 2, 2, W // 2, 2, C).max(axis=(2, 4))
    return jnp.transpose(pooled, (0, 3, 1, 2))                    # NCHW


if __name__ == "__main__":
    key = jax.random.PRNGKey(0)
    k_params, k_x = jax.random.split(key)

    N, in_cn, mid_cn, out_cn, H, W = 2, 4, 8, 8, 16, 16
    params = init_params(k_params, in_cn, mid_cn, out_cn)
    kparams = make_kernel_params(params)
    x = jax.random.normal(k_x, (N, in_cn, H, W), jnp.float32)

    out = cnn_attention_block(x, kparams)
    out = jax.block_until_ready(out)
    assert out.shape == (N, out_cn, H // 2, W // 2), out.shape

    ref = reference_forward(x, params)
    max_err = float(jnp.max(jnp.abs(out - ref)))
    # f32 path uses an exact softmax divide; bf16 (v6e/v7x) path gets a looser bound.
    tol = 5e-3 if _EXP_DTYPE == jnp.float32 else 4e-2
    if max_err > tol:
        raise AssertionError(f"kernel mismatch vs reference, max_err={max_err}")

    print("KERNEL_OK")
</pallas_src>

<mosaic_0001>
module attributes {stable_mosaic.version = 11 : i64} {
  func.func @kernel(%arg0: i32, %arg1: memref<8x512xf32, #tpu.memory_space<vmem>>, %arg2: memref<512x128xf32, #tpu.memory_space<vmem>>, %arg3: memref<8x512xf32, #tpu.memory_space<vmem>>, %arg4: memref<8x72xf32, #tpu.memory_space<vmem>>, %arg5: memref<8x1xf32, #tpu.memory_space<vmem>>, %arg6: memref<8x72xf32, #tpu.memory_space<vmem>>, %arg7: memref<8x1xf32, #tpu.memory_space<vmem>>, %arg8: memref<8x8xf32, #tpu.memory_space<vmem>>, %arg9: memref<8x8xf32, #tpu.memory_space<vmem>>, %arg10: memref<8x8xf32, #tpu.memory_space<vmem>>, %arg11: memref<8x128xf32, #tpu.memory_space<vmem>>) attributes {dimension_semantics = [#tpu.dimension_semantics<parallel>], iteration_bounds = array<i64: 1>, scalar_prefetch = 0 : i64, scratch_operands = 0 : i64, tpu.core_type = #tpu.core_type<tc>, window_params = [{pipeline_mode = #tpu.pipeline_mode<synchronous>, transform_indices = @transform_0, window_bounds = array<i64: 8, 512>}, {pipeline_mode = #tpu.pipeline_mode<synchronous>, transform_indices = @transform_1, window_bounds = array<i64: 512, 128>}, {transform_indices = @transform_2, window_bounds = array<i64: 8, 512>}, {pipeline_mode = #tpu.pipeline_mode<synchronous>, transform_indices = @transform_3, window_bounds = array<i64: 8, 72>}, {pipeline_mode = #tpu.pipeline_mode<synchronous>, transform_indices = @transform_4, window_bounds = array<i64: 8, 1>}, {pipeline_mode = #tpu.pipeline_mode<synchronous>, transform_indices = @transform_5, window_bounds = array<i64: 8, 72>}, {pipeline_mode = #tpu.pipeline_mode<synchronous>, transform_indices = @transform_6, window_bounds = array<i64: 8, 1>}, {pipeline_mode = #tpu.pipeline_mode<synchronous>, transform_indices = @transform_7, window_bounds = array<i64: 8, 8>}, {pipeline_mode = #tpu.pipeline_mode<synchronous>, transform_indices = @transform_8, window_bounds = array<i64: 8, 8>}, {pipeline_mode = #tpu.pipeline_mode<synchronous>, transform_indices = @transform_9, window_bounds = array<i64: 8, 8>}, {transform_indices = @transform_10, window_bounds = array<i64: 8, 128>}]} {
    %c0 = arith.constant 0 : index
    %c0_0 = arith.constant 0 : index
    %0 = vector.load %arg1[%c0, %c0_0] : memref<8x512xf32, #tpu.memory_space<vmem>>, vector<8x512xf32>
    %c0_1 = arith.constant 0 : index
    %c0_2 = arith.constant 0 : index
    %1 = vector.load %arg3[%c0_1, %c0_2] : memref<8x512xf32, #tpu.memory_space<vmem>>, vector<8x512xf32>
    %c17_i32 = arith.constant 17 : i32
    %2 = tpu.dynamic_rotate %1 by %c17_i32 dim 1 : vector<8x512xf32>, i32 -> vector<8x512xf32>
    %3 = vector.extract_strided_slice %0 {offsets = [0, 0], sizes = [1, 512], strides = [1, 1]} : vector<8x512xf32> to vector<1x512xf32>
    %4 = vector.broadcast %3 : vector<1x512xf32> to vector<8x512xf32>
    %5 = arith.mulf %2, %4 : vector<8x512xf32>
    %c16_i32 = arith.constant 16 : i32
    %6 = tpu.dynamic_rotate %1 by %c16_i32 dim 1 : vector<8x512xf32>, i32 -> vector<8x512xf32>
    %7 = vector.extract_strided_slice %0 {offsets = [1, 0], sizes = [1, 512], strides = [1, 1]} : vector<8x512xf32> to vector<1x512xf32>
    %8 = vector.broadcast %7 : vector<1x512xf32> to vector<8x512xf32>
    %9 = arith.mulf %6, %8 : vector<8x512xf32>
    %c15_i32 = arith.constant 15 : i32
    %10 = tpu.dynamic_rotate %1 by %c15_i32 dim 1 : vector<8x512xf32>, i32 -> vector<8x512xf32>
    %11 = vector.extract_strided_slice %0 {offsets = [2, 0], sizes = [1, 512], strides = [1, 1]} : vector<8x512xf32> to vector<1x512xf32>
    %12 = vector.broadcast %11 : vector<1x512xf32> to vector<8x512xf32>
    %13 = arith.mulf %10, %12 : vector<8x512xf32>
    %c1_i32 = arith.constant 1 : i32
    %14 = tpu.dynamic_rotate %1 by %c1_i32 dim 1 : vector<8x512xf32>, i32 -> vector<8x512xf32>
    %15 = vector.extract_strided_slice %0 {offsets = [3, 0], sizes = [1, 512], strides = [1, 1]} : vector<8x512xf32> to vector<1x512xf32>
    %16 = vector.broadcast %15 : vector<1x512xf32> to vector<8x512xf32>
    %17 = arith.mulf %14, %16 : vector<8x512xf32>
    %c511_i32 = arith.constant 511 : i32
    %18 = tpu.dynamic_rotate %1 by %c511_i32 dim 1 : vector<8x512xf32>, i32 -> vector<8x512xf32>
    %19 = vector.extract_strided_slice %0 {offsets = [4, 0], sizes = [1, 512], strides = [1, 1]} : vector<8x512xf32> to vector<1x512xf32>
    %20 = vector.broadcast %19 : vector<1x512xf32> to vector<8x512xf32>
    %21 = arith.mulf %18, %20 : vector<8x512xf32>
    %c497_i32 = arith.constant 497 : i32
    %22 = tpu.dynamic_rotate %1 by %c497_i32 dim 1 : vector<8x512xf32>, i32 -> vector<8x512xf32>
    %23 = vector.extract_strided_slice %0 {offsets = [5, 0], sizes = [1, 512], strides = [1, 1]} : vector<8x512xf32> to vector<1x512xf32>
    %24 = vector.broadcast %23 : vector<1x512xf32> to vector<8x512xf32>
    %25 = arith.mulf %22, %24 : vector<8x512xf32>
    %c496_i32 = arith.constant 496 : i32
    %26 = tpu.dynamic_rotate %1 by %c496_i32 dim 1 : vector<8x512xf32>, i32 -> vector<8x512xf32>
    %27 = vector.extract_strided_slice %0 {offsets = [6, 0], sizes = [1, 512], strides = [1, 1]} : vector<8x512xf32> to vector<1x512xf32>
    %28 = vector.broadcast %27 : vector<1x512xf32> to vector<8x512xf32>
    %29 = arith.mulf %26, %28 : vector<8x512xf32>
    %c495_i32 = arith.constant 495 : i32
    %30 = tpu.dynamic_rotate %1 by %c495_i32 dim 1 : vector<8x512xf32>, i32 -> vector<8x512xf32>
    %31 = vector.extract_strided_slice %0 {offsets = [7, 0], sizes = [1, 512], strides = [1, 1]} : vector<8x512xf32> to vector<1x512xf32>
    %32 = vector.broadcast %31 : vector<1x512xf32> to vector<8x512xf32>
    %33 = arith.mulf %30, %32 : vector<8x512xf32>
    %34 = tpu.concatenate %5, %9, %13, %17, %1, %21, %25, %29, %33 in 0 : vector<8x512xf32>, vector<8x512xf32>, vector<8x512xf32>, vector<8x512xf32>, vector<8x512xf32>, vector<8x512xf32>, vector<8x512xf32>, vector<8x512xf32>, vector<8x512xf32> -> vector<72x512xf32>
    %c0_3 = arith.constant 0 : index
    %c0_4 = arith.constant 0 : index
    %35 = vector.load %arg4[%c0_3, %c0_4] : memref<8x72xf32, #tpu.memory_space<vmem>>, vector<8x72xf32>
    %cst = arith.constant dense<0.000000e+00> : vector<8x512xf32>
    %36 = tpu.matmul %35, %34, %cst {dimension_numbers = #tpu.dot_dimension_numbers<[1], [0], [0], [1], [0, 0, 1, 1], [], []>} : vector<8x72xf32>, vector<72x512xf32>, vector<8x512xf32> -> vector<8x512xf32>
    %c0_5 = arith.constant 0 : index
    %c0_6 = arith.constant 0 : index
    %37 = vector.load %arg5[%c0_5, %c0_6] : memref<8x1xf32, #tpu.memory_space<vmem>>, vector<8x1xf32>
    %38 = vector.broadcast %37 : vector<8x1xf32> to vector<8x512xf32>
    %39 = arith.addf %36, %38 : vector<8x512xf32>
    %cst_7 = arith.constant 0.000000e+00 : f32
    %40 = vector.broadcast %cst_7 : f32 to vector<8x512xf32>
    %41 = arith.maximumf %39, %40 : vector<8x512xf32>
    %c17_i32_8 = arith.constant 17 : i32
    %42 = tpu.dynamic_rotate %41 by %c17_i32_8 dim 1 : vector<8x512xf32>, i32 -> vector<8x512xf32>
    %43 = vector.extract_strided_slice %0 {offsets = [0, 0], sizes = [1, 512], strides = [1, 1]} : vector<8x512xf32> to vector<1x512xf32>
    %44 = vector.broadcast %43 : vector<1x512xf32> to vector<8x512xf32>
    %45 = arith.mulf %42, %44 : vector<8x512xf32>
    %c16_i32_9 = arith.constant 16 : i32
    %46 = tpu.dynamic_rotate %41 by %c16_i32_9 dim 1 : vector<8x512xf32>, i32 -> vector<8x512xf32>
    %47 = vector.extract_strided_slice %0 {offsets = [1, 0], sizes = [1, 512], strides = [1, 1]} : vector<8x512xf32> to vector<1x512xf32>
    %48 = vector.broadcast %47 : vector<1x512xf32> to vector<8x512xf32>
    %49 = arith.mulf %46, %48 : vector<8x512xf32>
    %c15_i32_10 = arith.constant 15 : i32
    %50 = tpu.dynamic_rotate %41 by %c15_i32_10 dim 1 : vector<8x512xf32>, i32 -> vector<8x512xf32>
    %51 = vector.extract_strided_slice %0 {offsets = [2, 0], sizes = [1, 512], strides = [1, 1]} : vector<8x512xf32> to vector<1x512xf32>
    %52 = vector.broadcast %51 : vector<1x512xf32> to vector<8x512xf32>
    %53 = arith.mulf %50, %52 : vector<8x512xf32>
    %c1_i32_11 = arith.constant 1 : i32
    %54 = tpu.dynamic_rotate %41 by %c1_i32_11 dim 1 : vector<8x512xf32>, i32 -> vector<8x512xf32>
    %55 = vector.extract_strided_slice %0 {offsets = [3, 0], sizes = [1, 512], strides = [1, 1]} : vector<8x512xf32> to vector<1x512xf32>
    %56 = vector.broadcast %55 : vector<1x512xf32> to vector<8x512xf32>
    %57 = arith.mulf %54, %56 : vector<8x512xf32>
    %c511_i32_12 = arith.constant 511 : i32
    %58 = tpu.dynamic_rotate %41 by %c511_i32_12 dim 1 : vector<8x512xf32>, i32 -> vector<8x512xf32>
    %59 = vector.extract_strided_slice %0 {offsets = [4, 0], sizes = [1, 512], strides = [1, 1]} : vector<8x512xf32> to vector<1x512xf32>
    %60 = vector.broadcast %59 : vector<1x512xf32> to vector<8x512xf32>
    %61 = arith.mulf %58, %60 : vector<8x512xf32>
    %c497_i32_13 = arith.constant 497 : i32
    %62 = tpu.dynamic_rotate %41 by %c497_i32_13 dim 1 : vector<8x512xf32>, i32 -> vector<8x512xf32>
    %63 = vector.extract_strided_slice %0 {offsets = [5, 0], sizes = [1, 512], strides = [1, 1]} : vector<8x512xf32> to vector<1x512xf32>
    %64 = vector.broadcast %63 : vector<1x512xf32> to vector<8x512xf32>
    %65 = arith.mulf %62, %64 : vector<8x512xf32>
    %c496_i32_14 = arith.constant 496 : i32
    %66 = tpu.dynamic_rotate %41 by %c496_i32_14 dim 1 : vector<8x512xf32>, i32 -> vector<8x512xf32>
    %67 = vector.extract_strided_slice %0 {offsets = [6, 0], sizes = [1, 512], strides = [1, 1]} : vector<8x512xf32> to vector<1x512xf32>
    %68 = vector.broadcast %67 : vector<1x512xf32> to vector<8x512xf32>
    %69 = arith.mulf %66, %68 : vector<8x512xf32>
    %c495_i32_15 = arith.constant 495 : i32
    %70 = tpu.dynamic_rotate %41 by %c495_i32_15 dim 1 : vector<8x512xf32>, i32 -> vector<8x512xf32>
    %71 = vector.extract_strided_slice %0 {offsets = [7, 0], sizes = [1, 512], strides = [1, 1]} : vector<8x512xf32> to vector<1x512xf32>
    %72 = vector.broadcast %71 : vector<1x512xf32> to vector<8x512xf32>
    %73 = arith.mulf %70, %72 : vector<8x512xf32>
    %74 = tpu.concatenate %45, %49, %53, %57, %41, %61, %65, %69, %73 in 0 : vector<8x512xf32>, vector<8x512xf32>, vector<8x512xf32>, vector<8x512xf32>, vector<8x512xf32>, vector<8x512xf32>, vector<8x512xf32>, vector<8x512xf32>, vector<8x512xf32> -> vector<72x512xf32>
    %c0_16 = arith.constant 0 : index
    %c0_17 = arith.constant 0 : index
    %75 = vector.load %arg6[%c0_16, %c0_17] : memref<8x72xf32, #tpu.memory_space<vmem>>, vector<8x72xf32>
    %cst_18 = arith.constant dense<0.000000e+00> : vector<8x512xf32>
    %76 = tpu.matmul %75, %74, %cst_18 {dimension_numbers = #tpu.dot_dimension_numbers<[1], [0], [0], [1], [0, 0, 1, 1], [], []>} : vector<8x72xf32>, vector<72x512xf32>, vector<8x512xf32> -> vector<8x512xf32>
    %c0_19 = arith.constant 0 : index
    %c0_20 = arith.constant 0 : index
    %77 = vector.load %arg7[%c0_19, %c0_20] : memref<8x1xf32, #tpu.memory_space<vmem>>, vector<8x1xf32>
    %78 = vector.broadcast %77 : vector<8x1xf32> to vector<8x512xf32>
    %79 = arith.addf %76, %78 : vector<8x512xf32>
    %cst_21 = arith.constant 0.000000e+00 : f32
    %80 = vector.broadcast %cst_21 : f32 to vector<8x512xf32>
    %81 = arith.maximumf %79, %80 : vector<8x512xf32>
    %c0_22 = arith.constant 0 : index
    %c0_23 = arith.constant 0 : index
    %82 = vector.load %arg8[%c0_22, %c0_23] : memref<8x8xf32, #tpu.memory_space<vmem>>, vector<8x8xf32>
    %cst_24 = arith.constant dense<0.000000e+00> : vector<8x512xf32>
    %83 = tpu.matmul %82, %81, %cst_24 {dimension_numbers = #tpu.dot_dimension_numbers<[1], [0], [0], [1], [0, 0, 1, 1], [], []>} : vector<8x8xf32>, vector<8x512xf32>, vector<8x512xf32> -> vector<8x512xf32>
    %c0_25 = arith.constant 0 : index
    %c0_26 = arith.constant 0 : index
    %84 = vector.load %arg9[%c0_25, %c0_26] : memref<8x8xf32, #tpu.memory_space<vmem>>, vector<8x8xf32>
    %cst_27 = arith.constant dense<0.000000e+00> : vector<8x512xf32>
    %85 = tpu.matmul %84, %81, %cst_27 {dimension_numbers = #tpu.dot_dimension_numbers<[1], [0], [0], [1], [0, 0, 1, 1], [], []>} : vector<8x8xf32>, vector<8x512xf32>, vector<8x512xf32> -> vector<8x512xf32>
    %86 = vector.extract_strided_slice %81 {offsets = [0, 0], sizes = [8, 256], strides = [1, 1]} : vector<8x512xf32> to vector<8x256xf32>
    %87 = vector.extract_strided_slice %83 {offsets = [0, 0], sizes = [8, 256], strides = [1, 1]} : vector<8x512xf32> to vector<8x256xf32>
    %88 = vector.extract_strided_slice %85 {offsets = [0, 0], sizes = [8, 256], strides = [1, 1]} : vector<8x512xf32> to vector<8x256xf32>
    %cst_28 = arith.constant dense<0.000000e+00> : vector<256x256xf32>
    %89 = tpu.matmul %87, %86, %cst_28 {dimension_numbers = #tpu.dot_dimension_numbers<[0], [0], [1], [1], [0, 1, 1, 1], [], []>} : vector<8x256xf32>, vector<8x256xf32>, vector<256x256xf32> -> vector<256x256xf32>
    %cst_29 = arith.constant dense<0xFF800000> : vector<256xf32>
    %90 = vector.multi_reduction <maximumf>, %89, %cst_29 [0] : vector<256x256xf32> to vector<256xf32>
    %91 = vector.shape_cast %90 : vector<256xf32> to vector<1x256xf32>
    %92 = vector.broadcast %91 : vector<1x256xf32> to vector<256x256xf32>
    %93 = arith.subf %89, %92 : vector<256x256xf32>
    %94 = math.exp %93 : vector<256x256xf32>
    %cst_30 = arith.constant dense<0.000000e+00> : vector<256xf32>
    %95 = vector.multi_reduction <add>, %94, %cst_30 [0] : vector<256x256xf32> to vector<256xf32>
    %96 = vector.shape_cast %95 : vector<256xf32> to vector<1x256xf32>
    %cst_31 = arith.constant dense<0.000000e+00> : vector<8x256xf32>
    %97 = tpu.matmul %88, %94, %cst_31 {dimension_numbers = #tpu.dot_dimension_numbers<[1], [0], [0], [1], [0, 0, 1, 1], [], []>} : vector<8x256xf32>, vector<256x256xf32>, vector<8x256xf32> -> vector<8x256xf32>
    %98 = vector.broadcast %96 : vector<1x256xf32> to vector<8x256xf32>
    %99 = arith.divf %97, %98 : vector<8x256xf32>
    %c0_32 = arith.constant 0 : index
    %c0_33 = arith.constant 0 : index
    %100 = vector.load %arg10[%c0_32, %c0_33] : memref<8x8xf32, #tpu.memory_space<vmem>>, vector<8x8xf32>
    %cst_34 = arith.constant dense<0.000000e+00> : vector<8x256xf32>
    %101 = tpu.matmul %100, %99, %cst_34 {dimension_numbers = #tpu.dot_dimension_numbers<[1], [0], [0], [1], [0, 0, 1, 1], [], []>} : vector<8x8xf32>, vector<8x256xf32>, vector<8x256xf32> -> vector<8x256xf32>
    %102 = vector.extract_strided_slice %81 {offsets = [0, 256], sizes = [8, 256], strides = [1, 1]} : vector<8x512xf32> to vector<8x256xf32>
    %103 = vector.extract_strided_slice %83 {offsets = [0, 256], sizes = [8, 256], strides = [1, 1]} : vector<8x512xf32> to vector<8x256xf32>
    %104 = vector.extract_strided_slice %85 {offsets = [0, 256], sizes = [8, 256], strides = [1, 1]} : vector<8x512xf32> to vector<8x256xf32>
    %cst_35 = arith.constant dense<0.000000e+00> : vector<256x256xf32>
    %105 = tpu.matmul %103, %102, %cst_35 {dimension_numbers = #tpu.dot_dimension_numbers<[0], [0], [1], [1], [0, 1, 1, 1], [], []>} : vector<8x256xf32>, vector<8x256xf32>, vector<256x256xf32> -> vector<256x256xf32>
    %cst_36 = arith.constant dense<0xFF800000> : vector<256xf32>
    %106 = vector.multi_reduction <maximumf>, %105, %cst_36 [0] : vector<256x256xf32> to vector<256xf32>
    %107 = vector.shape_cast %106 : vector<256xf32> to vector<1x256xf32>
    %108 = vector.broadcast %107 : vector<1x256xf32> to vector<256x256xf32>
    %109 = arith.subf %105, %108 : vector<256x256xf32>
    %110 = math.exp %109 : vector<256x256xf32>
    %cst_37 = arith.constant dense<0.000000e+00> : vector<256xf32>
    %111 = vector.multi_reduction <add>, %110, %cst_37 [0] : vector<256x256xf32> to vector<256xf32>
    %112 = vector.shape_cast %111 : vector<256xf32> to vector<1x256xf32>
    %cst_38 = arith.constant dense<0.000000e+00> : vector<8x256xf32>
    %113 = tpu.matmul %104, %110, %cst_38 {dimension_numbers = #tpu.dot_dimension_numbers<[1], [0], [0], [1], [0, 0, 1, 1], [], []>} : vector<8x256xf32>, vector<256x256xf32>, vector<8x256xf32> -> vector<8x256xf32>
    %114 = vector.broadcast %112 : vector<1x256xf32> to vector<8x256xf32>
    %115 = arith.divf %113, %114 : vector<8x256xf32>
    %c0_39 = arith.constant 0 : index
    %c0_40 = arith.constant 0 : index
    %116 = vector.load %arg10[%c0_39, %c0_40] : memref<8x8xf32, #tpu.memory_space<vmem>>, vector<8x8xf32>
    %cst_41 = arith.constant dense<0.000000e+00> : vector<8x256xf32>
    %117 = tpu.matmul %116, %115, %cst_41 {dimension_numbers = #tpu.dot_dimension_numbers<[1], [0], [0], [1], [0, 0, 1, 1], [], []>} : vector<8x8xf32>, vector<8x256xf32>, vector<8x256xf32> -> vector<8x256xf32>
    %118 = tpu.concatenate %101, %117 in 1 : vector<8x256xf32>, vector<8x256xf32> -> vector<8x512xf32>
    %c511_i32_42 = arith.constant 511 : i32
    %119 = tpu.dynamic_rotate %118 by %c511_i32_42 dim 1 : vector<8x512xf32>, i32 -> vector<8x512xf32>
    %120 = arith.maximumf %118, %119 : vector<8x512xf32>
    %c496_i32_43 = arith.constant 496 : i32
    %121 = tpu.dynamic_rotate %120 by %c496_i32_43 dim 1 : vector<8x512xf32>, i32 -> vector<8x512xf32>
    %122 = arith.maximumf %120, %121 : vector<8x512xf32>
    %c0_44 = arith.constant 0 : index
    %c0_45 = arith.constant 0 : index
    %123 = vector.load %arg2[%c0_44, %c0_45] : memref<512x128xf32, #tpu.memory_space<vmem>>, vector<512x128xf32>
    %cst_46 = arith.constant dense<0.000000e+00> : vector<8x128xf32>
    %124 = tpu.matmul %122, %123, %cst_46 {dimension_numbers = #tpu.dot_dimension_numbers<[1], [0], [0], [1], [0, 0, 1, 1], [], []>} : vector<8x512xf32>, vector<512x128xf32>, vector<8x128xf32> -> vector<8x128xf32>
    %c0_47 = arith.constant 0 : index
    %c0_48 = arith.constant 0 : index
    %125 = vector.load %arg11[%c0_47, %c0_48] : memref<8x128xf32, #tpu.memory_space<vmem>>, vector<8x128xf32>
    tpu.vector_store %arg11[%c0_47, %c0_48], %124 {strides = array<i32>} : memref<8x128xf32, #tpu.memory_space<vmem>>, vector<8x128xf32>,
    return
  }
  func.func @transform_0(%arg0: i32) -> (i32, i32) {
    %c0_i32 = arith.constant 0 : i32
    %c0_i32_0 = arith.constant 0 : i32
    %c0_i32_1 = arith.constant 0 : i32
    return %c0_i32, %c0_i32_0 : i32, i32
  }
  func.func @transform_1(%arg0: i32) -> (i32, i32) {
    %c0_i32 = arith.constant 0 : i32
    %c0_i32_0 = arith.constant 0 : i32
    %c0_i32_1 = arith.constant 0 : i32
    return %c0_i32, %c0_i32_0 : i32, i32
  }
  func.func @transform_2(%arg0: i32) -> (i32, i32) {
    %c0_i32 = arith.constant 0 : i32
    %c0_i32_0 = arith.constant 0 : i32
    return %c0_i32, %arg0 : i32, i32
  }
  func.func @transform_3(%arg0: i32) -> (i32, i32) {
    %c0_i32 = arith.constant 0 : i32
    %c0_i32_0 = arith.constant 0 : i32
    %c0_i32_1 = arith.constant 0 : i32
    return %c0_i32, %c0_i32_0 : i32, i32
  }
  func.func @transform_4(%arg0: i32) -> (i32, i32) {
    %c0_i32 = arith.constant 0 : i32
    %c0_i32_0 = arith.constant 0 : i32
    %c0_i32_1 = arith.constant 0 : i32
    return %c0_i32, %c0_i32_0 : i32, i32
  }
  func.func @transform_5(%arg0: i32) -> (i32, i32) {
    %c0_i32 = arith.constant 0 : i32
    %c0_i32_0 = arith.constant 0 : i32
    %c0_i32_1 = arith.constant 0 : i32
    return %c0_i32, %c0_i32_0 : i32, i32
  }
  func.func @transform_6(%arg0: i32) -> (i32, i32) {
    %c0_i32 = arith.constant 0 : i32
    %c0_i32_0 = arith.constant 0 : i32
    %c0_i32_1 = arith.constant 0 : i32
    return %c0_i32, %c0_i32_0 : i32, i32
  }
  func.func @transform_7(%arg0: i32) -> (i32, i32) {
    %c0_i32 = arith.constant 0 : i32
    %c0_i32_0 = arith.constant 0 : i32
    %c0_i32_1 = arith.constant 0 : i32
    return %c0_i32, %c0_i32_0 : i32, i32
  }
  func.func @transform_8(%arg0: i32) -> (i32, i32) {
    %c0_i32 = arith.constant 0 : i32
    %c0_i32_0 = arith.constant 0 : i32
    %c0_i32_1 = arith.constant 0 : i32
    return %c0_i32, %c0_i32_0 : i32, i32
  }
  func.func @transform_9(%arg0: i32) -> (i32, i32) {
    %c0_i32 = arith.constant 0 : i32
    %c0_i32_0 = arith.constant 0 : i32
    %c0_i32_1 = arith.constant 0 : i32
    return %c0_i32, %c0_i32_0 : i32, i32
  }
  func.func @transform_10(%arg0: i32) -> (i32, i32) {
    %c0_i32 = arith.constant 0 : i32
    %c0_i32_0 = arith.constant 0 : i32
    return %c0_i32, %arg0 : i32, i32
  }
}

</mosaic_0001>

<bundles_post_ra>
// kernel: cnn_attention_block_forward.1
= control target key start
LH: loop header
LB: loop body
LE: loop exit
PB: predicated region body
PF: predicated region fallthrough
CT: control target
= control target key end

     0   :  { %15 = vsyncpa [#allocation3], 0  ;;  %s3569_s13 = smov [#allocation2]   ;;  %s5514_s0 = inlined_call_operand.vmem [shape: f32[8,512], index: 0, kind: input, shape index: {}]   ;;  %s5515_s1 = inlined_call_operand.hbm [shape: f32[512,128], index: 1, kind: input, shape index: {}]   ;;  %s5516_s2 = inlined_call_operand.vmem [shape: f32[8,512], index: 2, kind: input, shape index: {}]   ;;  %s5517_s3 = inlined_call_operand.vmem [shape: f32[8,72], index: 3, kind: input, shape index: {}]   ;;  %s5518_s4 = inlined_call_operand.vmem [shape: f32[8,1], index: 4, kind: input, shape index: {}]   ;;  %s5519_s5 = inlined_call_operand.vmem [shape: f32[8,72], index: 5, kind: input, shape index: {}]   ;;  %s5520_s6 = inlined_call_operand.vmem [shape: f32[8,1], index: 6, kind: input, shape index: {}]   ;;  %s5521_s7 = inlined_call_operand.vmem [shape: f32[8,8], index: 7, kind: input, shape index: {}]   ;;  %s5522_s8 = inlined_call_operand.vmem [shape: f32[8,8], index: 8, kind: input, shape index: {}]   ;;  %s5523_s9 = inlined_call_operand.vmem [shape: f32[8,8], index: 9, kind: input, shape index: {}]   ;;  %s5524_s10 = inlined_call_operand.vmem [shape: f32[8,128], index: 10, kind: output, shape index: {}]  }
   0x1   :  { %s23_s14 = sshll.u32 %s3569_s13, 4  ;;  %s24_s14 = int_to_ptr.vmem [resolvable:$true] %s23_s14 }
   0x2   :  { %s3555_s15 = scalar_lea.vmem %s24_s14, 8192  ;;  %p3560_p1 = scmp.lt.s32.totalorder %s24_s14, %s24_s14 }
   0x3   :  { %p3556_p0 = scmp.ne.s32.totalorder %s24_s14, %s3555_s15  ;;  %p3561_p2 = scmp.lt.s32.totalorder %s3555_s15, %s3555_s15 }
   0x5   :  { %p3562_p3 = por %p3561_p2, %p3560_p1 }
   0x7   :  { %p3563_p4 = pnand %p3562_p3, %p3556_p0 }
   0x9   :  { %3566 = shalt.err (!%p3563_p4)
}
   0xa   :  { %s3570_s16 = smov 128   ;;  %s3571_s17 = smov 8  }
   0xb   :  { %29 = dma.hbm_to_vmem [thread:$0]  %s5515_s1, 8192, %s24_s14, [#allocation3], %s3570_s16, %s3570_s16, %s3571_s17  }
   0xc   :  { %3567 = dma.done.wait [#allocation3], 8192  }
   0xd   :  { %3568 = vsyncadd [#allocation3], 4294959104  ;;  %v3643_v0 = vld [vmem:[%s5516_s2 + $0x8] sm:$0xff]  ;;  %v3648_v1 = vld [vmem:[%s5516_s2] sm:$0xff]  ;;  %s3572_s24 = smov 111   ;;  %s3573_s26 = smov 112   ;;  %v65_v7 = vlaneseq }
   0xe   :  { %292 = vrot.lane.b32.xlu0 %v3643_v0, %s3572_s24  ;;  %290 = vrot.lane.b32.xlu1 %v3648_v1, %s3572_s24  ;;  %v3657_v2 = vld [vmem:[%s5516_s2 + $0x10] sm:$0xff]  ;;  %v3666_v3 = vld [vmem:[%s5516_s2 + $0x18] sm:$0xff]  ;;  %s3574_s29 = smov 113   ;;  %s3575_s2 = smov 127   ;;  %v5525_v4 = vmov 0.0   ;;  %v3581_v5 = vmov 0  }
   0xf   :  { %s3576_s30 = smov 1   ;;  %s3577_s11 = smov 15   ;;  %398 = vmatprep.mubr.f32.mxu0 %v5525_v4  ;;  %469 = vmatprep.mubr.f32.mxu1 %v5525_v4  ;;  %v324_v6 = vld [vmem:[%s5518_s4] sm:$0xff]  ;;  %v3729_v8 = vshrl.u32 %v65_v7, 7  ;;  %v3731_v9 = vand.u32 127, %v65_v7  ;;  %v3736_v10 = vld [vmem:[%s5514_s0 + $0x8] sm:$0xff] }
  0x10   :  { %s3578_s12 = smov 16   ;;  %s3580_s13 = smov 17   ;;  %3266 = vset.pattern.permute.xlu0 %v3581_v5  ;;  %v3742_v14 = vld [vmem:[%s5514_s0] sm:$0xff]  ;;  %v3755_v18 = vld [vmem:[%s5514_s0 + $0x18] sm:$0xff]  ;;  %v3760_v19 = vld [vmem:[%s5514_s0 + $0x10] sm:$0xff]  ;;  %vm330_vm8 = vcmask 588800  }
  0x11   :  { %5574 = vst [vmem:[#allocation5_spill] sm:$0xff] %v3731_v9  ;;  %v305_v11 = vsub.s32 7, %v3729_v8  ;;  %vm298_vm0 = vcmp.lt.s32.totalorder %v3731_v9, 111  ;;  %v272_v15 = vsub.s32 6, %v3729_v8  ;;  %vm265_vm1 = vcmp.lt.s32.totalorder %v3731_v9, 112 }
  0x12   :  { %294 = vrot.lane.b32.xlu0 %v3657_v2, %s3572_s24  ;;  %259 = vrot.lane.b32.xlu1 %v3643_v0, %s3573_s26  ;;  %v239_v34 = vsub.s32 5, %v3729_v8  ;;  %vm232_vm2 = vcmp.lt.s32.totalorder %v3731_v9, 113  ;;  %v206_v55 = vsub.s32 4, %v3729_v8  ;;  %vm199_vm3 = vcmp.lt.s32.totalorder %v3731_v9, 127 }
  0x13   :  { %v3747_v16 = vrot.slane %v3736_v10, %v305_v11  ;;  %v3750_v17 = vrot.slane %v3742_v14, %v305_v11  ;;  %v3768_v24 = vrot.slane %v3736_v10, %v272_v15  ;;  %v3772_v26 = vrot.slane %v3755_v18, %v305_v11 }
  0x14   :  { %v3775_v27 = vrot.slane %v3760_v19, %v305_v11  ;;  %v3787_v36 = vrot.slane %v3742_v14, %v272_v15  ;;  %v3796_v43 = vrot.slane %v3736_v10, %v239_v34  ;;  %v3799_v44 = vrot.slane %v3760_v19, %v272_v15 }
  0x15   :  { %v3802_v45 = vrot.slane %v3755_v18, %v272_v15  ;;  %v3811_v51 = vrot.slane %v3742_v14, %v239_v34  ;;  %v3822_v60 = vrot.slane %v3736_v10, %v206_v55  ;;  %v3825_v61 = vrot.slane %v3760_v19, %v239_v34 }
  0x16   :  { %261 = vrot.lane.b32.xlu0 %v3657_v2, %s3573_s26  ;;  %296 = vrot.lane.b32.xlu1 %v3666_v3, %s3572_s24  ;;  %v3828_v62 = vrot.slane %v3755_v18, %v239_v34  ;;  %v3834_v7 = vrot.slane %v3760_v19, %v206_v55  ;;  %v3843_v15 = vrot.slane %v3755_v18, %v206_v55  ;;  %vm166_vm4 = vcmp.lt.s32.totalorder %v3731_v9, 1 }
  0x17   :  { %vm133_vm5 = vcmp.lt.s32.totalorder %v3731_v9, 15  ;;  %vm100_vm6 = vcmp.lt.s32.totalorder %v3731_v9, 16  ;;  %vm67_vm7 = vcmp.lt.s32.totalorder %v3731_v9, 17  ;;  %vm765_vm9 = vcmask 64512  }
  0x1a   :  { %257 = vrot.lane.b32.xlu0 %v3648_v1, %s3573_s26  ;;  %226 = vrot.lane.b32.xlu1 %v3643_v0, %s3574_s29 }
  0x1e   :  { %228 = vrot.lane.b32.xlu0 %v3657_v2, %s3574_s29  ;;  %263 = vrot.lane.b32.xlu1 %v3666_v3, %s3573_s26 }
  0x22   :  { %224 = vrot.lane.b32.xlu0 %v3648_v1, %s3574_s29  ;;  %193 = vrot.lane.b32.xlu1 %v3643_v0, %s3575_s2 }
  0x26   :  { %195 = vrot.lane.b32.xlu0 %v3657_v2, %s3575_s2  ;;  %230 = vrot.lane.b32.xlu1 %v3666_v3, %s3574_s29 }
  0x2a   :  { %191 = vrot.lane.b32.xlu0 %v3648_v1, %s3575_s2  ;;  %197 = vrot.lane.b32.xlu1 %v3666_v3, %s3575_s2 }
  0x2e   :  { %158 = vrot.lane.b32.xlu0 %v3648_v1, %s3576_s30  ;;  %160 = vrot.lane.b32.xlu1 %v3643_v0, %s3576_s30 }
  0x32   :  { %164 = vrot.lane.b32.xlu0 %v3666_v3, %s3576_s30  ;;  %125 = vrot.lane.b32.xlu1 %v3648_v1, %s3577_s11 }
  0x36   :  { %127 = vrot.lane.b32.xlu0 %v3643_v0, %s3577_s11  ;;  %162 = vrot.lane.b32.xlu1 %v3657_v2, %s3576_s30 }
  0x3a   :  { %131 = vrot.lane.b32.xlu0 %v3666_v3, %s3577_s11  ;;  %92 = vrot.lane.b32.xlu1 %v3648_v1, %s3578_s12 }
  0x3e   :  { %94 = vrot.lane.b32.xlu0 %v3643_v0, %s3578_s12  ;;  %129 = vrot.lane.b32.xlu1 %v3657_v2, %s3577_s11 }
  0x42   :  { %98 = vrot.lane.b32.xlu0 %v3666_v3, %s3578_s12  ;;  %57 = vrot.lane.b32.xlu1 %v3648_v1, %s3580_s13 }
  0x46   :  { %59 = vrot.lane.b32.xlu0 %v3643_v0, %s3580_s13  ;;  %96 = vrot.lane.b32.xlu1 %v3657_v2, %s3578_s12 }
  0x4a   :  { %63 = vrot.lane.b32.xlu0 %v3666_v3, %s3580_s13  ;;  %61 = vrot.lane.b32.xlu1 %v3657_v2, %s3580_s13 }
  0x4e   :  { %327 = vperm.xlu0 %3266, %v324_v6   ;;  %v3831_v6 = vrot.slane %v3742_v14, %v206_v55 }
  0x80   :  { %v293_v12 = vpop.permute.xlu0 %292  ;;  %v291_v13 = vpop.permute.xlu1 %290 }
  0x81   :  { %v301_v20 = vsel %vm298_vm0, %v291_v13, %v293_v12 }
  0x82   :  { %v319_v28 = vmul.f32 %v3750_v17, %v301_v20 }
  0x84   :  { %v295_v21 = vpop.permute.xlu0 %294  ;;  %v260_v22 = vpop.permute.xlu1 %259 }
  0x85   :  { %v300_v23 = vsel %vm298_vm0, %v293_v12, %v295_v21 }
  0x86   :  { %v320_v25 = vmul.f32 %v3747_v16, %v300_v23  ;;  %v173_v23 = vsub.s32 3, %v3729_v8 }
  0x88   :  { %v262_v29 = vpop.permute.xlu0 %261  ;;  %v297_v30 = vpop.permute.xlu1 %296  ;;  %348 = vmatprep.subr.mxu0 %v320_v25 }
  0x89   :  { %v267_v31 = vsel %vm265_vm1, %v260_v22, %v262_v29  ;;  %v299_v32 = vsel %vm298_vm0, %v295_v21, %v297_v30  ;;  %349 = vmatpush1.msra.mxu0 %v319_v28  ;;  %v302_v33 = vsel %vm298_vm0, %v297_v30, %v291_v13 }
  0x8a   :  { %v287_v35 = vmul.f32 %v3768_v24, %v267_v31  ;;  %v322_v37 = vmul.f32 %v3772_v26, %v302_v33  ;;  %v321_v38 = vmul.f32 %v3775_v27, %v299_v32 }
  0x8c   :  { %v258_v39 = vpop.permute.xlu0 %257  ;;  %v227_v40 = vpop.permute.xlu1 %226  ;;  %350 = vmatprep.subr.mxu0 %v287_v35  ;;  %419 = vmatprep.subr.mxu1 %v322_v37  ;;  %v3860_v35 = vrot.slane %v3736_v10, %v173_v23 }
  0x8d   :  { %v268_v41 = vsel %vm265_vm1, %v258_v39, %v260_v22  ;;  %420 = vmatpush1.msra.mxu1 %v321_v38 }
  0x8e   :  { %v286_v42 = vmul.f32 %v3787_v36, %v268_v41  ;;  %v3868_v41 = vrot.slane %v3742_v14, %v173_v23 }
  0x90   :  { %v229_v46 = vpop.permute.xlu0 %228  ;;  %v264_v47 = vpop.permute.xlu1 %263  ;;  %351 = vmatpush1.msra.mxu0 %v286_v42  ;;  %v140_v42 = vsub.s32 2, %v3729_v8 }
  0x91   :  { %v234_v48 = vsel %vm232_vm2, %v227_v40, %v229_v46  ;;  %v266_v49 = vsel %vm265_vm1, %v262_v29, %v264_v47  ;;  %v269_v50 = vsel %vm265_vm1, %v264_v47, %v258_v39 }
  0x92   :  { %v254_v52 = vmul.f32 %v3796_v43, %v234_v48  ;;  %v288_v53 = vmul.f32 %v3799_v44, %v266_v49  ;;  %v289_v54 = vmul.f32 %v3802_v45, %v269_v50  ;;  %v3881_v49 = vrot.slane %v3760_v19, %v173_v23 }
  0x93   :  { %v3893_v55 = vrot.slane %v3742_v14, %v140_v42 }
  0x94   :  { %v225_v56 = vpop.permute.xlu0 %224  ;;  %v194_v57 = vpop.permute.xlu1 %193  ;;  %352 = vmatprep.subr.mxu0 %v254_v52  ;;  %421 = vmatprep.subr.mxu1 %v289_v54 }
  0x95   :  { %v235_v58 = vsel %vm232_vm2, %v225_v56, %v227_v40  ;;  %422 = vmatpush1.msra.mxu1 %v288_v53 }
  0x96   :  { %v253_v59 = vmul.f32 %v3811_v51, %v235_v58 }
  0x98   :  { %v196_v63 = vpop.permute.xlu0 %195  ;;  %v231_v5 = vpop.permute.xlu1 %230  ;;  %353 = vmatpush1.msra.mxu0 %v253_v59  ;;  %v107_v59 = vsub.s32 1, %v3729_v8 }
  0x99   :  { %v201_v11 = vsel %vm199_vm3, %v194_v57, %v196_v63  ;;  %v233_v12 = vsel %vm232_vm2, %v229_v46, %v231_v5  ;;  %v236_v13 = vsel %vm232_vm2, %v231_v5, %v225_v56 }
  0x9a   :  { %v221_v20 = vmul.f32 %v3822_v60, %v201_v11  ;;  %v255_v21 = vmul.f32 %v3825_v61, %v233_v12  ;;  %v256_v22 = vmul.f32 %v3828_v62, %v236_v13  ;;  %v3904_v13 = vrot.slane %v3736_v10, %v107_v59 }
  0x9c   :  { %v192_v25 = vpop.permute.xlu0 %191  ;;  %v198_v28 = vpop.permute.xlu1 %197  ;;  %354 = vmatprep.subr.mxu0 %v221_v20  ;;  %423 = vmatprep.subr.mxu1 %v256_v22  ;;  %v3907_v20 = vrot.slane %v3760_v19, %v140_v42 }
  0x9d   :  { %v202_v29 = vsel %vm199_vm3, %v192_v25, %v194_v57  ;;  %v200_v30 = vsel %vm199_vm3, %v196_v63, %v198_v28  ;;  %v203_v31 = vsel %vm199_vm3, %v198_v28, %v192_v25  ;;  %424 = vmatpush1.msra.mxu1 %v255_v21  ;;  %v3910_v21 = vrot.slane %v3755_v18, %v140_v42 }
  0x9e   :  { %v220_v32 = vmul.f32 %v3831_v6, %v202_v29  ;;  %v222_v33 = vmul.f32 %v3834_v7, %v200_v30  ;;  %v223_v34 = vmul.f32 %v3843_v15, %v203_v31  ;;  %v3919_v30 = vrot.slane %v3742_v14, %v107_v59 }
  0xa0   :  { %v159_v37 = vpop.permute.xlu0 %158  ;;  %v161_v38 = vpop.permute.xlu1 %160  ;;  %355 = vmatpush1.msra.mxu0 %v220_v32  ;;  %425 = vmatprep.subr.mxu1 %v223_v34  ;;  %v74_v34 = vsub.s32 0, %v3729_v8  ;;  %v3936_v8 = vrot.slane %v3755_v18, %v107_v59 }
  0xa1   :  { %v169_v39 = vsel %vm166_vm4, %v159_v37, %v161_v38  ;;  %426 = vmatpush1.msra.mxu1 %v222_v33  ;;  %356 = vmatprep.subr.mxu0 %v3643_v0 }
  0xa2   :  { %v188_v40 = vmul.f32 %v3860_v35, %v169_v39  ;;  %357 = vmatpush1.msra.mxu0 %v3648_v1  ;;  %427 = vmatprep.subr.mxu1 %v3666_v3  ;;  %v3878_v1 = vrot.slane %v3736_v10, %v140_v42  ;;  %v3884_v3 = vrot.slane %v3755_v18, %v173_v23 }
  0xa3   :  { %428 = vmatpush1.msra.mxu1 %v3657_v2  ;;  %v3930_v42 = vrot.slane %v3736_v10, %v74_v34 }
  0xa4   :  { %v165_v46 = vpop.permute.xlu0 %164  ;;  %v126_v47 = vpop.permute.xlu1 %125  ;;  %358 = vmatprep.subr.mxu0 %v188_v40 }
  0xa5   :  { %v170_v48 = vsel %vm166_vm4, %v165_v46, %v159_v37 }
  0xa6   :  { %v187_v0 = vmul.f32 %v3868_v41, %v170_v48 }
  0xa8   :  { %v128_v2 = vpop.permute.xlu0 %127  ;;  %v163_v50 = vpop.permute.xlu1 %162  ;;  %359 = vmatpush1.msra.mxu0 %v187_v0  ;;  %v3939_v0 = vrot.slane %v3742_v14, %v74_v34  ;;  %v3954_v14 = vrot.slane %v3760_v19, %v74_v34 }
  0xa9   :  { %v136_v52 = vsel %vm133_vm5, %v126_v47, %v128_v2  ;;  %v167_v53 = vsel %vm166_vm4, %v163_v50, %v165_v46  ;;  %v168_v54 = vsel %vm166_vm4, %v161_v38, %v163_v50  ;;  %v3933_v46 = vrot.slane %v3760_v19, %v107_v59  ;;  %v323_v19 = vld [vmem:[%s5517_s3] sm:$0xff] }
  0xaa   :  { %v155_v56 = vmul.f32 %v3878_v1, %v136_v52  ;;  %v189_v57 = vmul.f32 %v3881_v49, %v168_v54  ;;  %v190_v58 = vmul.f32 %v3884_v3, %v167_v53  ;;  %v3948_v52 = vrot.slane %v3755_v18, %v74_v34 }
  0xac   :  { %v132_v63 = vpop.permute.xlu0 %131  ;;  %v93_v5 = vpop.permute.xlu1 %92  ;;  %360 = vmatprep.subr.mxu0 %v155_v56  ;;  %429 = vmatprep.subr.mxu1 %v190_v58 }
  0xad   :  { %v137_v11 = vsel %vm133_vm5, %v132_v63, %v126_v47  ;;  %430 = vmatpush1.msra.mxu1 %v189_v57 }
  0xae   :  { %v154_v12 = vmul.f32 %v3893_v55, %v137_v11 }
  0xb0   :  { %v95_v22 = vpop.permute.xlu0 %94  ;;  %v130_v23 = vpop.permute.xlu1 %129  ;;  %361 = vmatpush1.msra.mxu0 %v154_v12 }
  0xb1   :  { %v103_v25 = vsel %vm100_vm6, %v93_v5, %v95_v22  ;;  %v134_v28 = vsel %vm133_vm5, %v130_v23, %v132_v63  ;;  %v135_v29 = vsel %vm133_vm5, %v128_v2, %v130_v23 }
  0xb2   :  { %v122_v31 = vmul.f32 %v3904_v13, %v103_v25  ;;  %v156_v32 = vmul.f32 %v3907_v20, %v135_v29  ;;  %v157_v33 = vmul.f32 %v3910_v21, %v134_v28 }
  0xb4   :  { %v99_v37 = vpop.permute.xlu0 %98  ;;  %v58_v38 = vpop.permute.xlu1 %57  ;;  %362 = vmatprep.subr.mxu0 %v122_v31  ;;  %431 = vmatprep.subr.mxu1 %v157_v33 }
  0xb5   :  { %v104_v39 = vsel %vm100_vm6, %v99_v37, %v93_v5  ;;  %432 = vmatpush1.msra.mxu1 %v156_v32 }
  0xb6   :  { %v121_v40 = vmul.f32 %v3919_v30, %v104_v39 }
  0xb8   :  { %v60_v47 = vpop.permute.xlu0 %59  ;;  %v97_v48 = vpop.permute.xlu1 %96  ;;  %363 = vmatpush1.msra.mxu0 %v121_v40 }
  0xb9   :  { %v70_v2 = vsel %vm67_vm7, %v58_v38, %v60_v47  ;;  %v101_v50 = vsel %vm100_vm6, %v97_v48, %v99_v37  ;;  %v102_v10 = vsel %vm100_vm6, %v95_v22, %v97_v48 }
  0xba   :  { %v89_v53 = vmul.f32 %v3930_v42, %v70_v2  ;;  %v123_v54 = vmul.f32 %v3933_v46, %v102_v10  ;;  %v124_v56 = vmul.f32 %v3936_v8, %v101_v50 }
  0xbc   :  { %v64_v57 = vpop.permute.xlu0 %63  ;;  %v62_v58 = vpop.permute.xlu1 %61  ;;  %364 = vmatprep.subr.mxu0 %v89_v53  ;;  %433 = vmatprep.subr.mxu1 %v124_v56 }
  0xbd   :  { %v71_v59 = vsel %vm67_vm7, %v64_v57, %v58_v38  ;;  %v68_v18 = vsel %vm67_vm7, %v62_v58, %v64_v57  ;;  %v69_v63 = vsel %vm67_vm7, %v60_v47, %v62_v58  ;;  %434 = vmatpush1.msra.mxu1 %v123_v54  ;;  %v609_v47 = vld [vmem:[%s5520_s6] sm:$0xff] }
  0xbe   :  { %v88_v5 = vmul.f32 %v3939_v0, %v71_v59  ;;  %v91_v11 = vmul.f32 %v3948_v52, %v68_v18  ;;  %v90_v12 = vmul.f32 %v3954_v14, %v69_v63 }
  0xc0   :  { %365 = vmatpush1.msra.mxu0 %v88_v5  ;;  %435 = vmatprep.subr.mxu1 %v91_v11 }
  0xc1   :  { %3109 = vmatmul.mubr.msk.f32.vlgmr.msra.gmra.mxu0 %vm330_vm8, %v323_v19  ;;  %436 = vmatpush1.msra.mxu1 %v90_v12 }
  0xc2   :  { %3110 = vmatmul.mubr.msk.f32.vlgmr.msra.gmra.mxu1 %vm330_vm8, %v323_v19  ;;  %682 = vmatprep.mubr.f32.mxu0 %v5525_v4 }
  0xc3   :  { %753 = vmatprep.mubr.f32.mxu1 %v5525_v4 }
  0xc9   :  { %v328_v22 = vpop.permute.xlu0 %327 }
 0x181   :  { %v400_v23 = vpop.f32.mrf.mxu0 }
 0x182   :  { %v401_v25 = vadd.f32 %v400_v23, %v328_v22  ;;  %v471_v28 = vpop.f32.mrf.mxu1 }
 0x183   :  { %v472_v29 = vadd.f32 %v471_v28, %v328_v22  ;;  %v402_v33 = vpop.f32.mrf.mxu0 }
 0x184   :  { %v3972_v31 = vmax.f32 %v401_v25, 0.0  ;;  %v403_v34 = vadd.f32 %v402_v33, %v328_v22  ;;  %v473_v37 = vpop.f32.mrf.mxu1 }
 0x185   :  { %v3974_v32 = vmax.f32 %v472_v29, 0.0  ;;  %v474_v39 = vadd.f32 %v473_v37, %v328_v22 }
 0x186   :  { %592 = vrot.lane.b32.xlu0 %v3972_v31, %s3572_s24  ;;  %v4000_v38 = vmax.f32 %v403_v34, 0.0 }
 0x187   :  { %596 = vrot.lane.b32.xlu1 %v3974_v32, %s3572_s24  ;;  %v4006_v40 = vmax.f32 %v474_v39, 0.0 }
 0x18a   :  { %580 = vrot.lane.b32.xlu0 %v3974_v32, %s3573_s26 }
 0x18b   :  { %576 = vrot.lane.b32.xlu1 %v3972_v31, %s3573_s26 }
 0x18e   :  { %560 = vrot.lane.b32.xlu0 %v3972_v31, %s3574_s29 }
 0x18f   :  { %564 = vrot.lane.b32.xlu1 %v3974_v32, %s3574_s29 }
 0x192   :  { %548 = vrot.lane.b32.xlu0 %v3974_v32, %s3575_s2 }
 0x193   :  { %544 = vrot.lane.b32.xlu1 %v3972_v31, %s3575_s2 }
 0x196   :  { %528 = vrot.lane.b32.xlu0 %v3972_v31, %s3576_s30 }
 0x197   :  { %512 = vrot.lane.b32.xlu1 %v3972_v31, %s3577_s11 }
 0x19a   :  { %496 = vrot.lane.b32.xlu0 %v3972_v31, %s3578_s12 }
 0x19b   :  { %480 = vrot.lane.b32.xlu1 %v3972_v31, %s3580_s13 }
 0x19e   :  { %562 = vrot.lane.b32.xlu0 %v4000_v38, %s3574_s29 }
 0x19f   :  { %594 = vrot.lane.b32.xlu1 %v4000_v38, %s3572_s24 }
 0x1a2   :  { %534 = vrot.lane.b32.xlu0 %v4006_v40, %s3576_s30 }
 0x1a3   :  { %578 = vrot.lane.b32.xlu1 %v4000_v38, %s3573_s26 }
 0x1a6   :  { %514 = vrot.lane.b32.xlu0 %v4000_v38, %s3577_s11 }
 0x1a7   :  { %546 = vrot.lane.b32.xlu1 %v4000_v38, %s3575_s2 }
 0x1aa   :  { %502 = vrot.lane.b32.xlu0 %v4006_v40, %s3578_s12 }
 0x1ab   :  { %530 = vrot.lane.b32.xlu1 %v4000_v38, %s3576_s30 }
 0x1ae   :  { %482 = vrot.lane.b32.xlu0 %v4000_v38, %s3580_s13 }
 0x1af   :  { %518 = vrot.lane.b32.xlu1 %v4006_v40, %s3577_s11 }
 0x1b2   :  { %612 = vperm.xlu0 %3266, %v609_v47  }
 0x1b3   :  { %498 = vrot.lane.b32.xlu1 %v4000_v38, %s3578_s12 }
 0x1b6   :  { %598 = vrot.lane.b32.xlu0 %v4006_v40, %s3572_s24 }
 0x1b7   :  { %486 = vrot.lane.b32.xlu1 %v4006_v40, %s3580_s13 }
 0x1ba   :  { %550 = vrot.lane.b32.xlu0 %v4006_v40, %s3575_s2 }
 0x1be   :  { %516 = vrot.lane.b32.xlu0 %v3974_v32, %s3577_s11 }
 0x1f8   :  { %v4037_v48 = vpop.permute.xlu0 %592 }
 0x1f9   :  { %v4039_v2 = vpop.permute.xlu1 %596 }
 0x1fc   :  { %v4041_v50 = vpop.permute.xlu0 %580 }
 0x1fd   :  { %v4043_v10 = vpop.permute.xlu1 %576 }
 0x200   :  { %v4045_v53 = vpop.permute.xlu0 %560 }
 0x201   :  { %v4047_v54 = vpop.permute.xlu1 %564 }
 0x204   :  { %v4049_v56 = vpop.permute.xlu0 %548 }
 0x205   :  { %v4051_v57 = vpop.permute.xlu1 %544 }
 0x208   :  { %v529_v58 = vpop.permute.xlu0 %528 }
 0x209   :  { %v513_v59 = vpop.permute.xlu1 %512 }
 0x20c   :  { %v497_v18 = vpop.permute.xlu0 %496 }
 0x20d   :  { %v481_v63 = vpop.permute.xlu1 %480 }
 0x210   :  { %v563_v5 = vpop.permute.xlu0 %562 }
 0x211   :  { %v595_v11 = vpop.permute.xlu1 %594  ;;  %v569_v29 = vsel %vm232_vm2, %v563_v5, %v4047_v54 }
 0x212   :  { %v601_v19 = vsel %vm298_vm0, %v595_v11, %v4039_v2  ;;  %v602_v12 = vsel %vm298_vm0, %v4037_v48, %v595_v11  ;;  %v573_v47 = vmul.f32 %v569_v29, %v3796_v43 }
 0x213   :  { %v604_v22 = vmul.f32 %v602_v12, %v3750_v17  ;;  %v605_v23 = vmul.f32 %v601_v19, %v3747_v16  ;;  %v570_v16 = vsel %vm232_vm2, %v4045_v53, %v563_v5 }
 0x214   :  { %v4061_v25 = vpop.permute.xlu0 %534  ;;  %v572_v19 = vmul.f32 %v570_v16, %v3811_v51 }
 0x215   :  { %632 = vmatprep.subr.mxu0 %v605_v23  ;;  %v579_v28 = vpop.permute.xlu1 %578  ;;  %v539_v43 = vsel %vm166_vm4, %v4061_v25, %v529_v58 }
 0x216   :  { %v585_v33 = vsel %vm265_vm1, %v579_v28, %v4041_v50  ;;  %v586_v34 = vsel %vm265_vm1, %v4043_v10, %v579_v28  ;;  %633 = vmatpush1.msra.mxu0 %v604_v22  ;;  %v540_v28 = vmul.f32 %v539_v43, %v3868_v41 }
 0x217   :  { %v588_v17 = vmul.f32 %v586_v34, %v3787_v36  ;;  %v589_v37 = vmul.f32 %v585_v33, %v3768_v24 }
 0x218   :  { %v515_v39 = vpop.permute.xlu0 %514 }
 0x219   :  { %v547_v11 = vpop.permute.xlu1 %546  ;;  %634 = vmatprep.subr.mxu0 %v589_v37  ;;  %v522_v23 = vsel %vm133_vm5, %v513_v59, %v515_v39 }
 0x21a   :  { %v553_v12 = vsel %vm199_vm3, %v547_v11, %v4049_v56  ;;  %v554_v22 = vsel %vm199_vm3, %v4051_v57, %v547_v11  ;;  %635 = vmatpush1.msra.mxu0 %v588_v17  ;;  %v525_v29 = vmul.f32 %v522_v23, %v3878_v1  ;;  %v4162_v23 = vld [vmem:[%s5521_s7] sm:$0xff] }
 0x21b   :  { %v556_v36 = vmul.f32 %v554_v22, %v3831_v6  ;;  %v557_v24 = vmul.f32 %v553_v12, %v3822_v60  ;;  %636 = vmatprep.subr.mxu0 %v573_v47 }
 0x21c   :  { %637 = vmatpush1.msra.mxu0 %v572_v19  ;;  %v4090_v51 = vpop.permute.xlu0 %502 }
 0x21d   :  { %v4092_v5 = vpop.permute.xlu1 %530  ;;  %638 = vmatprep.subr.mxu0 %v557_v24 }
 0x21e   :  { %v538_v6 = vsel %vm166_vm4, %v529_v58, %v4092_v5  ;;  %639 = vmatpush1.msra.mxu0 %v556_v36 }
 0x21f   :  { %v541_v60 = vmul.f32 %v538_v6, %v3860_v35  ;;  %640 = vmatprep.subr.mxu0 %v4000_v38  ;;  %v507_v35 = vsel %vm100_vm6, %v4090_v51, %v497_v18 }
 0x220   :  { %641 = vmatpush1.msra.mxu0 %v3972_v31  ;;  %v4106_v16 = vpop.permute.xlu0 %482 }
 0x221   :  { %v519_v33 = vpop.permute.xlu1 %518  ;;  %642 = vmatprep.subr.mxu0 %v541_v60  ;;  %v490_v1 = vsel %vm67_vm7, %v481_v63, %v4106_v16 }
 0x222   :  { %v523_v34 = vsel %vm133_vm5, %v519_v33, %v513_v59  ;;  %643 = vmatpush1.msra.mxu0 %v540_v28  ;;  %v493_v59 = vmul.f32 %v490_v1, %v3930_v42 }
 0x223   :  { %v524_v58 = vmul.f32 %v523_v34, %v3893_v55  ;;  %644 = vmatprep.subr.mxu0 %v525_v29  ;;  %v508_v55 = vmul.f32 %v507_v35, %v3919_v30 }
 0x225   :  { %v4112_v41 = vpop.permute.xlu1 %498  ;;  %645 = vmatpush1.msra.mxu0 %v524_v58 }
 0x226   :  { %v506_v31 = vsel %vm100_vm6, %v497_v18, %v4112_v41  ;;  %v4132_v18 = vld [vmem:[%s5519_s5] sm:$0xff] }
 0x227   :  { %v509_v38 = vmul.f32 %v506_v31, %v3904_v13 }
 0x229   :  { %v4123_v17 = vpop.permute.xlu1 %486  ;;  %646 = vmatprep.subr.mxu0 %v509_v38 }
 0x22a   :  { %v491_v37 = vsel %vm67_vm7, %v4123_v17, %v481_v63  ;;  %647 = vmatpush1.msra.mxu0 %v508_v55 }
 0x22b   :  { %v492_v47 = vmul.f32 %v491_v37, %v3939_v0  ;;  %648 = vmatprep.subr.mxu0 %v493_v59 }
 0x22d   :  { %649 = vmatpush1.msra.mxu0 %v492_v47  ;;  %v4134_v13 = vpop.permute.xlu0 %612 }
 0x22e   :  { %3111 = vmatmul.mubr.msk.f32.vlgmr.msra.gmra.mxu0 %vm330_vm8, %v4132_v18 }
 0x22f   :  { %833 = vmatprep.mubr.f32.mxu0 %v5525_v4 }
 0x231   :  { %v599_v30 = vpop.permute.xlu0 %598 }
 0x232   :  { %v600_v42 = vsel %vm298_vm0, %v4039_v2, %v599_v30  ;;  %v603_v0 = vsel %vm298_vm0, %v599_v30, %v4037_v48 }
 0x233   :  { %v606_v63 = vmul.f32 %v600_v42, %v3775_v27  ;;  %v607_v11 = vmul.f32 %v603_v0, %v3772_v26 }
 0x235   :  { %703 = vmatprep.subr.mxu1 %v607_v11  ;;  %v4147_v19 = vpop.permute.xlu0 %550 }
 0x236   :  { %704 = vmatpush1.msra.mxu1 %v606_v63 }
 0x239   :  { %v517_v12 = vpop.permute.xlu0 %516 }
 0x23a   :  { %v4151_v22 = vsel %vm133_vm5, %v517_v12, %v519_v33  ;;  %v4155_v2 = vsel %vm133_vm5, %v515_v39, %v517_v12  ;;  %v4170_v39 = vld [vmem:[%s5522_s8] sm:$0xff] }
 0x2ee   :  { %v684_v36 = vpop.f32.mrf.mxu0 }
 0x2ef   :  { %v685_v48 = vadd.f32 %v684_v36, %v4134_v13 }
 0x2f0   :  { %v686_v24 = vpop.f32.mrf.mxu0 }
 0x2f1   :  { %v687_v27 = vadd.f32 %v686_v24, %v4134_v13  ;;  %v760_v43 = vmax.f32 %v685_v48, 0.0 }
 0x2f3   :  { %v761_v26 = vmax.f32 %v687_v27, 0.0 }
 0x2f5   :  { %799 = vmatprep.subr.mxu0 %v761_v26 }
 0x2f6   :  { %800 = vmatpush1.msra.mxu0 %v760_v43 }
 0x2f7   :  { %3113 = vmatmul.mubr.msk.f32.vlgmr.msra.gmra.mxu0 %vm765_vm9, %v4162_v23  ;;  %945 = vmatprep.subr.mxu0 %v761_v26 }
 0x2f8   :  { %946 = vmatpush1.msra.mxu0 %v760_v43  ;;  %979 = vmatprep.mubr.f32.mxu0 %v5525_v4 }
 0x2f9   :  { %1247 = vmatprep.subr.mxu0 %v761_v26 }
 0x2fb   :  { %3115 = vmatmul.mubr.msk.f32.vlgmr.msra.gmra.mxu0 %vm765_vm9, %v4170_v39 }
 0x2fc   :  { %1248 = vmatpush1.msra.mxu0 %v760_v43  ;;  %1281 = vmatprep.mubr.f32.mxu0 %v5525_v4 }
 0x3b7   :  { %v835_v6 = vpop.f32.mrf.mxu0 }
 0x3b8   :  { %1057 = vxpose.xlu1.b32.start.end [1/1] (short) %v835_v6, 128 }
 0x3b9   :  { %v837_v60 = vpop.f32.mrf.mxu0 }
 0x3ba   :  { %1089 = vxpose.xlu0.b32.start.end [1/1] (short) %v837_v60, 128 }
 0x412   :  { %582 = vrot.lane.b32.xlu1 %v4006_v40, %s3573_s26 }
 0x416   :  { %566 = vrot.lane.b32.xlu1 %v4006_v40, %s3574_s29 }
 0x41a   :  { %532 = vrot.lane.b32.xlu1 %v3974_v32, %s3576_s30 }
 0x41e   :  { %500 = vrot.lane.b32.xlu1 %v3974_v32, %s3578_s12 }
 0x41f   :  { %484 = vrot.lane.b32.xlu0 %v3974_v32, %s3580_s13 }
 0x434   :  { %v1073_v28 = vpop.trf.xlu1 }
 0x435   :  { %3117 = vmatmul.mubr.msk.f32.vlgmr.msra.gmra.mxu0 %vm765_vm9, %v1073_v28 }
 0x436   :  { %1287 = vmatprep.mubr.f32.mxu0 %v5525_v4  ;;  %v1105_v29 = vpop.trf.xlu0 }
 0x438   :  { %v1074_v33 = vpop.trf.xlu1 }
 0x439   :  { %3118 = vmatmul.mubr.msk.f32.gmra.mxu0 %vm765_vm9, %v1074_v33 }
 0x43a   :  { %1293 = vmatprep.mubr.f32.mxu0 %v5525_v4  ;;  %v1106_v34 = vpop.trf.xlu0 }
 0x43c   :  { %v1075_v58 = vpop.trf.xlu1 }
 0x43d   :  { %3119 = vmatmul.mubr.msk.f32.gmra.mxu0 %vm765_vm9, %v1075_v58 }
 0x43e   :  { %1299 = vmatprep.mubr.f32.mxu0 %v5525_v4  ;;  %v1107_v35 = vpop.trf.xlu0 }
 0x440   :  { %v1076_v1 = vpop.trf.xlu1 }
 0x441   :  { %3120 = vmatmul.mubr.msk.f32.gmra.mxu0 %vm765_vm9, %v1076_v1 }
 0x442   :  { %1305 = vmatprep.mubr.f32.mxu0 %v5525_v4  ;;  %v1108_v31 = vpop.trf.xlu0 }
 0x444   :  { %v1077_v38 = vpop.trf.xlu1 }
 0x445   :  { %3121 = vmatmul.mubr.msk.f32.gmra.mxu0 %vm765_vm9, %v1077_v38 }
 0x446   :  { %1311 = vmatprep.mubr.f32.mxu0 %v5525_v4  ;;  %v1109_v59 = vpop.trf.xlu0 }
 0x448   :  { %v1078_v55 = vpop.trf.xlu1 }
 0x449   :  { %3122 = vmatmul.mubr.msk.f32.gmra.mxu0 %vm765_vm9, %v1078_v55 }
 0x44a   :  { %1317 = vmatprep.mubr.f32.mxu0 %v5525_v4  ;;  %v1110_v47 = vpop.trf.xlu0 }
 0x44c   :  { %v1079_v37 = vpop.trf.xlu1 }
 0x44d   :  { %3123 = vmatmul.mubr.msk.f32.gmra.mxu0 %vm765_vm9, %v1079_v37 }
 0x44e   :  { %1323 = vmatprep.mubr.f32.mxu0 %v5525_v4  ;;  %v4202_v0 = vpop.trf.xlu0 }
 0x450   :  { %v1080_v30 = vpop.trf.xlu1 }
 0x451   :  { %3124 = vmatmul.mubr.msk.f32.gmra.mxu0 %vm765_vm9, %v1080_v30 }
 0x452   :  { %1329 = vmatprep.mubr.f32.mxu0 %v5525_v4  ;;  %v4207_v11 = vpop.trf.xlu0 }
 0x454   :  { %v1081_v42 = vpop.trf.xlu1 }
 0x455   :  { %3125 = vmatmul.mubr.msk.f32.gmra.mxu0 %vm765_vm9, %v1081_v42 }
 0x456   :  { %1335 = vmatprep.mubr.f32.mxu0 %v5525_v4  ;;  %v4212_v48 = vpop.trf.xlu0 }
 0x458   :  { %v1082_v63 = vpop.trf.xlu1 }
 0x459   :  { %3126 = vmatmul.mubr.msk.f32.gmra.mxu0 %vm765_vm9, %v1082_v63 }
 0x45a   :  { %1341 = vmatprep.mubr.f32.mxu0 %v5525_v4  ;;  %v4217_v27 = vpop.trf.xlu0 }
 0x45c   :  { %v1083_v12 = vpop.trf.xlu1 }
 0x45d   :  { %3127 = vmatmul.mubr.msk.f32.gmra.mxu0 %vm765_vm9, %v1083_v12 }
 0x45e   :  { %1347 = vmatprep.mubr.f32.mxu0 %v5525_v4  ;;  %v4222_v6 = vpop.trf.xlu0 }
 0x460   :  { %v1084_v36 = vpop.trf.xlu1 }
 0x461   :  { %3128 = vmatmul.mubr.msk.f32.gmra.mxu0 %vm765_vm9, %v1084_v36 }
 0x462   :  { %1353 = vmatprep.mubr.f32.mxu0 %v5525_v4  ;;  %v4227_v28 = vpop.trf.xlu0 }
 0x464   :  { %v1085_v24 = vpop.trf.xlu1 }
 0x465   :  { %3129 = vmatmul.mubr.msk.f32.gmra.mxu0 %vm765_vm9, %v1085_v24 }
 0x466   :  { %1359 = vmatprep.mubr.f32.mxu0 %v5525_v4  ;;  %v4232_v33 = vpop.trf.xlu0 }
 0x468   :  { %v1086_v26 = vpop.trf.xlu1 }
 0x469   :  { %3130 = vmatmul.mubr.msk.f32.gmra.mxu0 %vm765_vm9, %v1086_v26 }
 0x46a   :  { %1365 = vmatprep.mubr.f32.mxu0 %v5525_v4  ;;  %v4237_v58 = vpop.trf.xlu0 }
 0x46c   :  { %v1087_v43 = vpop.trf.xlu1 }
 0x46d   :  { %3131 = vmatmul.mubr.msk.f32.gmra.mxu0 %vm765_vm9, %v1087_v43 }
 0x46e   :  { %1371 = vmatprep.mubr.f32.mxu0 %v5525_v4 }
 0x470   :  { %v1088_v60 = vpop.trf.xlu1 }
 0x471   :  { %3132 = vmatmul.mubr.msk.f32.gmra.mxu0 %vm765_vm9, %v1088_v60 }
 0x472   :  { %1377 = vmatprep.mubr.f32.mxu0 %v5525_v4 }
 0x475   :  { %3133 = vmatmul.mubr.msk.f32.gmra.mxu0 %vm765_vm9, %v1105_v29 }
 0x476   :  { %1383 = vmatprep.mubr.f32.mxu0 %v5525_v4 }
 0x479   :  { %3134 = vmatmul.mubr.msk.f32.gmra.mxu0 %vm765_vm9, %v1106_v34 }
 0x47a   :  { %1389 = vmatprep.mubr.f32.mxu0 %v5525_v4 }
 0x47d   :  { %3135 = vmatmul.mubr.msk.f32.gmra.mxu0 %vm765_vm9, %v1107_v35  ;;  %v4248_v35 = vpop.trf.xlu0 }
 0x47e   :  { %1395 = vmatprep.mubr.f32.mxu0 %v5525_v4 }
 0x481   :  { %3136 = vmatmul.mubr.msk.f32.gmra.mxu0 %vm765_vm9, %v1108_v31  ;;  %v1120_v37 = vpop.trf.xlu0 }
 0x482   :  { %1401 = vmatprep.mubr.f32.mxu0 %v5525_v4 }
 0x484   :  { %v583_v1 = vpop.permute.xlu1 %582 }
 0x485   :  { %v584_v29 = vsel %vm265_vm1, %v4041_v50, %v583_v1  ;;  %v587_v34 = vsel %vm265_vm1, %v583_v1, %v4043_v10  ;;  %3137 = vmatmul.mubr.msk.f32.gmra.mxu0 %vm765_vm9, %v1109_v59  ;;  %v555_v50 = vsel %vm199_vm3, %v4147_v19, %v4051_v57 }
 0x486   :  { %v590_v38 = vmul.f32 %v584_v29, %v3799_v44  ;;  %v591_v55 = vmul.f32 %v587_v34, %v3802_v45  ;;  %1407 = vmatprep.mubr.f32.mxu0 %v5525_v4  ;;  %v552_v44 = vsel %vm199_vm3, %v4049_v56, %v4147_v19 }
 0x488   :  { %v567_v31 = vpop.permute.xlu1 %566  ;;  %705 = vmatprep.subr.mxu1 %v591_v55 }
 0x489   :  { %v568_v10 = vsel %vm232_vm2, %v4047_v54, %v567_v31  ;;  %v571_v59 = vsel %vm232_vm2, %v567_v31, %v4045_v53  ;;  %706 = vmatpush1.msra.mxu1 %v590_v38  ;;  %3138 = vmatmul.mubr.msk.f32.gmra.mxu0 %vm765_vm9, %v1110_v47  ;;  %v559_v54 = vmul.f32 %v555_v50, %v3843_v15 }
 0x48a   :  { %v574_v45 = vmul.f32 %v568_v10, %v3825_v61  ;;  %v575_v57 = vmul.f32 %v571_v59, %v3828_v62  ;;  %1413 = vmatprep.mubr.f32.mxu0 %v5525_v4  ;;  %v558_v53 = vmul.f32 %v552_v44, %v3834_v7 }
 0x48c   :  { %v533_v30 = vpop.permute.xlu1 %532  ;;  %707 = vmatprep.subr.mxu1 %v575_v57 }
 0x48d   :  { %v536_v47 = vsel %vm166_vm4, %v533_v30, %v4061_v25  ;;  %708 = vmatpush1.msra.mxu1 %v574_v45  ;;  %3139 = vmatmul.mubr.msk.f32.gmra.mxu0 %vm765_vm9, %v4202_v0  ;;  %v537_v61 = vsel %vm166_vm4, %v4092_v5, %v533_v30  ;;  %v527_v5 = vmul.f32 %v4151_v22, %v3910_v21 }
 0x48e   :  { %709 = vmatprep.subr.mxu1 %v559_v54  ;;  %1419 = vmatprep.mubr.f32.mxu0 %v5525_v4  ;;  %v543_v62 = vmul.f32 %v536_v47, %v3884_v3  ;;  %v542_v7 = vmul.f32 %v537_v61, %v3881_v49  ;;  %v526_v49 = vmul.f32 %v4155_v2, %v3907_v20 }
 0x48f   :  { %710 = vmatpush1.msra.mxu1 %v558_v53 }
 0x490   :  { %v501_v15 = vpop.permute.xlu1 %500  ;;  %711 = vmatprep.subr.mxu1 %v4006_v40 }
 0x491   :  { %v504_v56 = vsel %vm100_vm6, %v501_v15, %v4090_v51  ;;  %712 = vmatpush1.msra.mxu1 %v3974_v32  ;;  %3140 = vmatmul.mubr.msk.f32.gmra.mxu0 %vm765_vm9, %v4207_v11  ;;  %v485_v25 = vpop.permute.xlu0 %484  ;;  %v505_v3 = vsel %vm100_vm6, %v4112_v41, %v501_v15 }
 0x492   :  { %713 = vmatprep.subr.mxu1 %v543_v62  ;;  %v488_v40 = vsel %vm67_vm7, %v485_v25, %v4123_v17  ;;  %1425 = vmatprep.mubr.f32.mxu0 %v5525_v4  ;;  %v511_v32 = vmul.f32 %v504_v56, %v3936_v8  ;;  %v489_v21 = vsel %vm67_vm7, %v4106_v16, %v485_v25 }
 0x493   :  { %714 = vmatpush1.msra.mxu1 %v542_v7  ;;  %v510_v51 = vmul.f32 %v505_v3, %v3933_v46  ;;  %v495_v20 = vmul.f32 %v488_v40, %v3948_v52  ;;  %v494_v41 = vmul.f32 %v489_v21, %v3954_v14  ;;  %v4334_v46 = vpop.f32.mrf.mxu0 }
 0x494   :  { %715 = vmatprep.subr.mxu1 %v527_v5  ;;  %5575 = vst [vmem:[#allocation6_spill] sm:$0xff] %v4334_v46 }
 0x495   :  { %716 = vmatpush1.msra.mxu1 %v526_v49  ;;  %3141 = vmatmul.mubr.msk.f32.gmra.mxu0 %vm765_vm9, %v4212_v48  ;;  %v4336_v8 = vpop.f32.mrf.mxu0 }
 0x496   :  { %717 = vmatprep.subr.mxu1 %v511_v32  ;;  %1431 = vmatprep.mubr.f32.mxu0 %v5525_v4 }
 0x497   :  { %718 = vmatpush1.msra.mxu1 %v510_v51 }
 0x498   :  { %719 = vmatprep.subr.mxu1 %v495_v20 }
 0x499   :  { %720 = vmatpush1.msra.mxu1 %v494_v41  ;;  %3142 = vmatmul.mubr.msk.f32.gmra.mxu0 %vm765_vm9, %v4217_v27 }
 0x49a   :  { %3112 = vmatmul.mubr.msk.f32.vlgmr.msra.gmra.mxu1 %vm330_vm8, %v4132_v18  ;;  %1437 = vmatprep.mubr.f32.mxu0 %v5525_v4 }
 0x49b   :  { %904 = vmatprep.mubr.f32.mxu1 %v5525_v4 }
 0x49d   :  { %3143 = vmatmul.mubr.msk.f32.gmra.mxu0 %vm765_vm9, %v4222_v6 }
 0x49e   :  { %1443 = vmatprep.mubr.f32.mxu0 %v5525_v4 }
 0x4a1   :  { %3144 = vmatmul.mubr.msk.f32.gmra.mxu0 %vm765_vm9, %v4227_v28 }
 0x4a2   :  { %1449 = vmatprep.mubr.f32.mxu0 %v5525_v4 }
 0x4a5   :  { %3145 = vmatmul.mubr.msk.f32.gmra.mxu0 %vm765_vm9, %v4232_v33 }
 0x4a6   :  { %1455 = vmatprep.mubr.f32.mxu0 %v5525_v4 }
 0x4a9   :  { %3146 = vmatmul.mubr.msk.f32.gmra.mxu0 %vm765_vm9, %v4237_v58 }
 0x4aa   :  { %1461 = vmatprep.mubr.f32.mxu0 %v5525_v4 }
 0x4ad   :  { %3147 = vmatmul.mubr.msk.f32.gmra.mxu0 %vm765_vm9, %v4248_v35 }
 0x4ae   :  { %1467 = vmatprep.mubr.f32.mxu0 %v5525_v4 }
 0x4b1   :  { %3148 = vmatmul.mubr.msk.f32.gmra.mxu0 %vm765_vm9, %v1120_v37 }
 0x4f5   :  { %v4338_v52 = vpop.f32.mrf.mxu0 }
 0x4f7   :  { %v4340_v14 = vpop.f32.mrf.mxu0 }
 0x4f9   :  { %v4342_v16 = vpop.f32.mrf.mxu0 }
 0x4fa   :  { %5576 = vst [vmem:[#allocation7_spill] sm:$0xff] %v4342_v16 }
 0x4fb   :  { %v4344_v17 = vpop.f32.mrf.mxu0 }
 0x4fc   :  { %5577 = vst [vmem:[#allocation8_spill] sm:$0xff] %v4344_v17 }
 0x4fd   :  { %v4346_v18 = vpop.f32.mrf.mxu0 }
 0x4fe   :  { %5578 = vst [vmem:[#allocation9_spill] sm:$0xff] %v4346_v18  ;;  %v1474_v3 = vmax.f32 %v4338_v52, %v4346_v18 }
 0x4ff   :  { %v4348_v19 = vpop.f32.mrf.mxu0 }
 0x500   :  { %5579 = vst [vmem:[#allocation10_spill] sm:$0xff] %v4348_v19 }
 0x501   :  { %v4350_v22 = vpop.f32.mrf.mxu0 }
 0x502   :  { %5580 = vst [vmem:[#allocation11_spill] sm:$0xff] %v4350_v22  ;;  %v1475_v49 = vmax.f32 %v4342_v16, %v4350_v22 }
 0x503   :  { %v4352_v2 = vpop.f32.mrf.mxu0 }
 0x504   :  { %5581 = vst [vmem:[#allocation12_spill] sm:$0xff] %v4352_v2 }
 0x505   :  { %v4354_v42 = vpop.f32.mrf.mxu0 }
 0x506   :  { %5582 = vst [vmem:[#allocation13_spill] sm:$0xff] %v4354_v42  ;;  %v1476_v32 = vmax.f32 %v1474_v3, %v4354_v42 }
 0x507   :  { %v4356_v0 = vpop.f32.mrf.mxu0 }
 0x509   :  { %v4358_v63 = vpop.f32.mrf.mxu0 }
 0x50a   :  { %v1477_v21 = vmax.f32 %v1475_v49, %v4358_v63 }
 0x50b   :  { %v4360_v11 = vpop.f32.mrf.mxu0 }
 0x50c   :  { %5583 = vst [vmem:[#allocation14_spill] sm:$0xff] %v4360_v11 }
 0x50d   :  { %v4362_v12 = vpop.f32.mrf.mxu0 }
 0x50e   :  { %5584 = vst [vmem:[#allocation15_spill] sm:$0xff] %v4362_v12  ;;  %v1478_v20 = vmax.f32 %v1476_v32, %v4362_v12 }
 0x50f   :  { %v4364_v36 = vpop.f32.mrf.mxu0 }
 0x511   :  { %v4366_v48 = vpop.f32.mrf.mxu0 }
 0x512   :  { %5585 = vst [vmem:[#allocation16_spill] sm:$0xff] %v4366_v48  ;;  %v1479_v41 = vmax.f32 %v1477_v21, %v4366_v48 }
 0x513   :  { %v4368_v24 = vpop.f32.mrf.mxu0 }
 0x514   :  { %5586 = vst [vmem:[#allocation17_spill] sm:$0xff] %v4368_v24 }
 0x515   :  { %v4370_v27 = vpop.f32.mrf.mxu0 }
 0x516   :  { %v1480_v46 = vmax.f32 %v1478_v20, %v4370_v27 }
 0x517   :  { %v4372_v26 = vpop.f32.mrf.mxu0 }
 0x518   :  { %5587 = vst [vmem:[#allocation18_spill] sm:$0xff] %v4372_v26 }
 0x519   :  { %v4374_v43 = vpop.f32.mrf.mxu0 }
 0x51a   :  { %v1481_v18 = vmax.f32 %v1479_v41, %v4374_v43 }
 0x51b   :  { %v4376_v6 = vpop.f32.mrf.mxu0 }
 0x51c   :  { %5588 = vst [vmem:[#allocation19_spill] sm:$0xff] %v4376_v6 }
 0x51d   :  { %v4378_v60 = vpop.f32.mrf.mxu0 }
 0x51e   :  { %v1482_v49 = vmax.f32 %v1480_v46, %v4378_v60 }
 0x51f   :  { %v4380_v28 = vpop.f32.mrf.mxu0 }
 0x521   :  { %v4382_v33 = vpop.f32.mrf.mxu0 }
 0x522   :  { %v1483_v32 = vmax.f32 %v1481_v18, %v4382_v33 }
 0x523   :  { %v4384_v58 = vpop.f32.mrf.mxu0 }
 0x525   :  { %v4386_v1 = vpop.f32.mrf.mxu0 }
 0x526   :  { %v1484_v48 = vmax.f32 %v1482_v49, %v4386_v1 }
 0x527   :  { %v4388_v29 = vpop.f32.mrf.mxu0 }
 0x529   :  { %v4390_v34 = vpop.f32.mrf.mxu0 }
 0x52a   :  { %v1485_v20 = vmax.f32 %v1483_v32, %v4390_v34 }
 0x52b   :  { %v4392_v35 = vpop.f32.mrf.mxu0 }
 0x52d   :  { %v4394_v38 = vpop.f32.mrf.mxu0 }
 0x52f   :  { %v4396_v55 = vpop.f32.mrf.mxu0 }
 0x531   :  { %v4398_v31 = vpop.f32.mrf.mxu0 }
 0x532   :  { %v1487_v46 = vmax.f32 %v1485_v20, %v4398_v31  ;;  %v1512_v20 = vmax.f32 %v4344_v17, %v4352_v2 }
 0x533   :  { %v4400_v50 = vpop.f32.mrf.mxu0 }
 0x535   :  { %v4402_v10 = vpop.f32.mrf.mxu0 }
 0x537   :  { %v4404_v59 = vpop.f32.mrf.mxu0 }
 0x539   :  { %v4406_v44 = vpop.f32.mrf.mxu0 }
 0x53b   :  { %v4408_v45 = vpop.f32.mrf.mxu0 }
 0x53d   :  { %v4410_v57 = vpop.f32.mrf.mxu0 }
 0x53f   :  { %v4412_v37 = vpop.f32.mrf.mxu0 }
 0x541   :  { %v4414_v54 = vpop.f32.mrf.mxu0 }
 0x543   :  { %v4416_v30 = vpop.f32.mrf.mxu0 }
 0x545   :  { %v4418_v53 = vpop.f32.mrf.mxu0 }
 0x547   :  { %v4420_v47 = vpop.f32.mrf.mxu0 }
 0x549   :  { %v4422_v61 = vpop.f32.mrf.mxu0 }
 0x54b   :  { %v4424_v62 = vpop.f32.mrf.mxu0 }
 0x54d   :  { %v4426_v15 = vpop.f32.mrf.mxu0 }
 0x54f   :  { %v4428_v7 = vpop.f32.mrf.mxu0 }
 0x551   :  { %v4430_v56 = vpop.f32.mrf.mxu0 }
 0x553   :  { %v4432_v25 = vpop.f32.mrf.mxu0 }
 0x555   :  { %v4434_v5 = vpop.f32.mrf.mxu0 }
 0x557   :  { %v4440_v40 = vpop.f32.mrf.mxu0 }
 0x559   :  { %v4444_v51 = vpop.f32.mrf.mxu0 }
 0x55a   :  { %v755_v4 = vpop.f32.mrf.mxu1 }
 0x55b   :  { %v4448_v9 = vpop.f32.mrf.mxu0  ;;  %v756_v22 = vadd.f32 %v755_v4, %v4134_v13 }
 0x55c   :  { %v757_v16 = vpop.f32.mrf.mxu1 }
 0x55d   :  { %v758_v3 = vadd.f32 %v757_v16, %v4134_v13  ;;  %v4454_v42 = vpop.f32.mrf.mxu0  ;;  %v4464_v41 = vmax.f32 %v756_v22, 0.0  ;;  %v1486_v13 = vmax.f32 %v1484_v48, %v4394_v38  ;;  %v1489_v22 = vmax.f32 %v1487_v46, %v4406_v44 }
 0x55f   :  { %v4458_v12 = vmax.f32 %v758_v3, 0.0  ;;  %v4460_v21 = vpop.f32.mrf.mxu0  ;;  %5590 = vst [vmem:[#allocation21_spill] sm:$0xff] %v4464_v41  ;;  %v1488_v18 = vmax.f32 %v1486_v13, %v4402_v10  ;;  %v5592_v3 = vmov 0.0   ;;  %v1491_v32 = vmax.f32 %v1489_v22, %v4414_v54 }
 0x560   :  { %v1514_v22 = vmax.f32 %v1512_v20, %v4360_v11 }
 0x561   :  { %5589 = vst [vmem:[#allocation20_spill] sm:$0xff] %v4458_v12  ;;  %870 = vmatprep.subr.mxu1 %v4458_v12  ;;  %v4467_v4 = vpop.f32.mrf.mxu0  ;;  %v1490_v49 = vmax.f32 %v1488_v18, %v4410_v57  ;;  %v1493_v46 = vmax.f32 %v1491_v32, %v4422_v61  ;;  %v1511_v18 = vmax.f32 %v4340_v14, %v4348_v19 }
 0x562   :  { %871 = vmatpush1.msra.mxu1 %v4464_v41 }
 0x563   :  { %3114 = vmatmul.mubr.msk.f32.vlgmr.msra.gmra.mxu1 %vm765_vm9, %v4162_v23  ;;  %1016 = vmatprep.subr.mxu1 %v4458_v12  ;;  %v4475_v16 = vpop.f32.mrf.mxu0  ;;  %v1492_v13 = vmax.f32 %v1490_v49, %v4418_v53  ;;  %v1495_v12 = vmax.f32 %v1493_v46, %v4430_v56  ;;  %v1513_v2 = vmax.f32 %v1511_v18, %v4356_v0 }
 0x564   :  { %5591 = vst [vmem:[#allocation22_spill] sm:$0xff] %v4475_v16  ;;  %1017 = vmatpush1.msra.mxu1 %v4464_v41  ;;  %1050 = vmatprep.mubr.f32.mxu1 %v5592_v3  ;;  %v1516_v49 = vmax.f32 %v1514_v22, %v4368_v24 }
 0x565   :  { %v4481_v48 = vpop.f32.mrf.mxu0  ;;  %v1515_v19 = vmax.f32 %v1513_v2, %v4364_v36 }
 0x566   :  { %5593 = vst [vmem:[#allocation23_spill] sm:$0xff] %v4481_v48  ;;  %v1518_v20 = vmax.f32 %v1516_v49, %v4376_v6 }
 0x567   :  { %3116 = vmatmul.mubr.msk.f32.vlgmr.msra.gmra.mxu1 %vm765_vm9, %v4170_v39  ;;  %v4487_v23 = vpop.f32.mrf.mxu0  ;;  %v1494_v39 = vmax.f32 %v1492_v13, %v4426_v15  ;;  %v1517_v18 = vmax.f32 %v1515_v19, %v4372_v26 }
 0x568   :  { %5594 = vst [vmem:[#allocation24_spill] sm:$0xff] %v4487_v23  ;;  %1878 = vmatprep.mubr.f32.mxu1 %v4336_v8  ;;  %v1497_v8 = vmax.f32 %v1495_v12, %v4444_v51  ;;  %v1520_v22 = vmax.f32 %v1518_v20, %v4384_v58 }
 0x569   :  { %v4494_v41 = vpop.f32.mrf.mxu0  ;;  %v1496_v32 = vmax.f32 %v1494_v39, %v4434_v5  ;;  %v1519_v2 = vmax.f32 %v1517_v18, %v4380_v28 }
 0x56a   :  { %5595 = vst [vmem:[#allocation25_spill] sm:$0xff] %v4494_v41  ;;  %v1499_v46 = vmax.f32 %v1497_v8, %v4467_v4  ;;  %v1522_v49 = vmax.f32 %v1520_v22, %v4392_v35 }
 0x56b   :  { %v4501_v3 = vpop.f32.mrf.mxu0  ;;  %v1498_v13 = vmax.f32 %v1496_v32, %v4454_v42  ;;  %v1521_v6 = vmax.f32 %v1519_v2, %v4388_v29 }
 0x56c   :  { %5596 = vst [vmem:[#allocation26_spill] sm:$0xff] %v4501_v3  ;;  %v1501_v12 = vmax.f32 %v1499_v46, %v4494_v41  ;;  %v1524_v19 = vmax.f32 %v1522_v49, %v4400_v50 }
 0x56d   :  { %v4507_v17 = vpop.f32.mrf.mxu0  ;;  %v1500_v39 = vmax.f32 %v1498_v13, %v4481_v48  ;;  %v1523_v20 = vmax.f32 %v1521_v6, %v4396_v55 }
 0x56e   :  { %v1526_v13 = vmax.f32 %v1524_v19, %v4408_v45 }
 0x56f   :  { %v4513_v11 = vpop.f32.mrf.mxu0  ;;  %v1502_v32 = vmax.f32 %v1500_v39, %v4507_v17  ;;  %v1525_v41 = vmax.f32 %v1523_v20, %v4404_v59 }
 0x570   :  { %v1528_v18 = vmax.f32 %v1526_v13, %v4416_v30 }
 0x571   :  { %v4519_v24 = vpop.f32.mrf.mxu0  ;;  %v1527_v22 = vmax.f32 %v1525_v41, %v4412_v37 }
 0x572   :  { %v1503_v8 = vmax.f32 %v1501_v12, %v4519_v24  ;;  %v1530_v39 = vmax.f32 %v1528_v18, %v4424_v62 }
 0x573   :  { %v1529_v2 = vmax.f32 %v1527_v22, %v4420_v47 }
 0x574   :  { %v1504_v26 = vmax.f32 %v1502_v32, %v1503_v8  ;;  %v1532_v49 = vmax.f32 %v1530_v39, %v4432_v25 }
 0x575   :  { %v1531_v6 = vmax.f32 %v1529_v2, %v4428_v7  ;;  %v5597_v2 = vld [vmem:[#allocation7_spill] sm:$0xff] }
 0x576   :  { %v1505_v46 = vrot.slane %v1504_v26, 4  ;;  %v1534_v8 = vmax.f32 %v1532_v49, %v4448_v9 }
 0x577   :  { %v1533_v20 = vmax.f32 %v1531_v6, %v4440_v40  ;;  %v5598_v6 = vld [vmem:[#allocation9_spill] sm:$0xff] }
 0x578   :  { %v1506_v48 = vmax.f32 %v1504_v26, %v1505_v46  ;;  %v1536_v13 = vmax.f32 %v1534_v8, %v4475_v16  ;;  %v4539_v26 = vpop.f32.mrf.mxu0 }
 0x579   :  { %v1535_v41 = vmax.f32 %v1533_v20, %v4460_v21 }
 0x57a   :  { %v1507_v12 = vrot.slane %v1506_v48, 2  ;;  %v1538_v46 = vmax.f32 %v1536_v13, %v4501_v3  ;;  %v5599_v13 = vld [vmem:[#allocation11_spill] sm:$0xff] }
 0x57b   :  { %v1537_v22 = vmax.f32 %v1535_v41, %v4487_v23  ;;  %v5600_v41 = vld [vmem:[#allocation13_spill] sm:$0xff]  ;;  %v5601_v3 = vld [vmem:[#allocation15_spill] sm:$0xff] }
 0x57c   :  { %v1508_v32 = vmax.f32 %v1506_v48, %v1507_v12  ;;  %v1540_v48 = vmax.f32 %v1538_v46, %v4539_v26 }
 0x57d   :  { %v1539_v39 = vmax.f32 %v1537_v22, %v4513_v11 }
 0x57e   :  { %v1509_v19 = vrot.slane %v1508_v32, 1 }
 0x57f   :  { %v1541_v20 = vmax.f32 %v1539_v39, %v1540_v48 }
 0x580   :  { %v4543_v18 = vmax.f32 %v1508_v32, %v1509_v19 }
 0x581   :  { %v1542_v22 = vrot.slane %v1541_v20, 4 }
 0x582   :  { %v1548_v12 = vsub.f32 %v4338_v52, %v4543_v18  ;;  %v1550_v49 = vsub.f32 %v5597_v2, %v4543_v18  ;;  %v1552_v8 = vsub.f32 %v5598_v6, %v4543_v18  ;;  %v1554_v32 = vsub.f32 %v5599_v13, %v4543_v18 }
 0x583   :  { %v1556_v46 = vsub.f32 %v5600_v41, %v4543_v18  ;;  %v1558_v52 = vsub.f32 %v4358_v63, %v4543_v18  ;;  %v1560_v6 = vsub.f32 %v5601_v3, %v4543_v18  ;;  %v1543_v39 = vmax.f32 %v1541_v20, %v1542_v22 }
 0x584   :  { %v1612_v19 = vmul.f32 1.442695, %v1548_v12  ;;  %v1616_v16 = vmul.f32 1.442695, %v1550_v49  ;;  %v1620_v23 = vmul.f32 1.442695, %v1552_v8  ;;  %v1564_v8 = vsub.f32 %v4370_v27, %v4543_v18 }
 0x585   :  { %v1624_v2 = vmul.f32 1.442695, %v1554_v32  ;;  %v1628_v48 = vmul.f32 1.442695, %v1556_v46  ;;  %v5602_v12 = vld [vmem:[#allocation16_spill] sm:$0xff]  ;;  %v1544_v41 = vrot.slane %v1543_v39, 2  ;;  %v1566_v63 = vsub.f32 %v4374_v43, %v4543_v18 }
 0x586   :  { %3282 = vpow2.f32 %v1612_v19  ;;  %v1562_v49 = vsub.f32 %v5602_v12, %v4543_v18  ;;  %v1632_v13 = vmul.f32 1.442695, %v1558_v52  ;;  %v1636_v19 = vmul.f32 1.442695, %v1560_v6 }
 0x587   :  { %3284 = vpow2.f32 %v1616_v16  ;;  %v1568_v3 = vsub.f32 %v4378_v60, %v4543_v18  ;;  %v1545_v20 = vmax.f32 %v1543_v39, %v1544_v41  ;;  %v1570_v46 = vsub.f32 %v4382_v33, %v4543_v18 }
 0x588   :  { %3286 = vpow2.f32 %v1620_v23  ;;  %v1640_v16 = vmul.f32 1.442695, %v1562_v49  ;;  %v1644_v23 = vmul.f32 1.442695, %v1564_v8  ;;  %v1648_v27 = vmul.f32 1.442695, %v1566_v63 }
 0x589   :  { %3288 = vpow2.f32 %v1624_v2  ;;  %v1572_v43 = vsub.f32 %v4386_v1, %v4543_v18  ;;  %v1574_v52 = vsub.f32 %v4390_v34, %v4543_v18  ;;  %v1652_v60 = vmul.f32 1.442695, %v1568_v3 }
 0x58a   :  { %3290 = vpow2.f32 %v1628_v48  ;;  %v1576_v33 = vsub.f32 %v4394_v38, %v4543_v18  ;;  %v1546_v48 = vrot.slane %v1545_v20, 1  ;;  %v1578_v39 = vsub.f32 %v4398_v31, %v4543_v18 }
 0x58b   :  { %3292 = vpow2.f32 %v1632_v13  ;;  %v1656_v12 = vmul.f32 1.442695, %v1570_v46  ;;  %v1580_v34 = vsub.f32 %v4402_v10, %v4543_v18  ;;  %v1660_v13 = vmul.f32 1.442695, %v1572_v43 }
 0x58c   :  { %3294 = vpow2.f32 %v1636_v19  ;;  %v1582_v8 = vsub.f32 %v4406_v44, %v4543_v18  ;;  %v1664_v19 = vmul.f32 1.442695, %v1574_v52  ;;  %v1584_v31 = vsub.f32 %v4410_v57, %v4543_v18 }
 0x58d   :  { %3296 = vpow2.f32 %v1640_v16  ;;  %v1668_v63 = vmul.f32 1.442695, %v1576_v33  ;;  %v4600_v16 = vmax.f32 %v1545_v20, %v1546_v48  ;;  %v1586_v3 = vsub.f32 %v4414_v54, %v4543_v18  ;;  %v5603_v33 = vld [vmem:[#allocation8_spill] sm:$0xff] }
 0x58e   :  { %3298 = vpow2.f32 %v1644_v23  ;;  %v1672_v10 = vmul.f32 1.442695, %v1578_v39  ;;  %v1588_v46 = vsub.f32 %v4418_v53, %v4543_v18  ;;  %v1590_v57 = vsub.f32 %v4422_v61, %v4543_v18 }
 0x58f   :  { %3300 = vpow2.f32 %v1648_v27  ;;  %v1676_v27 = vmul.f32 1.442695, %v1580_v34  ;;  %v1680_v20 = vmul.f32 1.442695, %v1582_v8  ;;  %v1684_v54 = vmul.f32 1.442695, %v1584_v31 }
 0x590   :  { %3302 = vpow2.f32 %v1652_v60  ;;  %v1549_v60 = vsub.f32 %v4340_v14, %v4600_v16  ;;  %v1551_v48 = vsub.f32 %v5603_v33, %v4600_v16  ;;  %v1592_v61 = vsub.f32 %v4426_v15, %v4543_v18  ;;  %v5604_v14 = vld [vmem:[#allocation10_spill] sm:$0xff]  ;;  %v5605_v15 = vld [vmem:[#allocation12_spill] sm:$0xff] }
 0x591   :  { %3304 = vpow2.f32 %v1656_v12  ;;  %v1692_v12 = vmul.f32 1.442695, %v1588_v46 }
 0x592   :  { %3306 = vpow2.f32 %v1660_v13  ;;  %v1553_v13 = vsub.f32 %v5604_v14, %v4600_v16  ;;  %v1700_v46 = vmul.f32 1.442695, %v1592_v61  ;;  %v1602_v14 = vsub.f32 %v4467_v4, %v4543_v18 }
 0x593   :  { %v4570_v32 = vpop.eup %3282  ;;  %3308 = vpow2.f32 %v1664_v19  ;;  %v1594_v19 = vsub.f32 %v4430_v56, %v4543_v18  ;;  %v1557_v56 = vsub.f32 %v4356_v0, %v4600_v16  ;;  %v1600_v0 = vsub.f32 %v4454_v42, %v4543_v18 }
 0x594   :  { %v4574_v22 = vpop.eup %3284  ;;  %3310 = vpow2.f32 %v1668_v63  ;;  %v1555_v63 = vsub.f32 %v5605_v15, %v4600_v16 }
 0x595   :  { %v1740_v2 = vadd.f32 %v4574_v22, %v4570_v32  ;;  %v4582_v6 = vpop.eup %3286  ;;  %3312 = vpow2.f32 %v1672_v10 }
 0x596   :  { %v4589_v49 = vpop.eup %3288  ;;  %3314 = vpow2.f32 %v1676_v27 }
 0x597   :  { %v1741_v1 = vadd.f32 %v4582_v6, %v1740_v2  ;;  %v4596_v41 = vpop.eup %3290  ;;  %v1688_v2 = vmul.f32 1.442695, %v1586_v3  ;;  %3316 = vpow2.f32 %v1680_v20  ;;  %v1618_v3 = vmul.f32 1.442695, %v1551_v48 }
 0x598   :  { %v4605_v44 = vpop.eup %3292  ;;  %3318 = vpow2.f32 %v1684_v54  ;;  %v1704_v54 = vmul.f32 1.442695, %v1594_v19 }
 0x599   :  { %v1742_v38 = vadd.f32 %v4589_v49, %v1741_v1  ;;  %v4612_v52 = vpop.eup %3294  ;;  %v1696_v1 = vmul.f32 1.442695, %v1590_v57  ;;  %3320 = vpow2.f32 %v1688_v2  ;;  %v1622_v57 = vmul.f32 1.442695, %v1553_v13 }
 0x59a   :  { %v4619_v39 = vpop.eup %3296  ;;  %3322 = vpow2.f32 %v1692_v12  ;;  %v1561_v12 = vsub.f32 %v4364_v36, %v4600_v16  ;;  %v1716_v36 = vmul.f32 1.442695, %v1600_v0 }
 0x59b   :  { %v1743_v23 = vadd.f32 %v4596_v41, %v1742_v38  ;;  %v4626_v8 = vpop.eup %3298  ;;  %v1614_v38 = vmul.f32 1.442695, %v1549_v60  ;;  %3324 = vpow2.f32 %v1696_v1  ;;  %v1630_v1 = vmul.f32 1.442695, %v1557_v56 }
 0x59c   :  { %v4633_v10 = vpop.eup %3300  ;;  %v1638_v56 = vmul.f32 1.442695, %v1561_v12 }
 0x59d   :  { %v1744_v43 = vadd.f32 %v4605_v44, %v1743_v23  ;;  %v1596_v23 = vsub.f32 %v4434_v5, %v4543_v18  ;;  %v4640_v20 = vpop.eup %3302  ;;  %3326 = vpow2.f32 %v1614_v38  ;;  %v5606_v5 = vld [vmem:[#allocation14_spill] sm:$0xff]  ;;  %v5607_v38 = vld [vmem:[#allocation17_spill] sm:$0xff] }
 0x59e   :  { %v1559_v2 = vsub.f32 %v5606_v5, %v4600_v16  ;;  %3328 = vpow2.f32 %v1618_v3  ;;  %v4647_v33 = vpop.eup %3304  ;;  %v5608_v3 = vld [vmem:[#allocation18_spill] sm:$0xff] }
 0x59f   :  { %v1745_v53 = vadd.f32 %v4612_v52, %v1744_v43  ;;  %v1598_v43 = vsub.f32 %v4444_v51, %v4543_v18  ;;  %3330 = vpow2.f32 %v1700_v46  ;;  %v1708_v48 = vmul.f32 1.442695, %v1596_v23  ;;  %v4651_v61 = vpop.eup %3306 }
 0x5a0   :  { %3332 = vpow2.f32 %v1622_v57  ;;  %v1634_v15 = vmul.f32 1.442695, %v1559_v2  ;;  %v1565_v23 = vsub.f32 %v5608_v3, %v4600_v16 }
 0x5a1   :  { %v1746_v34 = vadd.f32 %v4619_v39, %v1745_v53  ;;  %v1626_v53 = vmul.f32 1.442695, %v1555_v63  ;;  %3334 = vpow2.f32 %v1704_v54  ;;  %v1712_v13 = vmul.f32 1.442695, %v1598_v43  ;;  %v5611_v54 = vld [vmem:[#allocation19_spill] sm:$0xff] }
 0x5a2   :  { %v1720_v43 = vmul.f32 1.442695, %v1602_v14  ;;  %v1575_v14 = vsub.f32 %v4392_v35, %v4600_v16  ;;  %v5612_v35 = vld [vmem:[#allocation23_spill] sm:$0xff] }
 0x5a3   :  { %v1747_v31 = vadd.f32 %v4626_v8, %v1746_v34  ;;  %v4656_v34 = vpop.eup %3308  ;;  %3336 = vpow2.f32 %v1626_v53  ;;  %v1577_v53 = vsub.f32 %v4396_v55, %v4600_v16  ;;  %v1571_v55 = vsub.f32 %v4384_v58, %v4600_v16 }
 0x5a4   :  { %v4660_v19 = vpop.eup %3310  ;;  %3338 = vpow2.f32 %v1708_v48 }
 0x5a5   :  { %v1748_v27 = vadd.f32 %v4633_v10, %v1747_v31  ;;  %v1563_v31 = vsub.f32 %v5607_v38, %v4600_v16  ;;  %v4665_v63 = vpop.eup %3312  ;;  %3340 = vpow2.f32 %v1630_v1 }
 0x5a6   :  { %v4669_v46 = vpop.eup %3314  ;;  %3342 = vpow2.f32 %v1712_v13 }
 0x5a7   :  { %v1749_v60 = vadd.f32 %v4640_v20, %v1748_v27  ;;  %5609 = vst [vmem:[#allocation7_spill] sm:$0xff] %v4669_v46  ;;  %v1579_v27 = vsub.f32 %v4400_v50, %v4600_v16  ;;  %v4674_v57 = vpop.eup %3316  ;;  %3344 = vpow2.f32 %v1634_v15  ;;  %v1642_v0 = vmul.f32 1.442695, %v1563_v31 }
 0x5a8   :  { %5610 = vst [vmem:[#allocation9_spill] sm:$0xff] %v4674_v57  ;;  %v4678_v5 = vpop.eup %3318  ;;  %3346 = vpow2.f32 %v1716_v36  ;;  %v1569_v50 = vsub.f32 %v4380_v28, %v4600_v16  ;;  %v1573_v15 = vsub.f32 %v4388_v29, %v4600_v16  ;;  %v1670_v36 = vmul.f32 1.442695, %v1577_v53  ;;  %v5613_v29 = vld [vmem:[#allocation25_spill] sm:$0xff] }
 0x5a9   :  { %v1750_v51 = vadd.f32 %v4647_v33, %v1749_v60  ;;  %v1567_v60 = vsub.f32 %v5611_v54, %v4600_v16  ;;  %v4683_v48 = vpop.eup %3320  ;;  %3348 = vpow2.f32 %v1638_v56  ;;  %v1674_v13 = vmul.f32 1.442695, %v1579_v27 }
 0x5aa   :  { %v4687_v12 = vpop.eup %3322  ;;  %3350 = vpow2.f32 %v1720_v43  ;;  %v1666_v56 = vmul.f32 1.442695, %v1575_v14  ;;  %v1608_v14 = vsub.f32 %v4507_v17, %v4543_v18 }
 0x5ab   :  { %v1751_v42 = vadd.f32 %v4651_v61, %v1750_v51  ;;  %v1646_v51 = vmul.f32 1.442695, %v1565_v23  ;;  %v1650_v38 = vmul.f32 1.442695, %v1567_v60  ;;  %3352 = vpow2.f32 %v1642_v0 }
 0x5ac   :  { %v1604_v23 = vsub.f32 %v5612_v35, %v4543_v18  ;;  %v1606_v60 = vsub.f32 %v5613_v29, %v4543_v18 }
 0x5ad   :  { %v1752_v4 = vadd.f32 %v4656_v34, %v1751_v42  ;;  %v4692_v42 = vpop.eup %3324  ;;  %3354 = vpow2.f32 %v1646_v51 }
 0x5ae   :  { %v4696_v31 = vpop.eup %3326  ;;  %3356 = vpow2.f32 %v1674_v13 }
 0x5af   :  { %v1753_v2 = vadd.f32 %v4660_v19, %v1752_v4  ;;  %v4701_v3 = vpop.eup %3328  ;;  %v1654_v4 = vmul.f32 1.442695, %v1569_v50  ;;  %3358 = vpow2.f32 %v1650_v38  ;;  %v1662_v50 = vmul.f32 1.442695, %v1573_v15 }
 0x5b0   :  { %v4705_v27 = vpop.eup %3330  ;;  %v1777_v43 = vadd.f32 %v4701_v3, %v4696_v31  ;;  %3360 = vpow2.f32 %v1670_v36  ;;  %v1610_v15 = vsub.f32 %v4519_v24, %v4543_v18  ;;  %v1581_v24 = vsub.f32 %v4404_v59, %v4600_v16 }
 0x5b1   :  { %v1754_v1 = vadd.f32 %v4665_v63, %v1753_v2  ;;  %v4710_v54 = vpop.eup %3332  ;;  %v1658_v2 = vmul.f32 1.442695, %v1571_v55  ;;  %3362 = vpow2.f32 %v1654_v4  ;;  %v1585_v59 = vsub.f32 %v4412_v37, %v4600_v16 }
 0x5b2   :  { %v4714_v53 = vpop.eup %3334  ;;  %v1778_v51 = vadd.f32 %v4710_v54, %v1777_v43  ;;  %3364 = vpow2.f32 %v1666_v56  ;;  %v1732_v43 = vmul.f32 1.442695, %v1608_v14 }
 0x5b3   :  { %v1755_v28 = vadd.f32 %v4669_v46, %v1754_v1  ;;  %v4718_v1 = vpop.eup %3336  ;;  %3366 = vpow2.f32 %v1658_v2 }
 0x5b4   :  { %v4722_v13 = vpop.eup %3338  ;;  %v1779_v55 = vadd.f32 %v4718_v1, %v1778_v51  ;;  %3368 = vpow2.f32 %v1662_v50  ;;  %v1583_v51 = vsub.f32 %v4408_v45, %v4600_v16  ;;  %v1587_v45 = vsub.f32 %v4416_v30, %v4600_v16 }
 0x5b5   :  { %v1756_v58 = vadd.f32 %v4674_v57, %v1755_v28  ;;  %v1724_v28 = vmul.f32 1.442695, %v1604_v23  ;;  %v4726_v35 = vpop.eup %3340  ;;  %v1686_v30 = vmul.f32 1.442695, %v1585_v59 }
 0x5b6   :  { %v4730_v36 = vpop.eup %3342  ;;  %v1780_v4 = vadd.f32 %v4726_v35, %v1779_v55 }
 0x5b7   :  { %v1757_v0 = vadd.f32 %v4678_v5, %v1756_v58  ;;  %v1728_v58 = vmul.f32 1.442695, %v1606_v60  ;;  %v4734_v23 = vpop.eup %3344  ;;  %3370 = vpow2.f32 %v1724_v28  ;;  %v1736_v60 = vmul.f32 1.442695, %v1610_v15 }
 0x5b8   :  { %v4736_v56 = vpop.eup %3346  ;;  %v1781_v18 = vadd.f32 %v4734_v23, %v1780_v4  ;;  %v1678_v15 = vmul.f32 1.442695, %v1581_v24  ;;  %v1589_v24 = vsub.f32 %v4420_v47, %v4600_v16  ;;  %v1690_v47 = vmul.f32 1.442695, %v1587_v45 }
 0x5b9   :  { %v1758_v38 = vadd.f32 %v4683_v48, %v1757_v0  ;;  %v4742_v2 = vpop.eup %3348  ;;  %3372 = vpow2.f32 %v1728_v58 }
 0x5ba   :  { %v4744_v0 = vpop.eup %3350  ;;  %v1782_v14 = vadd.f32 %v4742_v2, %v1781_v18  ;;  %3374 = vpow2.f32 %v1732_v43  ;;  %v1682_v18 = vmul.f32 1.442695, %v1583_v51  ;;  %v1591_v51 = vsub.f32 %v4424_v62, %v4600_v16 }
 0x5bb   :  { %v1759_v17 = vadd.f32 %v4687_v12, %v1758_v38  ;;  %v4750_v28 = vpop.eup %3352  ;;  %3376 = vpow2.f32 %v1736_v60 }
 0x5bc   :  { %v4754_v38 = vpop.eup %3354  ;;  %v1783_v58 = vadd.f32 %v4750_v28, %v1782_v14  ;;  %3378 = vpow2.f32 %v1678_v15  ;;  %v1593_v15 = vsub.f32 %v4428_v7, %v4600_v16  ;;  %v1698_v45 = vmul.f32 1.442695, %v1591_v51 }
 0x5bd   :  { %v1760_v29 = vadd.f32 %v4692_v42, %v1759_v17  ;;  %v4758_v17 = vpop.eup %3356  ;;  %3380 = vpow2.f32 %v1682_v18  ;;  %v1595_v18 = vsub.f32 %v4432_v25, %v4600_v16  ;;  %v1609_v51 = vsub.f32 %v4513_v11, %v4600_v16 }
 0x5be   :  { %v3359_v4 = vpop.eup %3358  ;;  %v1784_v37 = vadd.f32 %v4754_v38, %v1783_v58  ;;  %1814 = vmatprep.subr.mxu1 %v4758_v17  ;;  %3382 = vpow2.f32 %v1686_v30  ;;  %v1599_v30 = vsub.f32 %v4448_v9, %v4600_v16 }
 0x5bf   :  { %v1761_v50 = vadd.f32 %v4705_v27, %v1760_v29  ;;  %v3361_v43 = vpop.eup %3360  ;;  %1815 = vmatpush1.msra.mxu1 %v4665_v63  ;;  %3384 = vpow2.f32 %v1690_v47 }
 0x5c0   :  { %v1785_v46 = vadd.f32 %v3359_v4, %v1784_v37  ;;  %1816 = vmatprep.subr.mxu1 %v3361_v43  ;;  %v1597_v37 = vsub.f32 %v4440_v40, %v4600_v16 }
 0x5c1   :  { %v1762_v55 = vadd.f32 %v4714_v53, %v1761_v50  ;;  %v3363_v50 = vpop.eup %3362  ;;  %1817 = vmatpush1.msra.mxu1 %v4660_v19 }
 0x5c2   :  { %v3365_v60 = vpop.eup %3364  ;;  %v1786_v57 = vadd.f32 %v3363_v50, %v1785_v46  ;;  %v1710_v9 = vmul.f32 1.442695, %v1597_v37 }
 0x5c3   :  { %v1763_v29 = vadd.f32 %v4722_v13, %v1762_v55  ;;  %v3367_v55 = vpop.eup %3366  ;;  %1818 = vmatprep.subr.mxu1 %v3365_v60 }
 0x5c4   :  { %v3369_v63 = vpop.eup %3368  ;;  %1819 = vmatpush1.msra.mxu1 %v4656_v34  ;;  %v1787_v62 = vadd.f32 %v3367_v55, %v1786_v57  ;;  %v1611_v57 = vsub.f32 %v4539_v26, %v4600_v16  ;;  %v1706_v26 = vmul.f32 1.442695, %v1595_v18 }
 0x5c5   :  { %v1764_v14 = vadd.f32 %v4730_v36, %v1763_v29  ;;  %v1694_v29 = vmul.f32 1.442695, %v1589_v24  ;;  %1820 = vmatprep.subr.mxu1 %v3369_v63  ;;  %v4777_v19 = vpop.eup %3370 }
 0x5c6   :  { %1821 = vmatpush1.msra.mxu1 %v4651_v61  ;;  %v1788_v7 = vadd.f32 %v3369_v63, %v1787_v62  ;;  %v4783_v34 = vpop.eup %3372  ;;  %v1702_v61 = vmul.f32 1.442695, %v1593_v15  ;;  %v1714_v63 = vmul.f32 1.442695, %v1599_v30  ;;  %v5616_v15 = vld [vmem:[#allocation24_spill] sm:$0xff] }
 0x5c7   :  { %v1765_v58 = vadd.f32 %v4736_v56, %v1764_v14  ;;  %1822 = vmatprep.subr.mxu1 %v3367_v55  ;;  %3386 = vpow2.f32 %v1694_v29  ;;  %v4791_v14 = vpop.eup %3374 }
 0x5c8   :  { %1823 = vmatpush1.msra.mxu1 %v4647_v33  ;;  %v1789_v24 = vadd.f32 %v3365_v60, %v1788_v7  ;;  %3388 = vpow2.f32 %v1698_v45  ;;  %v4799_v55 = vpop.eup %3376  ;;  %v5614_v60 = vld [vmem:[#allocation26_spill] sm:$0xff] }
 0x5c9   :  { %v1766_v59 = vadd.f32 %v4744_v0, %v1765_v58  ;;  %1824 = vmatprep.subr.mxu1 %v3363_v50  ;;  %v1601_v50 = vsub.f32 %v4460_v21, %v4600_v16  ;;  %v1607_v58 = vsub.f32 %v5614_v60, %v4600_v16  ;;  %3390 = vpow2.f32 %v1702_v61 }
 0x5ca   :  { %1825 = vmatpush1.msra.mxu1 %v4640_v20  ;;  %v1790_v33 = vadd.f32 %v3361_v43, %v1789_v24  ;;  %v1738_v20 = vmul.f32 1.442695, %v1611_v57  ;;  %v5615_v43 = vld [vmem:[#allocation22_spill] sm:$0xff]  ;;  %3392 = vpow2.f32 %v1706_v26 }
 0x5cb   :  { %v1767_v46 = vadd.f32 %v4777_v19, %v1766_v59  ;;  %1826 = vmatprep.subr.mxu1 %v3359_v4  ;;  %v4811_v4 = vpop.eup %3378  ;;  %v1603_v21 = vsub.f32 %v5615_v43, %v4600_v16  ;;  %v1734_v59 = vmul.f32 1.442695, %v1609_v51  ;;  %3394 = vpow2.f32 %v1710_v9 }
 0x5cc   :  { %1827 = vmatpush1.msra.mxu1 %v4633_v10  ;;  %v1791_v47 = vadd.f32 %v4758_v17, %v1790_v33  ;;  %v1605_v10 = vsub.f32 %v5616_v15, %v4600_v16  ;;  %v4820_v17 = vpop.eup %3380  ;;  %v1730_v62 = vmul.f32 1.442695, %v1607_v58  ;;  %3396 = vpow2.f32 %v1738_v20 }
 0x5cd   :  { %v1768_v25 = vadd.f32 %v4783_v34, %v1767_v46  ;;  %1828 = vmatprep.subr.mxu1 %v4754_v38  ;;  %v1718_v38 = vmul.f32 1.442695, %v1601_v50  ;;  %3398 = vpow2.f32 %v1714_v63  ;;  %v1722_v16 = vmul.f32 1.442695, %v1603_v21 }
 0x5ce   :  { %1829 = vmatpush1.msra.mxu1 %v4626_v8  ;;  %v1792_v29 = vadd.f32 %v4811_v4, %v1791_v47  ;;  %v4825_v8 = vpop.eup %3382  ;;  %v1726_v46 = vmul.f32 1.442695, %v1605_v10  ;;  %3400 = vpow2.f32 %v1734_v59 }
 0x5cf   :  { %v1769_v40 = vadd.f32 %v4791_v14, %v1768_v25  ;;  %1830 = vmatprep.subr.mxu1 %v4750_v28  ;;  %v4830_v45 = vpop.eup %3384  ;;  %3402 = vpow2.f32 %v1718_v38  ;;  %v1889_v38 = vld [vmem:[%s5523_s9] sm:$0xff] }
 0x5d0   :  { %1831 = vmatpush1.msra.mxu1 %v4619_v39  ;;  %v1793_v18 = vadd.f32 %v4820_v17, %v1792_v29  ;;  %3404 = vpow2.f32 %v1730_v62  ;;  %v5622_v62 = vld [vmem:[#allocation20_spill] sm:$0xff] }
 0x5d1   :  { %v4807_v11 = vadd.f32 %v4799_v55, %v1769_v40  ;;  %1832 = vmatprep.subr.mxu1 %v4742_v2  ;;  %3406 = vpow2.f32 %v1722_v16 }
 0x5d2   :  { %1833 = vmatpush1.msra.mxu1 %v4612_v52  ;;  %v1794_v28 = vadd.f32 %v4825_v8, %v1793_v18  ;;  %3408 = vpow2.f32 %v1726_v46  ;;  %v5623_v18 = vld [vmem:[#allocation21_spill] sm:$0xff] }
 0x5d3   :  { %1834 = vmatprep.subr.mxu1 %v4734_v23 }
 0x5d4   :  { %1835 = vmatpush1.msra.mxu1 %v4605_v44  ;;  %v1795_v39 = vadd.f32 %v4830_v45, %v1794_v28  ;;  %v3387_v2 = vpop.eup %3386 }
 0x5d5   :  { %1836 = vmatprep.subr.mxu1 %v4726_v35  ;;  %v3389_v7 = vpop.eup %3388 }
 0x5d6   :  { %1837 = vmatpush1.msra.mxu1 %v4596_v41  ;;  %v1796_v52 = vadd.f32 %v3387_v2, %v1795_v39  ;;  %v3391_v44 = vpop.eup %3390 }
 0x5d7   :  { %1838 = vmatprep.subr.mxu1 %v4718_v1  ;;  %v3393_v35 = vpop.eup %3392 }
 0x5d8   :  { %1839 = vmatpush1.msra.mxu1 %v4589_v49  ;;  %v1797_v23 = vadd.f32 %v3389_v7, %v1796_v52  ;;  %v3395_v41 = vpop.eup %3394 }
 0x5d9   :  { %1840 = vmatprep.subr.mxu1 %v4710_v54  ;;  %v3397_v1 = vpop.eup %3396 }
 0x5da   :  { %1841 = vmatpush1.msra.mxu1 %v4582_v6  ;;  %v1798_v37 = vadd.f32 %v3391_v44, %v1797_v23  ;;  %v3399_v49 = vpop.eup %3398 }
 0x5db   :  { %1842 = vmatprep.subr.mxu1 %v4701_v3  ;;  %v3401_v54 = vpop.eup %3400 }
 0x5dc   :  { %1843 = vmatpush1.msra.mxu1 %v4574_v22  ;;  %v1799_v57 = vadd.f32 %v3393_v35, %v1798_v37  ;;  %v3403_v6 = vpop.eup %3402 }
 0x5dd   :  { %1844 = vmatprep.subr.mxu1 %v4696_v31  ;;  %v3405_v3 = vpop.eup %3404 }
 0x5de   :  { %1845 = vmatpush1.msra.mxu1 %v4570_v32  ;;  %v1800_v25 = vadd.f32 %v3395_v41, %v1799_v57  ;;  %v3407_v22 = vpop.eup %3406 }
 0x5df   :  { %1846 = vmatprep.subr.mxu1 %v3397_v1  ;;  %v3409_v30 = vpop.eup %3408 }
 0x5e0   :  { %1847 = vmatpush2.msra.mxu1 %v4799_v55  ;;  %v1801_v61 = vadd.f32 %v3399_v49, %v1800_v25 }
 0x5e1   :  { %1848 = vmatprep.subr.mxu1 %v3401_v54 }
 0x5e2   :  { %1849 = vmatpush2.msra.mxu1 %v4791_v14  ;;  %v1802_v24 = vadd.f32 %v3403_v6, %v1801_v61 }
 0x5e3   :  { %1850 = vmatprep.subr.mxu1 %v3405_v3 }
 0x5e4   :  { %1851 = vmatpush2.msra.mxu1 %v4783_v34  ;;  %v1803_v31 = vadd.f32 %v3407_v22, %v1802_v24 }
 0x5e5   :  { %1852 = vmatprep.subr.mxu1 %v3409_v30 }
 0x5e6   :  { %1853 = vmatpush2.msra.mxu1 %v4777_v19  ;;  %v1804_v32 = vadd.f32 %v3409_v30, %v1803_v31 }
 0x5e7   :  { %1854 = vmatprep.subr.mxu1 %v3407_v22 }
 0x5e8   :  { %1855 = vmatpush2.msra.mxu1 %v4744_v0  ;;  %v1805_v51 = vadd.f32 %v3405_v3, %v1804_v32  ;;  %v1771_v0 = vrot.slane %v4807_v11, 4 }
 0x5e9   :  { %1856 = vmatprep.subr.mxu1 %v3403_v6 }
 0x5ea   :  { %1857 = vmatpush2.msra.mxu1 %v4736_v56  ;;  %v1806_v40 = vadd.f32 %v3401_v54, %v1805_v51  ;;  %v1772_v34 = vadd.f32 %v1771_v0, %v4807_v11 }
 0x5eb   :  { %1858 = vmatprep.subr.mxu1 %v3399_v49 }
 0x5ec   :  { %1859 = vmatpush2.msra.mxu1 %v4730_v36  ;;  %v1807_v14 = vadd.f32 %v3397_v1, %v1806_v40  ;;  %v1773_v33 = vrot.slane %v1772_v34, 2 }
 0x5ed   :  { %1860 = vmatprep.subr.mxu1 %v3395_v41 }
 0x5ee   :  { %1861 = vmatpush2.msra.mxu1 %v4722_v13  ;;  %v5620_v13 = vmov 0.0   ;;  %v1774_v50 = vadd.f32 %v1773_v33, %v1772_v34 }
 0x5ef   :  { %1862 = vmatprep.subr.mxu1 %v3393_v35 }
 0x5f0   :  { %1863 = vmatpush2.msra.mxu1 %v4714_v53  ;;  %v5617_v53 = vld [vmem:[#allocation9_spill] sm:$0xff]  ;;  %v1775_v9 = vrot.slane %v1774_v50, 1 }
 0x5f1   :  { %1864 = vmatprep.subr.mxu1 %v3391_v44 }
 0x5f2   :  { %1865 = vmatpush2.msra.mxu1 %v4705_v27  ;;  %v5618_v27 = vld [vmem:[#allocation7_spill] sm:$0xff] }
 0x5f3   :  { %1866 = vmatprep.subr.mxu1 %v3389_v7 }
 0x5f4   :  { %1867 = vmatpush2.msra.mxu1 %v4692_v42  ;;  %v5619_v42 = vld [vmem:[#allocation6_spill] sm:$0xff] }
 0x5f5   :  { %1868 = vmatprep.subr.mxu1 %v3387_v2 }
 0x5f6   :  { %1869 = vmatpush2.msra.mxu1 %v4687_v12 }
 0x5f7   :  { %1870 = vmatprep.subr.mxu1 %v4830_v45 }
 0x5f8   :  { %1871 = vmatpush2.msra.mxu1 %v4683_v48 }
 0x5f9   :  { %1872 = vmatprep.subr.mxu1 %v4825_v8 }
 0x5fa   :  { %1873 = vmatpush2.msra.mxu1 %v4678_v5  ;;  %v1808_v5 = vrot.slane %v1807_v14, 4 }
 0x5fb   :  { %1874 = vmatprep.subr.mxu1 %v4820_v17 }
 0x5fc   :  { %1875 = vmatpush2.msra.mxu1 %v5617_v53  ;;  %v1809_v19 = vadd.f32 %v1808_v5, %v1807_v14 }
 0x5fd   :  { %1876 = vmatprep.subr.mxu1 %v4811_v4  ;;  %v1776_v4 = vadd.f32 %v1775_v9, %v1774_v50 }
 0x5fe   :  { %1877 = vmatpush2.msra.mxu1 %v5618_v27  ;;  %v1810_v26 = vrot.slane %v1809_v19, 2 }
 0x5ff   :  { %1879 = vmatmul.mubr.f32.vlgmr.msra.gmra.mxu1 %v5619_v42 }
 0x600   :  { %1957 = vmatprep.mubr.f32.mxu1 %v5620_v13  ;;  %v1811_v55 = vadd.f32 %v1810_v26, %v1809_v19 }
 0x602   :  { %v1812_v58 = vrot.slane %v1811_v55, 1 }
 0x604   :  { %v1813_v47 = vadd.f32 %v1812_v58, %v1811_v55 }
 0x606   :  { %3410 = vrcp.f32 %v1813_v47 }
 0x607   :  { %3412 = vrcp.f32 %v1776_v4 }
 0x613   :  { %v3411_v15 = vpop.eup %3410 }
 0x614   :  { %v3413_v29 = vpop.eup %3412 }
 0x623   :  { %v906_v12 = vpop.f32.mrf.mxu1 }
 0x624   :  { %1964 = vxpose.xlu1.b32.start.end [1/1] (short) %v906_v12, 128 }
 0x625   :  { %v908_v36 = vpop.f32.mrf.mxu1 }
 0x626   :  { %1996 = vxpose.xlu0.b32.start.end [1/1] (short) %v908_v36, 128 }
 0x627   :  { %v4866_v48 = vpop.f32.mrf.mxu1 }
 0x628   :  { %5621 = vst [vmem:[#allocation11_spill] sm:$0xff] %v4866_v48 }
 0x629   :  { %v1054_v56 = vpop.f32.mrf.mxu1 }
 0x62a   :  { %2785 = vmatprep.mubr.f32.mxu0 %v1054_v56 }
 0x6a0   :  { %v1980_v60 = vpop.trf.xlu1 }
 0x6a2   :  { %v2012_v2 = vpop.trf.xlu0 }
 0x6a4   :  { %v1981_v20 = vpop.trf.xlu1 }
 0x6a6   :  { %v2013_v7 = vpop.trf.xlu0 }
 0x6a8   :  { %v1982_v43 = vpop.trf.xlu1 }
 0x6aa   :  { %v2014_v44 = vpop.trf.xlu0 }
 0x6ac   :  { %v1983_v21 = vpop.trf.xlu1 }
 0x6ae   :  { %v2015_v35 = vpop.trf.xlu0 }
 0x6b0   :  { %v1984_v59 = vpop.trf.xlu1 }
 0x6b2   :  { %v2016_v57 = vpop.trf.xlu0 }
 0x6b4   :  { %v1985_v8 = vpop.trf.xlu1 }
 0x6b6   :  { %v2017_v49 = vpop.trf.xlu0 }
 0x6b8   :  { %v1986_v16 = vpop.trf.xlu1 }
 0x6ba   :  { %v2018_v25 = vpop.trf.xlu0 }
 0x6bc   :  { %v1987_v46 = vpop.trf.xlu1 }
 0x6be   :  { %v2019_v54 = vpop.trf.xlu0 }
 0x6bf   :  { %v1880_v63 = vpop.f32.mrf.mxu1 }
 0x6c0   :  { %v1886_v17 = vmul.f32 %v3413_v29, %v1880_v63  ;;  %v1988_v28 = vpop.trf.xlu1 }
 0x6c1   :  { %v1882_v10 = vpop.f32.mrf.mxu1 }
 0x6c2   :  { %v1888_v11 = vmul.f32 %v3411_v15, %v1882_v10  ;;  %v2020_v6 = vpop.trf.xlu0 }
 0x6c4   :  { %1923 = vmatprep.subr.mxu1 %v1888_v11  ;;  %v1989_v45 = vpop.trf.xlu1 }
 0x6c5   :  { %1924 = vmatpush1.msra.mxu1 %v1886_v17 }
 0x6c6   :  { %3149 = vmatmul.mubr.msk.f32.vlgmr.msra.gmra.mxu1 %vm765_vm9, %v1889_v38  ;;  %2154 = vmatprep.subr.mxu1 %v5622_v62  ;;  %v2021_v61 = vpop.trf.xlu0 }
 0x6c7   :  { %2155 = vmatpush1.msra.mxu1 %v5623_v18  ;;  %2188 = vmatprep.mubr.f32.mxu1 %v5620_v13 }
 0x6c8   :  { %v1990_v39 = vpop.trf.xlu1 }
 0x6ca   :  { %3150 = vmatmul.mubr.msk.f32.vlgmr.msra.gmra.mxu1 %vm765_vm9, %v1980_v60  ;;  %v2022_v3 = vpop.trf.xlu0 }
 0x6cb   :  { %2194 = vmatprep.mubr.f32.mxu1 %v5620_v13 }
 0x6cc   :  { %v1991_v52 = vpop.trf.xlu1 }
 0x6ce   :  { %3151 = vmatmul.mubr.msk.f32.gmra.mxu1 %vm765_vm9, %v1981_v20  ;;  %v2023_v22 = vpop.trf.xlu0 }
 0x6cf   :  { %2200 = vmatprep.mubr.f32.mxu1 %v5620_v13 }
 0x6d0   :  { %v1992_v23 = vpop.trf.xlu1 }
 0x6d2   :  { %3152 = vmatmul.mubr.msk.f32.gmra.mxu1 %vm765_vm9, %v1982_v43  ;;  %v2024_v24 = vpop.trf.xlu0 }
 0x6d3   :  { %2206 = vmatprep.mubr.f32.mxu1 %v5620_v13 }
 0x6d4   :  { %v1993_v37 = vpop.trf.xlu1 }
 0x6d6   :  { %3153 = vmatmul.mubr.msk.f32.gmra.mxu1 %vm765_vm9, %v1983_v21  ;;  %v2025_v30 = vpop.trf.xlu0 }
 0x6d7   :  { %2212 = vmatprep.mubr.f32.mxu1 %v5620_v13 }
 0x6d8   :  { %v1994_v41 = vpop.trf.xlu1 }
 0x6da   :  { %3154 = vmatmul.mubr.msk.f32.gmra.mxu1 %vm765_vm9, %v1984_v59  ;;  %v2026_v31 = vpop.trf.xlu0 }
 0x6db   :  { %2218 = vmatprep.mubr.f32.mxu1 %v5620_v13 }
 0x6dc   :  { %v1995_v1 = vpop.trf.xlu1 }
 0x6de   :  { %3155 = vmatmul.mubr.msk.f32.gmra.mxu1 %vm765_vm9, %v1985_v8  ;;  %v2027_v32 = vpop.trf.xlu0 }
 0x6df   :  { %2224 = vmatprep.mubr.f32.mxu1 %v5620_v13 }
 0x6e2   :  { %3156 = vmatmul.mubr.msk.f32.gmra.mxu1 %vm765_vm9, %v1986_v16 }
 0x6e3   :  { %2230 = vmatprep.mubr.f32.mxu1 %v5620_v13 }
 0x6e6   :  { %3157 = vmatmul.mubr.msk.f32.gmra.mxu1 %vm765_vm9, %v1987_v46 }
 0x6e7   :  { %2236 = vmatprep.mubr.f32.mxu1 %v5620_v13 }
 0x6ea   :  { %3158 = vmatmul.mubr.msk.f32.gmra.mxu1 %vm765_vm9, %v1988_v28 }
 0x6eb   :  { %2242 = vmatprep.mubr.f32.mxu1 %v5620_v13 }
 0x6ee   :  { %3159 = vmatmul.mubr.msk.f32.gmra.mxu1 %vm765_vm9, %v1989_v45 }
 0x6ef   :  { %2248 = vmatprep.mubr.f32.mxu1 %v5620_v13 }
 0x6f2   :  { %3160 = vmatmul.mubr.msk.f32.gmra.mxu1 %vm765_vm9, %v1990_v39 }
 0x6f3   :  { %2254 = vmatprep.mubr.f32.mxu1 %v5620_v13 }
 0x6f6   :  { %3161 = vmatmul.mubr.msk.f32.gmra.mxu1 %vm765_vm9, %v1991_v52 }
 0x6f7   :  { %2260 = vmatprep.mubr.f32.mxu1 %v5620_v13 }
 0x6fa   :  { %3162 = vmatmul.mubr.msk.f32.gmra.mxu1 %vm765_vm9, %v1992_v23 }
 0x6fb   :  { %2266 = vmatprep.mubr.f32.mxu1 %v5620_v13 }
 0x6fe   :  { %3163 = vmatmul.mubr.msk.f32.gmra.mxu1 %vm765_vm9, %v1993_v37 }
 0x6ff   :  { %2272 = vmatprep.mubr.f32.mxu1 %v5620_v13 }
 0x702   :  { %3164 = vmatmul.mubr.msk.f32.gmra.mxu1 %vm765_vm9, %v1994_v41 }
 0x703   :  { %2278 = vmatprep.mubr.f32.mxu1 %v5620_v13 }
 0x706   :  { %3165 = vmatmul.mubr.msk.f32.gmra.mxu1 %vm765_vm9, %v1995_v1 }
 0x707   :  { %2284 = vmatprep.mubr.f32.mxu1 %v5620_v13 }
 0x70a   :  { %3166 = vmatmul.mubr.msk.f32.gmra.mxu1 %vm765_vm9, %v2012_v2 }
 0x70b   :  { %2290 = vmatprep.mubr.f32.mxu1 %v5620_v13 }
 0x70e   :  { %3167 = vmatmul.mubr.msk.f32.gmra.mxu1 %vm765_vm9, %v2013_v7 }
 0x70f   :  { %2296 = vmatprep.mubr.f32.mxu1 %v5620_v13 }
 0x712   :  { %3168 = vmatmul.mubr.msk.f32.gmra.mxu1 %vm765_vm9, %v2014_v44 }
 0x713   :  { %2302 = vmatprep.mubr.f32.mxu1 %v5620_v13 }
 0x716   :  { %3169 = vmatmul.mubr.msk.f32.gmra.mxu1 %vm765_vm9, %v2015_v35 }
 0x717   :  { %2308 = vmatprep.mubr.f32.mxu1 %v5620_v13 }
 0x71a   :  { %3170 = vmatmul.mubr.msk.f32.gmra.mxu1 %vm765_vm9, %v2016_v57 }
 0x71b   :  { %2314 = vmatprep.mubr.f32.mxu1 %v5620_v13 }
 0x71e   :  { %3171 = vmatmul.mubr.msk.f32.gmra.mxu1 %vm765_vm9, %v2017_v49 }
 0x71f   :  { %2320 = vmatprep.mubr.f32.mxu1 %v5620_v13 }
 0x722   :  { %3172 = vmatmul.mubr.msk.f32.gmra.mxu1 %vm765_vm9, %v2018_v25 }
 0x723   :  { %2326 = vmatprep.mubr.f32.mxu1 %v5620_v13 }
 0x726   :  { %3173 = vmatmul.mubr.msk.f32.gmra.mxu1 %vm765_vm9, %v2019_v54 }
 0x727   :  { %2332 = vmatprep.mubr.f32.mxu1 %v5620_v13 }
 0x72a   :  { %3174 = vmatmul.mubr.msk.f32.gmra.mxu1 %vm765_vm9, %v2020_v6 }
 0x72b   :  { %2338 = vmatprep.mubr.f32.mxu1 %v5620_v13 }
 0x72e   :  { %3175 = vmatmul.mubr.msk.f32.gmra.mxu1 %vm765_vm9, %v2021_v61 }
 0x72f   :  { %2344 = vmatprep.mubr.f32.mxu1 %v5620_v13 }
 0x732   :  { %3176 = vmatmul.mubr.msk.f32.gmra.mxu1 %vm765_vm9, %v2022_v3 }
 0x733   :  { %2350 = vmatprep.mubr.f32.mxu1 %v5620_v13 }
 0x736   :  { %3177 = vmatmul.mubr.msk.f32.gmra.mxu1 %vm765_vm9, %v2023_v22 }
 0x737   :  { %2356 = vmatprep.mubr.f32.mxu1 %v5620_v13 }
 0x73a   :  { %3178 = vmatmul.mubr.msk.f32.gmra.mxu1 %vm765_vm9, %v2024_v24 }
 0x73b   :  { %2362 = vmatprep.mubr.f32.mxu1 %v5620_v13 }
 0x73e   :  { %3179 = vmatmul.mubr.msk.f32.gmra.mxu1 %vm765_vm9, %v2025_v30 }
 0x73f   :  { %2368 = vmatprep.mubr.f32.mxu1 %v5620_v13 }
 0x742   :  { %3180 = vmatmul.mubr.msk.f32.gmra.mxu1 %vm765_vm9, %v2026_v31 }
 0x743   :  { %2374 = vmatprep.mubr.f32.mxu1 %v5620_v13 }
 0x746   :  { %3181 = vmatmul.mubr.msk.f32.gmra.mxu1 %vm765_vm9, %v2027_v32 }
 0x786   :  { %v4940_v51 = vpop.f32.mrf.mxu1 }
 0x787   :  { %5624 = vst [vmem:[#allocation13_spill] sm:$0xff] %v4940_v51 }
 0x788   :  { %v4942_v40 = vpop.f32.mrf.mxu1 }
 0x789   :  { %5625 = vst [vmem:[#allocation15_spill] sm:$0xff] %v4942_v40 }
 0x78a   :  { %v4944_v14 = vpop.f32.mrf.mxu1 }
 0x78c   :  { %v4946_v53 = vpop.f32.mrf.mxu1 }
 0x78e   :  { %v4948_v27 = vpop.f32.mrf.mxu1 }
 0x790   :  { %v4950_v42 = vpop.f32.mrf.mxu1 }
 0x791   :  { %5626 = vst [vmem:[#allocation16_spill] sm:$0xff] %v4950_v42 }
 0x792   :  { %v4952_v12 = vpop.f32.mrf.mxu1 }
 0x793   :  { %v2381_v49 = vmax.f32 %v4944_v14, %v4952_v12 }
 0x794   :  { %v4954_v36 = vpop.f32.mrf.mxu1 }
 0x795   :  { %5627 = vst [vmem:[#allocation8_spill] sm:$0xff] %v4954_v36 }
 0x796   :  { %v4956_v56 = vpop.f32.mrf.mxu1 }
 0x797   :  { %v2382_v25 = vmax.f32 %v4948_v27, %v4956_v56 }
 0x798   :  { %v4958_v5 = vpop.f32.mrf.mxu1 }
 0x799   :  { %5628 = vst [vmem:[#allocation10_spill] sm:$0xff] %v4958_v5 }
 0x79a   :  { %v4960_v0 = vpop.f32.mrf.mxu1 }
 0x79b   :  { %v2383_v6 = vmax.f32 %v2381_v49, %v4960_v0 }
 0x79c   :  { %v4962_v19 = vpop.f32.mrf.mxu1 }
 0x79e   :  { %v4964_v34 = vpop.f32.mrf.mxu1 }
 0x79f   :  { %v2384_v61 = vmax.f32 %v2382_v25, %v4964_v34 }
 0x7a0   :  { %v4966_v26 = vpop.f32.mrf.mxu1 }
 0x7a1   :  { %5629 = vst [vmem:[#allocation12_spill] sm:$0xff] %v4966_v26 }
 0x7a2   :  { %v4968_v33 = vpop.f32.mrf.mxu1 }
 0x7a3   :  { %v2385_v22 = vmax.f32 %v2383_v6, %v4968_v33 }
 0x7a4   :  { %v4970_v55 = vpop.f32.mrf.mxu1 }
 0x7a6   :  { %v4972_v50 = vpop.f32.mrf.mxu1 }
 0x7a7   :  { %v2386_v24 = vmax.f32 %v2384_v61, %v4972_v50 }
 0x7a8   :  { %v4974_v60 = vpop.f32.mrf.mxu1 }
 0x7a9   :  { %5630 = vst [vmem:[#allocation14_spill] sm:$0xff] %v4974_v60 }
 0x7aa   :  { %v4976_v58 = vpop.f32.mrf.mxu1 }
 0x7ab   :  { %5631 = vst [vmem:[#allocation17_spill] sm:$0xff] %v4976_v58  ;;  %v2387_v31 = vmax.f32 %v2385_v22, %v4976_v58 }
 0x7ac   :  { %v4978_v9 = vpop.f32.mrf.mxu1 }
 0x7ad   :  { %5632 = vst [vmem:[#allocation18_spill] sm:$0xff] %v4978_v9 }
 0x7ae   :  { %v4980_v20 = vpop.f32.mrf.mxu1 }
 0x7af   :  { %v2388_v32 = vmax.f32 %v2386_v24, %v4980_v20 }
 0x7b0   :  { %v4982_v47 = vpop.f32.mrf.mxu1 }
 0x7b1   :  { %5633 = vst [vmem:[#allocation19_spill] sm:$0xff] %v4982_v47 }
 0x7b2   :  { %v4984_v4 = vpop.f32.mrf.mxu1 }
 0x7b3   :  { %5634 = vst [vmem:[#allocation23_spill] sm:$0xff] %v4984_v4  ;;  %v2389_v40 = vmax.f32 %v2387_v31, %v4984_v4 }
 0x7b4   :  { %v4986_v43 = vpop.f32.mrf.mxu1 }
 0x7b6   :  { %v4988_v21 = vpop.f32.mrf.mxu1 }
 0x7b7   :  { %v2390_v49 = vmax.f32 %v2388_v32, %v4988_v21 }
 0x7b8   :  { %v4990_v63 = vpop.f32.mrf.mxu1 }
 0x7ba   :  { %v4992_v15 = vpop.f32.mrf.mxu1 }
 0x7bb   :  { %5635 = vst [vmem:[#allocation25_spill] sm:$0xff] %v4992_v15  ;;  %v2391_v25 = vmax.f32 %v2389_v40, %v4992_v15 }
 0x7bc   :  { %v4994_v10 = vpop.f32.mrf.mxu1 }
 0x7be   :  { %v4996_v59 = vpop.f32.mrf.mxu1 }
 0x7bf   :  { %v2392_v6 = vmax.f32 %v2390_v49, %v4996_v59  ;;  %v2419_v49 = vmax.f32 %v4950_v42, %v4958_v5 }
 0x7c0   :  { %v4998_v29 = vpop.f32.mrf.mxu1 }
 0x7c2   :  { %v5000_v11 = vpop.f32.mrf.mxu1 }
 0x7c3   :  { %v2393_v61 = vmax.f32 %v2391_v25, %v5000_v11 }
 0x7c4   :  { %v5002_v17 = vpop.f32.mrf.mxu1 }
 0x7c6   :  { %v5004_v38 = vpop.f32.mrf.mxu1 }
 0x7c7   :  { %5636 = vst [vmem:[#allocation26_spill] sm:$0xff] %v5004_v38  ;;  %v2394_v22 = vmax.f32 %v2392_v6, %v5004_v38 }
 0x7c8   :  { %v5006_v62 = vpop.f32.mrf.mxu1 }
 0x7ca   :  { %v5008_v18 = vpop.f32.mrf.mxu1 }
 0x7cb   :  { %v2395_v24 = vmax.f32 %v2393_v61, %v5008_v18  ;;  %v2418_v61 = vmax.f32 %v4946_v53, %v4954_v36 }
 0x7cc   :  { %v5010_v8 = vpop.f32.mrf.mxu1 }
 0x7ce   :  { %v5012_v16 = vpop.f32.mrf.mxu1 }
 0x7cf   :  { %v2396_v31 = vmax.f32 %v2394_v22, %v5012_v16  ;;  %v2421_v22 = vmax.f32 %v2419_v49, %v4966_v26 }
 0x7d0   :  { %v5014_v46 = vpop.f32.mrf.mxu1 }
 0x7d1   :  { %v2423_v5 = vmax.f32 %v2421_v22, %v4974_v60 }
 0x7d2   :  { %v5016_v28 = vpop.f32.mrf.mxu1 }
 0x7d3   :  { %5637 = vst [vmem:[#allocation22_spill] sm:$0xff] %v5016_v28  ;;  %v2397_v32 = vmax.f32 %v2395_v24, %v5016_v28  ;;  %v2420_v28 = vmax.f32 %v2418_v61, %v4962_v19  ;;  %v2425_v49 = vmax.f32 %v2423_v5, %v4982_v47 }
 0x7d4   :  { %v5018_v45 = vpop.f32.mrf.mxu1 }
 0x7d5   :  { %v2422_v36 = vmax.f32 %v2420_v28, %v4970_v55  ;;  %v2427_v22 = vmax.f32 %v2425_v49, %v4990_v63 }
 0x7d6   :  { %v5020_v39 = vpop.f32.mrf.mxu1 }
 0x7d7   :  { %5638 = vst [vmem:[#allocation24_spill] sm:$0xff] %v5020_v39  ;;  %v2398_v40 = vmax.f32 %v2396_v31, %v5020_v39  ;;  %v2424_v61 = vmax.f32 %v2422_v36, %v4978_v9  ;;  %v2429_v5 = vmax.f32 %v2427_v22, %v4998_v29 }
 0x7d8   :  { %v5022_v2 = vpop.f32.mrf.mxu1 }
 0x7d9   :  { %v2426_v28 = vmax.f32 %v2424_v61, %v4986_v43  ;;  %v2431_v36 = vmax.f32 %v2429_v5, %v5006_v62 }
 0x7da   :  { %v5024_v52 = vpop.f32.mrf.mxu1 }
 0x7db   :  { %v2399_v25 = vmax.f32 %v2397_v32, %v5024_v52  ;;  %v2428_v47 = vmax.f32 %v2426_v28, %v4994_v10 }
 0x7dc   :  { %v5026_v7 = vpop.f32.mrf.mxu1 }
 0x7dd   :  { %v2430_v49 = vmax.f32 %v2428_v47, %v5002_v17 }
 0x7de   :  { %v5028_v23 = vpop.f32.mrf.mxu1 }
 0x7df   :  { %v2400_v6 = vmax.f32 %v2398_v40, %v5028_v23 }
 0x7e0   :  { %v5030_v44 = vpop.f32.mrf.mxu1 }
 0x7e2   :  { %v5032_v37 = vpop.f32.mrf.mxu1 }
 0x7e3   :  { %v2401_v24 = vmax.f32 %v2399_v25, %v5032_v37 }
 0x7e4   :  { %v5034_v35 = vpop.f32.mrf.mxu1 }
 0x7e6   :  { %v5036_v41 = vpop.f32.mrf.mxu1 }
 0x7e7   :  { %v2402_v31 = vmax.f32 %v2400_v6, %v5036_v41 }
 0x7e8   :  { %v5038_v57 = vpop.f32.mrf.mxu1 }
 0x7ea   :  { %v5040_v1 = vpop.f32.mrf.mxu1 }
 0x7eb   :  { %v2403_v32 = vmax.f32 %v2401_v24, %v5040_v1 }
 0x7ec   :  { %v5046_v54 = vpop.f32.mrf.mxu1 }
 0x7ee   :  { %v5050_v3 = vpop.f32.mrf.mxu1 }
 0x7ef   :  { %v2404_v40 = vmax.f32 %v2402_v31, %v5050_v3 }
 0x7f0   :  { %v5054_v30 = vpop.f32.mrf.mxu1 }
 0x7f2   :  { %v5058_v51 = vpop.f32.mrf.mxu1 }
 0x7f3   :  { %v2405_v25 = vmax.f32 %v2403_v32, %v5058_v51 }
 0x7f4   :  { %v5062_v13 = vpop.f32.mrf.mxu1 }
 0x7f6   :  { %v5066_v48 = vpop.f32.mrf.mxu1 }
 0x7f7   :  { %v2406_v6 = vmax.f32 %v2404_v40, %v5066_v48 }
 0x7f8   :  { %v5070_v58 = vpop.f32.mrf.mxu1 }
 0x7fa   :  { %v5074_v4 = vpop.f32.mrf.mxu1 }
 0x7fb   :  { %5639 = vst [vmem:[#allocation9_spill] sm:$0xff] %v5074_v4  ;;  %v2407_v24 = vmax.f32 %v2405_v25, %v5074_v4  ;;  %v2433_v25 = vmax.f32 %v2431_v36, %v5014_v46 }
 0x7fc   :  { %v5078_v15 = vpop.f32.mrf.mxu1 }
 0x7fd   :  { %v2435_v61 = vmax.f32 %v2433_v25, %v5022_v2 }
 0x7fe   :  { %v5084_v38 = vpop.f32.mrf.mxu1 }
 0x7ff   :  { %5640 = vst [vmem:[#allocation7_spill] sm:$0xff] %v5084_v38  ;;  %v2408_v31 = vmax.f32 %v2406_v6, %v5084_v38  ;;  %v2432_v38 = vmax.f32 %v2430_v49, %v5010_v8 }
 0x800   :  { %v5091_v39 = vpop.f32.mrf.mxu1 }
 0x801   :  { %v2434_v22 = vmax.f32 %v2432_v38, %v5018_v45 }
 0x802   :  { %v5097_v42 = vpop.f32.mrf.mxu1 }
 0x803   :  { %v2409_v32 = vmax.f32 %v2407_v24, %v5097_v42  ;;  %v2437_v24 = vmax.f32 %v2435_v61, %v5030_v44  ;;  %v2436_v28 = vmax.f32 %v2434_v22, %v5026_v7 }
 0x804   :  { %v5103_v26 = vpop.f32.mrf.mxu1 }
 0x805   :  { %v2439_v5 = vmax.f32 %v2437_v24, %v5038_v57  ;;  %v2438_v47 = vmax.f32 %v2436_v28, %v5034_v35 }
 0x806   :  { %v5109_v60 = vpop.f32.mrf.mxu1 }
 0x807   :  { %v2410_v40 = vmax.f32 %v2408_v31, %v5109_v60  ;;  %v2440_v49 = vmax.f32 %v2438_v47, %v5046_v54 }
 0x809   :  { %v2411_v9 = vmax.f32 %v2409_v32, %v2410_v40  ;;  %v2441_v40 = vmax.f32 %v2439_v5, %v5054_v30  ;;  %v2442_v38 = vmax.f32 %v2440_v49, %v5062_v13 }
 0x80b   :  { %v2412_v6 = vrot.slane %v2411_v9, 4  ;;  %v2443_v25 = vmax.f32 %v2441_v40, %v5070_v58  ;;  %v2444_v22 = vmax.f32 %v2442_v38, %v5078_v15 }
 0x80d   :  { %v2413_v4 = vmax.f32 %v2411_v9, %v2412_v6  ;;  %v5129_v9 = vpop.f32.mrf.mxu1  ;;  %v2445_v6 = vmax.f32 %v2443_v25, %v5091_v39  ;;  %v2446_v24 = vmax.f32 %v2444_v22, %v5103_v26 }
 0x80f   :  { %v2414_v31 = vrot.slane %v2413_v4, 2 }
 0x811   :  { %v2415_v32 = vmax.f32 %v2413_v4, %v2414_v31  ;;  %v2447_v4 = vmax.f32 %v2445_v6, %v5129_v9 }
 0x813   :  { %v2416_v36 = vrot.slane %v2415_v32, 1  ;;  %v2448_v47 = vmax.f32 %v2446_v24, %v2447_v4 }
 0x815   :  { %v5133_v61 = vmax.f32 %v2415_v32, %v2416_v36  ;;  %v2449_v38 = vrot.slane %v2448_v47, 4 }
 0x817   :  { %v2455_v31 = vsub.f32 %v4944_v14, %v5133_v61  ;;  %v2457_v28 = vsub.f32 %v4948_v27, %v5133_v61  ;;  %v2459_v5 = vsub.f32 %v4952_v12, %v5133_v61  ;;  %v2461_v32 = vsub.f32 %v4956_v56, %v5133_v61 }
 0x818   :  { %v2463_v49 = vsub.f32 %v4960_v0, %v5133_v61  ;;  %v2465_v14 = vsub.f32 %v4964_v34, %v5133_v61  ;;  %v2467_v12 = vsub.f32 %v4968_v33, %v5133_v61  ;;  %v2450_v22 = vmax.f32 %v2448_v47, %v2449_v38  ;;  %v5641_v0 = vld [vmem:[#allocation17_spill] sm:$0xff]  ;;  %v5642_v33 = vld [vmem:[#allocation23_spill] sm:$0xff] }
 0x819   :  { %v2519_v40 = vmul.f32 1.442695, %v2455_v31  ;;  %v2523_v36 = vmul.f32 1.442695, %v2457_v28  ;;  %v2527_v25 = vmul.f32 1.442695, %v2459_v5  ;;  %v2469_v56 = vsub.f32 %v4972_v50, %v5133_v61 }
 0x81a   :  { %v2531_v27 = vmul.f32 1.442695, %v2461_v32  ;;  %v2535_v6 = vmul.f32 1.442695, %v2463_v49  ;;  %v2539_v4 = vmul.f32 1.442695, %v2465_v14  ;;  %v2471_v24 = vsub.f32 %v5641_v0, %v5133_v61 }
 0x81b   :  { %3414 = vpow2.f32 %v2519_v40  ;;  %v2543_v31 = vmul.f32 1.442695, %v2467_v12  ;;  %v2451_v28 = vrot.slane %v2450_v22, 2  ;;  %v2473_v34 = vsub.f32 %v4980_v20, %v5133_v61  ;;  %v5643_v38 = vld [vmem:[#allocation25_spill] sm:$0xff] }
 0x81c   :  { %3416 = vpow2.f32 %v2523_v36  ;;  %v2547_v5 = vmul.f32 1.442695, %v2469_v56  ;;  %v2475_v32 = vsub.f32 %v5642_v33, %v5133_v61  ;;  %v2551_v47 = vmul.f32 1.442695, %v2471_v24  ;;  %v5644_v56 = vld [vmem:[#allocation26_spill] sm:$0xff] }
 0x81d   :  { %3418 = vpow2.f32 %v2527_v25  ;;  %v2452_v40 = vmax.f32 %v2450_v22, %v2451_v28  ;;  %v2477_v36 = vsub.f32 %v4988_v21, %v5133_v61  ;;  %v2555_v49 = vmul.f32 1.442695, %v2473_v34 }
 0x81e   :  { %3420 = vpow2.f32 %v2531_v27  ;;  %v2479_v20 = vsub.f32 %v5643_v38, %v5133_v61  ;;  %v2481_v14 = vsub.f32 %v4996_v59, %v5133_v61  ;;  %v2559_v27 = vmul.f32 1.442695, %v2475_v32  ;;  %v5645_v32 = vld [vmem:[#allocation22_spill] sm:$0xff]  ;;  %v5646_v38 = vld [vmem:[#allocation24_spill] sm:$0xff] }
 0x81f   :  { %3422 = vpow2.f32 %v2535_v6  ;;  %v2483_v21 = vsub.f32 %v5000_v11, %v5133_v61  ;;  %v2453_v22 = vrot.slane %v2452_v40, 1  ;;  %v2563_v0 = vmul.f32 1.442695, %v2477_v36 }
 0x820   :  { %3424 = vpow2.f32 %v2539_v4  ;;  %v2485_v4 = vsub.f32 %v5644_v56, %v5133_v61  ;;  %v2487_v59 = vsub.f32 %v5008_v18, %v5133_v61  ;;  %v2567_v28 = vmul.f32 1.442695, %v2479_v20 }
 0x821   :  { %3426 = vpow2.f32 %v2543_v31  ;;  %v2489_v34 = vsub.f32 %v5012_v16, %v5133_v61  ;;  %v2575_v36 = vmul.f32 1.442695, %v2483_v21  ;;  %v2497_v56 = vsub.f32 %v5028_v23, %v5133_v61 }
 0x822   :  { %3428 = vpow2.f32 %v2547_v5  ;;  %v2571_v5 = vmul.f32 1.442695, %v2481_v14  ;;  %v2579_v18 = vmul.f32 1.442695, %v2485_v4  ;;  %v2495_v14 = vsub.f32 %v5024_v52, %v5133_v61 }
 0x823   :  { %3430 = vpow2.f32 %v2551_v47  ;;  %v2491_v47 = vsub.f32 %v5645_v32, %v5133_v61  ;;  %v2499_v23 = vsub.f32 %v5032_v37, %v5133_v61  ;;  %v5649_v37 = vld [vmem:[#allocation10_spill] sm:$0xff] }
 0x824   :  { %3432 = vpow2.f32 %v2555_v49  ;;  %v5190_v49 = vmax.f32 %v2452_v40, %v2453_v22  ;;  %v2587_v40 = vmul.f32 1.442695, %v2489_v34  ;;  %v2599_v34 = vmul.f32 1.442695, %v2495_v14 }
 0x825   :  { %3434 = vpow2.f32 %v2559_v27  ;;  %v2583_v27 = vmul.f32 1.442695, %v2487_v59  ;;  %v2591_v4 = vmul.f32 1.442695, %v2491_v47  ;;  %v5647_v59 = vld [vmem:[#allocation16_spill] sm:$0xff] }
 0x826   :  { %3436 = vpow2.f32 %v2563_v0  ;;  %v2456_v0 = vsub.f32 %v4946_v53, %v5190_v49  ;;  %v5648_v53 = vld [vmem:[#allocation8_spill] sm:$0xff] }
 0x827   :  { %3438 = vpow2.f32 %v2567_v28  ;;  %v2458_v28 = vsub.f32 %v5647_v59, %v5190_v49  ;;  %v2460_v47 = vsub.f32 %v5648_v53, %v5190_v49  ;;  %v2468_v53 = vsub.f32 %v4970_v55, %v5190_v49 }
 0x828   :  { %v5160_v50 = vpop.eup %3414  ;;  %3440 = vpow2.f32 %v2571_v5  ;;  %v2603_v5 = vmul.f32 1.442695, %v2497_v56  ;;  %v2503_v56 = vsub.f32 %v5040_v1, %v5133_v61  ;;  %v5650_v1 = vld [vmem:[#allocation12_spill] sm:$0xff] }
 0x829   :  { %v5164_v25 = vpop.eup %3416  ;;  %3442 = vpow2.f32 %v2575_v36  ;;  %v2525_v14 = vmul.f32 1.442695, %v2458_v28  ;;  %v2466_v28 = vsub.f32 %v5650_v1, %v5190_v49 }
 0x82a   :  { %v2647_v12 = vadd.f32 %v5164_v25, %v5160_v50  ;;  %v5172_v6 = vpop.eup %3418  ;;  %3444 = vpow2.f32 %v2579_v18 }
 0x82b   :  { %v5179_v31 = vpop.eup %3420  ;;  %3446 = vpow2.f32 %v2583_v27 }
 0x82c   :  { %v2648_v24 = vadd.f32 %v5172_v6, %v2647_v12  ;;  %v5186_v33 = vpop.eup %3422  ;;  %v2493_v12 = vsub.f32 %v5646_v38, %v5133_v61  ;;  %3448 = vpow2.f32 %v2587_v40  ;;  %v2501_v38 = vsub.f32 %v5036_v41, %v5133_v61 }
 0x82d   :  { %v5195_v16 = vpop.eup %3424  ;;  %3450 = vpow2.f32 %v2591_v4  ;;  %v2607_v40 = vmul.f32 1.442695, %v2499_v23  ;;  %v2464_v41 = vsub.f32 %v4962_v19, %v5190_v49  ;;  %v2529_v4 = vmul.f32 1.442695, %v2460_v47 }
 0x82e   :  { %v2649_v11 = vadd.f32 %v5179_v31, %v2648_v24  ;;  %v5202_v22 = vpop.eup %3426  ;;  %v2595_v24 = vmul.f32 1.442695, %v2493_v12  ;;  %v2521_v12 = vmul.f32 1.442695, %v2456_v0  ;;  %v2507_v19 = vsub.f32 %v5058_v51, %v5133_v61 }
 0x82f   :  { %v2537_v47 = vmul.f32 1.442695, %v2464_v41 }
 0x830   :  { %v2650_v20 = vadd.f32 %v5186_v33, %v2649_v11  ;;  %v5209_v11 = vpop.eup %3428  ;;  %3452 = vpow2.f32 %v2595_v24  ;;  %v2505_v24 = vsub.f32 %v5050_v3, %v5133_v61  ;;  %v2623_v55 = vmul.f32 1.442695, %v2507_v19 }
 0x831   :  { %v5216_v36 = vpop.eup %3430  ;;  %3454 = vpow2.f32 %v2599_v34 }
 0x832   :  { %v2651_v21 = vadd.f32 %v5195_v16, %v2650_v20  ;;  %v2462_v20 = vsub.f32 %v5649_v37, %v5190_v49  ;;  %v5223_v27 = vpop.eup %3432  ;;  %3456 = vpow2.f32 %v2603_v5  ;;  %v2615_v5 = vmul.f32 1.442695, %v2503_v56 }
 0x833   :  { %v5230_v0 = vpop.eup %3434  ;;  %3458 = vpow2.f32 %v2521_v12  ;;  %v2509_v12 = vsub.f32 %v5066_v48, %v5133_v61  ;;  %v2541_v56 = vmul.f32 1.442695, %v2466_v28  ;;  %v5655_v28 = vld [vmem:[#allocation19_spill] sm:$0xff] }
 0x834   :  { %v2652_v52 = vadd.f32 %v5202_v22, %v2651_v21  ;;  %3460 = vpow2.f32 %v2525_v14  ;;  %v2533_v23 = vmul.f32 1.442695, %v2462_v20  ;;  %v5237_v34 = vpop.eup %3436  ;;  %v5651_v20 = vld [vmem:[#allocation14_spill] sm:$0xff] }
 0x835   :  { %3462 = vpow2.f32 %v2607_v40  ;;  %v2470_v14 = vsub.f32 %v5651_v20, %v5190_v49  ;;  %v2627_v1 = vmul.f32 1.442695, %v2509_v12 }
 0x836   :  { %v2653_v32 = vadd.f32 %v5209_v11, %v2652_v52  ;;  %v2611_v52 = vmul.f32 1.442695, %v2501_v38  ;;  %3464 = vpow2.f32 %v2529_v4 }
 0x838   :  { %v2654_v18 = vadd.f32 %v5216_v36, %v2653_v32  ;;  %v5241_v32 = vpop.eup %3438  ;;  %3466 = vpow2.f32 %v2611_v52  ;;  %v2545_v52 = vmul.f32 1.442695, %v2468_v53 }
 0x839   :  { %v5246_v38 = vpop.eup %3440  ;;  %3468 = vpow2.f32 %v2533_v23  ;;  %v2474_v23 = vsub.f32 %v5655_v28, %v5190_v49 }
 0x83a   :  { %v2655_v21 = vadd.f32 %v5223_v27, %v2654_v18  ;;  %v2619_v18 = vmul.f32 1.442695, %v2505_v24  ;;  %v5250_v37 = vpop.eup %3442  ;;  %3470 = vpow2.f32 %v2615_v5  ;;  %v2486_v24 = vsub.f32 %v5006_v62, %v5190_v49 }
 0x83b   :  { %v5255_v40 = vpop.eup %3444  ;;  %3472 = vpow2.f32 %v2537_v47  ;;  %v2476_v62 = vsub.f32 %v4986_v43, %v5190_v49 }
 0x83c   :  { %v2656_v59 = vadd.f32 %v5230_v0, %v2655_v21  ;;  %v5652_v21 = vld [vmem:[#allocation18_spill] sm:$0xff]  ;;  %v5259_v4 = vpop.eup %3446  ;;  %3474 = vpow2.f32 %v2619_v18  ;;  %v2482_v18 = vsub.f32 %v4998_v29, %v5190_v49  ;;  %v5659_v29 = vld [vmem:[#allocation9_spill] sm:$0xff] }
 0x83d   :  { %v2472_v41 = vsub.f32 %v5652_v21, %v5190_v49  ;;  %5653 = vst [vmem:[#allocation6_spill] sm:$0xff] %v5259_v4  ;;  %3476 = vpow2.f32 %v2541_v56  ;;  %v2581_v21 = vmul.f32 1.442695, %v2486_v24  ;;  %v2511_v24 = vsub.f32 %v5659_v29, %v5133_v61 }
 0x83e   :  { %v2657_v3 = vadd.f32 %v5237_v34, %v2656_v59  ;;  %v5264_v59 = vpop.eup %3448  ;;  %3478 = vpow2.f32 %v2623_v55  ;;  %v2480_v55 = vsub.f32 %v4994_v10, %v5190_v49  ;;  %v5660_v10 = vld [vmem:[#allocation7_spill] sm:$0xff] }
 0x83f   :  { %5654 = vst [vmem:[#allocation20_spill] sm:$0xff] %v5264_v59  ;;  %v5268_v19 = vpop.eup %3450  ;;  %v2553_v53 = vmul.f32 1.442695, %v2472_v41  ;;  %3480 = vpow2.f32 %v2545_v52  ;;  %v2561_v52 = vmul.f32 1.442695, %v2476_v62 }
 0x840   :  { %v2658_v51 = vadd.f32 %v5241_v32, %v2657_v3  ;;  %5656 = vst [vmem:[#allocation21_spill] sm:$0xff] %v5268_v19  ;;  %v2484_v3 = vsub.f32 %v5002_v17, %v5190_v49  ;;  %v5273_v20 = vpop.eup %3452  ;;  %3482 = vpow2.f32 %v2627_v1  ;;  %v2478_v17 = vsub.f32 %v4990_v63, %v5190_v49 }
 0x841   :  { %5657 = vst [vmem:[#allocation17_spill] sm:$0xff] %v5273_v20  ;;  %v5277_v47 = vpop.eup %3454 }
 0x842   :  { %v2659_v48 = vadd.f32 %v5246_v38, %v2658_v51  ;;  %v2549_v51 = vmul.f32 1.442695, %v2470_v14  ;;  %5658 = vst [vmem:[#allocation23_spill] sm:$0xff] %v5277_v47  ;;  %v2557_v14 = vmul.f32 1.442695, %v2474_v23 }
 0x843   :  { %v2577_v41 = vmul.f32 1.442695, %v2484_v3  ;;  %v2573_v23 = vmul.f32 1.442695, %v2482_v18  ;;  %v2513_v3 = vsub.f32 %v5660_v10, %v5133_v61 }
 0x844   :  { %v2660_v5 = vadd.f32 %v5250_v37, %v2659_v48  ;;  %v5282_v48 = vpop.eup %3456  ;;  %3484 = vpow2.f32 %v2549_v51  ;;  %v2565_v51 = vmul.f32 1.442695, %v2478_v17 }
 0x845   :  { %v5286_v56 = vpop.eup %3458  ;;  %3486 = vpow2.f32 %v2553_v53  ;;  %v2569_v53 = vmul.f32 1.442695, %v2480_v55  ;;  %v2517_v55 = vsub.f32 %v5109_v60, %v5133_v61  ;;  %v2488_v60 = vsub.f32 %v5010_v8, %v5190_v49 }
 0x846   :  { %v2661_v12 = vadd.f32 %v5255_v40, %v2660_v5  ;;  %v5291_v28 = vpop.eup %3460  ;;  %3488 = vpow2.f32 %v2581_v21  ;;  %v2515_v21 = vsub.f32 %v5097_v42, %v5133_v61  ;;  %v2492_v8 = vsub.f32 %v5018_v45, %v5190_v49 }
 0x847   :  { %v5295_v1 = vpop.eup %3462  ;;  %v2684_v5 = vadd.f32 %v5291_v28, %v5286_v56  ;;  %3490 = vpow2.f32 %v2557_v14 }
 0x848   :  { %v2662_v43 = vadd.f32 %v5259_v4, %v2661_v12  ;;  %v5300_v12 = vpop.eup %3464  ;;  %3492 = vpow2.f32 %v2577_v41 }
 0x849   :  { %v5304_v4 = vpop.eup %3466  ;;  %3494 = vpow2.f32 %v2561_v52 }
 0x84a   :  { %v2663_v63 = vadd.f32 %v5264_v59, %v2662_v43  ;;  %v2685_v43 = vadd.f32 %v5300_v12, %v2684_v5  ;;  %v5308_v18 = vpop.eup %3468  ;;  %v2631_v59 = vmul.f32 1.442695, %v2511_v24  ;;  %3496 = vpow2.f32 %v2573_v23 }
 0x84b   :  { %v5312_v29 = vpop.eup %3470  ;;  %3498 = vpow2.f32 %v2565_v51  ;;  %v2639_v5 = vmul.f32 1.442695, %v2515_v21  ;;  %v2490_v21 = vsub.f32 %v5014_v46, %v5190_v49  ;;  %v2494_v46 = vsub.f32 %v5022_v2, %v5190_v49 }
 0x84c   :  { %v2664_v62 = vadd.f32 %v5268_v19, %v2663_v63  ;;  %v2686_v17 = vadd.f32 %v5308_v18, %v2685_v43  ;;  %v5316_v10 = vpop.eup %3472  ;;  %v2635_v63 = vmul.f32 1.442695, %v2513_v3  ;;  %3500 = vpow2.f32 %v2569_v53 }
 0x84d   :  { %v5320_v41 = vpop.eup %3474  ;;  %3502 = vpow2.f32 %v2631_v59  ;;  %v2643_v3 = vmul.f32 1.442695, %v2517_v55  ;;  %v2589_v19 = vmul.f32 1.442695, %v2490_v21  ;;  %v2593_v2 = vmul.f32 1.442695, %v2492_v8 }
 0x84e   :  { %v2665_v14 = vadd.f32 %v5273_v20, %v2664_v62  ;;  %v2687_v52 = vadd.f32 %v5316_v10, %v2686_v17  ;;  %v5324_v24 = vpop.eup %3476  ;;  %3504 = vpow2.f32 %v2635_v63  ;;  %v2498_v21 = vsub.f32 %v5030_v44, %v5190_v49 }
 0x84f   :  { %v5326_v23 = vpop.eup %3478  ;;  %3506 = vpow2.f32 %v2639_v5 }
 0x850   :  { %v2666_v42 = vadd.f32 %v5277_v47, %v2665_v14  ;;  %v2688_v61 = vadd.f32 %v5324_v24, %v2687_v52  ;;  %v5332_v51 = vpop.eup %3480  ;;  %3508 = vpow2.f32 %v2643_v3 }
 0x851   :  { %v5334_v43 = vpop.eup %3482 }
 0x852   :  { %v2667_v62 = vadd.f32 %v5282_v48, %v2666_v42  ;;  %v2689_v59 = vadd.f32 %v5332_v51, %v2688_v61  ;;  %v5340_v14 = vpop.eup %3484  ;;  %v2585_v42 = vmul.f32 1.442695, %v2488_v60  ;;  %v2496_v60 = vsub.f32 %v5026_v7, %v5190_v49 }
 0x853   :  { %v5344_v17 = vpop.eup %3486  ;;  %v2597_v7 = vmul.f32 1.442695, %v2494_v46  ;;  %v2605_v46 = vmul.f32 1.442695, %v2498_v21  ;;  %v2516_v21 = vsub.f32 %v5103_v26, %v5190_v49 }
 0x854   :  { %v2668_v53 = vadd.f32 %v5295_v1, %v2667_v62  ;;  %v2690_v63 = vadd.f32 %v5340_v14, %v2689_v59  ;;  %v5348_v52 = vpop.eup %3488  ;;  %3510 = vpow2.f32 %v2585_v42  ;;  %v2500_v42 = vsub.f32 %v5034_v35, %v5190_v49 }
 0x855   :  { %v3491_v62 = vpop.eup %3490  ;;  %2721 = vmatprep.subr.mxu0 %v5348_v52  ;;  %3512 = vpow2.f32 %v2589_v19  ;;  %v2502_v19 = vsub.f32 %v5038_v57, %v5190_v49 }
 0x856   :  { %v2669_v55 = vadd.f32 %v5304_v4, %v2668_v53  ;;  %v2691_v45 = vadd.f32 %v5344_v17, %v2690_v63  ;;  %v3493_v5 = vpop.eup %3492  ;;  %2722 = vmatpush1.msra.mxu0 %v5255_v40  ;;  %3514 = vpow2.f32 %v2593_v2  ;;  %v2506_v2 = vsub.f32 %v5054_v30, %v5190_v49 }
 0x857   :  { %v3495_v53 = vpop.eup %3494  ;;  %2723 = vmatprep.subr.mxu0 %v3493_v5  ;;  %3516 = vpow2.f32 %v2597_v7 }
 0x858   :  { %v2670_v61 = vadd.f32 %v5312_v29, %v2669_v55  ;;  %v2692_v20 = vadd.f32 %v3491_v62, %v2691_v45  ;;  %v3497_v3 = vpop.eup %3496  ;;  %2724 = vmatpush1.msra.mxu0 %v5250_v37  ;;  %v2504_v45 = vsub.f32 %v5046_v54, %v5190_v49 }
 0x859   :  { %v3499_v55 = vpop.eup %3498  ;;  %2725 = vmatprep.subr.mxu0 %v3497_v3 }
 0x85a   :  { %v2671_v59 = vadd.f32 %v5320_v41, %v2670_v61  ;;  %v2693_v47 = vadd.f32 %v3495_v53, %v2692_v20  ;;  %v3501_v40 = vpop.eup %3500  ;;  %2726 = vmatpush1.msra.mxu0 %v5246_v38  ;;  %v2601_v61 = vmul.f32 1.442695, %v2496_v60  ;;  %v2617_v30 = vmul.f32 1.442695, %v2504_v45 }
 0x85b   :  { %2727 = vmatprep.subr.mxu0 %v3501_v40  ;;  %v5367_v37 = vpop.eup %3502 }
 0x85c   :  { %v2672_v63 = vadd.f32 %v5326_v23, %v2671_v59  ;;  %v2694_v44 = vadd.f32 %v3499_v55, %v2693_v47  ;;  %2728 = vmatpush1.msra.mxu0 %v5241_v32  ;;  %v5373_v38 = vpop.eup %3504  ;;  %v2518_v47 = vsub.f32 %v5129_v9, %v5190_v49  ;;  %3518 = vpow2.f32 %v2601_v61 }
 0x85d   :  { %2729 = vmatprep.subr.mxu0 %v3499_v55  ;;  %v2609_v32 = vmul.f32 1.442695, %v2500_v42  ;;  %v5381_v59 = vpop.eup %3506  ;;  %3520 = vpow2.f32 %v2605_v46  ;;  %v2613_v9 = vmul.f32 1.442695, %v2502_v19 }
 0x85e   :  { %v2673_v8 = vadd.f32 %v5334_v43, %v2672_v63  ;;  %v2695_v35 = vadd.f32 %v3501_v40, %v2694_v44  ;;  %2730 = vmatpush1.msra.mxu0 %v5237_v34  ;;  %v5389_v55 = vpop.eup %3508 }
 0x85f   :  { %2731 = vmatprep.subr.mxu0 %v3495_v53  ;;  %v2508_v53 = vsub.f32 %v5062_v13, %v5190_v49  ;;  %3522 = vpow2.f32 %v2609_v32  ;;  %v2510_v13 = vsub.f32 %v5070_v58, %v5190_v49 }
 0x860   :  { %v2674_v20 = vadd.f32 %v5367_v37, %v2673_v8  ;;  %v2696_v60 = vadd.f32 %v3497_v3, %v2695_v35  ;;  %2732 = vmatpush1.msra.mxu0 %v5230_v0  ;;  %v2514_v3 = vsub.f32 %v5091_v39, %v5190_v49  ;;  %v2645_v0 = vmul.f32 1.442695, %v2518_v47 }
 0x861   :  { %2733 = vmatprep.subr.mxu0 %v3491_v62  ;;  %v5401_v62 = vpop.eup %3510  ;;  %v2512_v39 = vsub.f32 %v5078_v15, %v5190_v49  ;;  %3524 = vpow2.f32 %v2613_v9  ;;  %v2629_v15 = vmul.f32 1.442695, %v2510_v13 }
 0x862   :  { %v2675_v57 = vadd.f32 %v5373_v38, %v2674_v20  ;;  %v2697_v34 = vadd.f32 %v3493_v5, %v2696_v60  ;;  %2734 = vmatpush1.msra.mxu0 %v5223_v27  ;;  %v2621_v5 = vmul.f32 1.442695, %v2506_v2  ;;  %v2641_v27 = vmul.f32 1.442695, %v2516_v21 }
 0x863   :  { %2735 = vmatprep.subr.mxu0 %v5344_v17  ;;  %3526 = vpow2.f32 %v2617_v30  ;;  %v2625_v17 = vmul.f32 1.442695, %v2508_v53  ;;  %v2637_v40 = vmul.f32 1.442695, %v2514_v3  ;;  %v2633_v49 = vmul.f32 1.442695, %v2512_v39 }
 0x864   :  { %v2676_v54 = vadd.f32 %v5381_v59, %v2675_v57  ;;  %v2698_v63 = vadd.f32 %v5348_v52, %v2697_v34  ;;  %2736 = vmatpush1.msra.mxu0 %v5216_v36  ;;  %v5410_v52 = vpop.eup %3512  ;;  %3528 = vpow2.f32 %v2645_v0  ;;  %v5668_v39 = vld [vmem:[#allocation15_spill] sm:$0xff] }
 0x865   :  { %2737 = vmatprep.subr.mxu0 %v5340_v14  ;;  %v5415_v36 = vpop.eup %3514  ;;  %3530 = vpow2.f32 %v2621_v5 }
 0x866   :  { %v5397_v26 = vadd.f32 %v5389_v55, %v2676_v54  ;;  %v2699_v7 = vadd.f32 %v5401_v62, %v2698_v63  ;;  %2738 = vmatpush1.msra.mxu0 %v5209_v11  ;;  %3532 = vpow2.f32 %v2641_v27  ;;  %v5420_v42 = vpop.eup %3516 }
 0x867   :  { %2739 = vmatprep.subr.mxu0 %v5332_v51  ;;  %3534 = vpow2.f32 %v2625_v17 }
 0x868   :  { %v2700_v58 = vadd.f32 %v5410_v52, %v2699_v7  ;;  %2740 = vmatpush1.msra.mxu0 %v5202_v22  ;;  %3536 = vpow2.f32 %v2637_v40  ;;  %v2930_v40 = vld [vmem:[#allocation2 + $0xf8] sm:$0xff] }
 0x869   :  { %2741 = vmatprep.subr.mxu0 %v5324_v24  ;;  %v3519_v51 = vpop.eup %3518  ;;  %3538 = vpow2.f32 %v2629_v15  ;;  %v2913_v15 = vld [vmem:[#allocation2 + $0x70] sm:$0xff] }
 0x86a   :  { %v2701_v14 = vadd.f32 %v5415_v36, %v2700_v58  ;;  %2742 = vmatpush1.msra.mxu0 %v5195_v16  ;;  %3540 = vpow2.f32 %v2633_v49  ;;  %v3521_v8 = vpop.eup %3520  ;;  %v2914_v58 = vld [vmem:[#allocation2 + $0x78] sm:$0xff]  ;;  %v2928_v49 = vld [vmem:[#allocation2 + $0xe8] sm:$0xff] }
 0x86b   :  { %2743 = vmatprep.subr.mxu0 %v5316_v10 }
 0x86c   :  { %v2702_v11 = vadd.f32 %v5420_v42, %v2701_v14  ;;  %2744 = vmatpush1.msra.mxu0 %v5186_v33  ;;  %v3523_v16 = vpop.eup %3522  ;;  %v2912_v14 = vld [vmem:[#allocation2 + $0x68] sm:$0xff] }
 0x86d   :  { %2745 = vmatprep.subr.mxu0 %v5308_v18 }
 0x86e   :  { %v2703_v22 = vadd.f32 %v3519_v51, %v2702_v11  ;;  %2746 = vmatpush1.msra.mxu0 %v5179_v31  ;;  %v3525_v10 = vpop.eup %3524  ;;  %v2911_v11 = vld [vmem:[#allocation2 + $0x60] sm:$0xff] }
 0x86f   :  { %2747 = vmatprep.subr.mxu0 %v5300_v12 }
 0x870   :  { %v2704_v24 = vadd.f32 %v3521_v8, %v2703_v22  ;;  %2748 = vmatpush1.msra.mxu0 %v5172_v6  ;;  %v3527_v33 = vpop.eup %3526  ;;  %v2910_v22 = vld [vmem:[#allocation2 + $0x58] sm:$0xff] }
 0x871   :  { %2749 = vmatprep.subr.mxu0 %v5291_v28  ;;  %v3529_v18 = vpop.eup %3528 }
 0x872   :  { %v2705_v61 = vadd.f32 %v3523_v16, %v2704_v24  ;;  %2750 = vmatpush1.msra.mxu0 %v5164_v25  ;;  %v3531_v31 = vpop.eup %3530  ;;  %v2909_v24 = vld [vmem:[#allocation2 + $0x50] sm:$0xff] }
 0x873   :  { %2751 = vmatprep.subr.mxu0 %v5286_v56  ;;  %v3533_v12 = vpop.eup %3532 }
 0x874   :  { %v2706_v44 = vadd.f32 %v3525_v10, %v2705_v61  ;;  %2752 = vmatpush1.msra.mxu0 %v5160_v50  ;;  %v3535_v6 = vpop.eup %3534  ;;  %v2908_v61 = vld [vmem:[#allocation2 + $0x48] sm:$0xff] }
 0x875   :  { %2753 = vmatprep.subr.mxu0 %v3529_v18  ;;  %v3537_v28 = vpop.eup %3536 }
 0x876   :  { %v2707_v19 = vadd.f32 %v3527_v33, %v2706_v44  ;;  %2754 = vmatpush2.msra.mxu0 %v5389_v55  ;;  %v3539_v25 = vpop.eup %3538  ;;  %v2922_v44 = vld [vmem:[#allocation2 + $0xb8] sm:$0xff] }
 0x877   :  { %2755 = vmatprep.subr.mxu0 %v3533_v12  ;;  %v3541_v35 = vpop.eup %3540 }
 0x878   :  { %v2708_v20 = vadd.f32 %v3531_v31, %v2707_v19  ;;  %2756 = vmatpush2.msra.mxu0 %v5381_v59  ;;  %v2905_v19 = vld [vmem:[#allocation2 + $0x30] sm:$0xff] }
 0x879   :  { %2757 = vmatprep.subr.mxu0 %v3537_v28 }
 0x87a   :  { %v2709_v46 = vadd.f32 %v3535_v6, %v2708_v20  ;;  %2758 = vmatpush2.msra.mxu0 %v5373_v38  ;;  %v2678_v38 = vrot.slane %v5397_v26, 4  ;;  %v2919_v20 = vld [vmem:[#allocation2 + $0xa0] sm:$0xff] }
 0x87b   :  { %2759 = vmatprep.subr.mxu0 %v3541_v35 }
 0x87c   :  { %v2710_v56 = vadd.f32 %v3539_v25, %v2709_v46  ;;  %2760 = vmatpush2.msra.mxu0 %v5367_v37  ;;  %v2679_v60 = vadd.f32 %v2678_v38, %v5397_v26  ;;  %v3546_v26 = vld [vmem:[%s5523_s9] sm:$0xff]  ;;  %v2902_v46 = vld [vmem:[#allocation2 + $0x18] sm:$0xff] }
 0x87d   :  { %2761 = vmatprep.subr.mxu0 %v3539_v25  ;;  %v2918_v25 = vld [vmem:[#allocation2 + $0x98] sm:$0xff] }
 0x87e   :  { %v2711_v50 = vadd.f32 %v3541_v35, %v2710_v56  ;;  %2762 = vmatpush2.msra.mxu0 %v5334_v43  ;;  %v5661_v43 = vld [vmem:[#allocation23_spill] sm:$0xff]  ;;  %v2680_v2 = vrot.slane %v2679_v60, 2  ;;  %v2962_v38 = vld [vmem:[#allocation2 + $0x1f8] sm:$0xff] }
 0x87f   :  { %2763 = vmatprep.subr.mxu0 %v3535_v6  ;;  %v2904_v6 = vld [vmem:[#allocation2 + $0x28] sm:$0xff]  ;;  %v2917_v35 = vld [vmem:[#allocation2 + $0x90] sm:$0xff] }
 0x880   :  { %v2712_v45 = vadd.f32 %v3537_v28, %v2711_v50  ;;  %2764 = vmatpush2.msra.mxu0 %v5326_v23  ;;  %v5662_v23 = vld [vmem:[#allocation17_spill] sm:$0xff]  ;;  %v2681_v54 = vadd.f32 %v2680_v2, %v2679_v60  ;;  %v2901_v50 = vld [vmem:[#allocation2 + $0x10] sm:$0xff] }
 0x881   :  { %2765 = vmatprep.subr.mxu0 %v3531_v31  ;;  %v2921_v31 = vld [vmem:[#allocation2 + $0xb0] sm:$0xff]  ;;  %v2903_v28 = vld [vmem:[#allocation2 + $0x20] sm:$0xff] }
 0x882   :  { %v2713_v47 = vadd.f32 %v3533_v12, %v2712_v45  ;;  %2766 = vmatpush2.msra.mxu0 %v5320_v41  ;;  %v5663_v41 = vld [vmem:[#allocation21_spill] sm:$0xff]  ;;  %v2682_v34 = vrot.slane %v2681_v54, 1  ;;  %v2920_v12 = vld [vmem:[#allocation2 + $0xa8] sm:$0xff] }
 0x883   :  { %2767 = vmatprep.subr.mxu0 %v3527_v33  ;;  %v2907_v33 = vld [vmem:[#allocation2 + $0x40] sm:$0xff]  ;;  %v2916_v45 = vld [vmem:[#allocation2 + $0x88] sm:$0xff] }
 0x884   :  { %v2714_v57 = vadd.f32 %v3529_v18, %v2713_v47  ;;  %2768 = vmatpush2.msra.mxu0 %v5312_v29  ;;  %v5667_v29 = vmov 0.0   ;;  %v2683_v53 = vadd.f32 %v2682_v34, %v2681_v54  ;;  %v2906_v18 = vld [vmem:[#allocation2 + $0x38] sm:$0xff]  ;;  %v2900_v47 = vld [vmem:[#allocation2 + $0x8] sm:$0xff] }
 0x885   :  { %2769 = vmatprep.subr.mxu0 %v3525_v10  ;;  %v2923_v10 = vld [vmem:[#allocation2 + $0xc0] sm:$0xff] }
 0x886   :  { %2770 = vmatpush2.msra.mxu0 %v5304_v4  ;;  %v5664_v4 = vld [vmem:[#allocation20_spill] sm:$0xff]  ;;  %v2715_v37 = vrot.slane %v2714_v57, 4 }
 0x887   :  { %2771 = vmatprep.subr.mxu0 %v3523_v16  ;;  %v2924_v16 = vld [vmem:[#allocation2 + $0xc8] sm:$0xff] }
 0x888   :  { %2772 = vmatpush2.msra.mxu0 %v5295_v1  ;;  %v5665_v1 = vld [vmem:[#allocation6_spill] sm:$0xff]  ;;  %v2716_v32 = vadd.f32 %v2715_v37, %v2714_v57 }
 0x889   :  { %2773 = vmatprep.subr.mxu0 %v3521_v8  ;;  %v2925_v8 = vld [vmem:[#allocation2 + $0xd0] sm:$0xff] }
 0x88a   :  { %2774 = vmatpush2.msra.mxu0 %v5282_v48  ;;  %v5666_v48 = vld [vmem:[#allocation11_spill] sm:$0xff]  ;;  %v2717_v59 = vrot.slane %v2716_v32, 2 }
 0x88b   :  { %2775 = vmatprep.subr.mxu0 %v3519_v51  ;;  %v2926_v51 = vld [vmem:[#allocation2 + $0xd8] sm:$0xff] }
 0x88c   :  { %2776 = vmatpush2.msra.mxu0 %v5661_v43  ;;  %v2718_v21 = vadd.f32 %v2717_v59, %v2716_v32 }
 0x88d   :  { %2777 = vmatprep.subr.mxu0 %v5420_v42  ;;  %v2927_v42 = vld [vmem:[#allocation2 + $0xe0] sm:$0xff] }
 0x88e   :  { %2778 = vmatpush2.msra.mxu0 %v5662_v23  ;;  %v2719_v9 = vrot.slane %v2718_v21, 1  ;;  %v2915_v23 = vld [vmem:[#allocation2 + $0x80] sm:$0xff] }
 0x88f   :  { %2779 = vmatprep.subr.mxu0 %v5415_v36  ;;  %v2929_v36 = vld [vmem:[#allocation2 + $0xf0] sm:$0xff] }
 0x890   :  { %2780 = vmatpush2.msra.mxu0 %v5663_v41  ;;  %v2720_v55 = vadd.f32 %v2719_v9, %v2718_v21 }
 0x891   :  { %2781 = vmatprep.subr.mxu0 %v5410_v52  ;;  %v5669_v52 = vld [vmem:[#allocation13_spill] sm:$0xff] }
 0x892   :  { %2782 = vmatpush2.msra.mxu0 %v5664_v4  ;;  %3542 = vrcp.f32 %v2720_v55  ;;  %v2899_v4 = vld [vmem:[#allocation2] sm:$0xff] }
 0x893   :  { %2783 = vmatprep.subr.mxu0 %v5401_v62  ;;  %3544 = vrcp.f32 %v2683_v53 }
 0x894   :  { %2784 = vmatpush2.msra.mxu0 %v5665_v1 }
 0x895   :  { %2786 = vmatmul.mubr.f32.vlgmr.msra.gmra.mxu0 %v5666_v48 }
 0x896   :  { %2860 = vmatprep.mubr.f32.mxu0 %v5667_v29 }
 0x89f   :  { %v3543_v30 = vpop.eup %3542 }
 0x8a0   :  { %v3545_v63 = vpop.eup %3544 }
 0x955   :  { %v2787_v3 = vpop.f32.mrf.mxu0 }
 0x956   :  { %v2793_v13 = vmul.f32 %v3545_v63, %v2787_v3 }
 0x957   :  { %v2789_v0 = vpop.f32.mrf.mxu0 }
 0x958   :  { %v2795_v62 = vmul.f32 %v3543_v30, %v2789_v0 }
 0x95a   :  { %2826 = vmatprep.subr.mxu0 %v2795_v62 }
 0x95b   :  { %2827 = vmatpush1.msra.mxu0 %v2793_v13 }
 0x95c   :  { %3182 = vmatmul.mubr.msk.f32.vlgmr.msra.gmra.mxu0 %vm765_vm9, %v3546_v26  ;;  %3183 = vmatprep.subr.mxu0 %v2930_v40  ;;  %v2944_v40 = vld [vmem:[#allocation2 + $0x168] sm:$0xff] }
 0x95d   :  { %3184 = vmatpush3.msra.mxu0 %v2914_v58  ;;  %v2959_v58 = vld [vmem:[#allocation2 + $0x1e0] sm:$0xff] }
 0x95e   :  { %3185 = vmatprep.subr.mxu0 %v2929_v36  ;;  %v2943_v36 = vld [vmem:[#allocation2 + $0x160] sm:$0xff] }
 0x95f   :  { %3186 = vmatpush3.msra.mxu0 %v2913_v15  ;;  %v2958_v15 = vld [vmem:[#allocation2 + $0x1d8] sm:$0xff] }
 0x960   :  { %3187 = vmatprep.subr.mxu0 %v2928_v49  ;;  %v2942_v49 = vld [vmem:[#allocation2 + $0x158] sm:$0xff] }
 0x961   :  { %3188 = vmatpush3.msra.mxu0 %v2912_v14  ;;  %v2957_v14 = vld [vmem:[#allocation2 + $0x1d0] sm:$0xff] }
 0x962   :  { %3189 = vmatprep.subr.mxu0 %v2927_v42  ;;  %v2941_v42 = vld [vmem:[#allocation2 + $0x150] sm:$0xff] }
 0x963   :  { %3190 = vmatpush3.msra.mxu0 %v2911_v11  ;;  %v2956_v11 = vld [vmem:[#allocation2 + $0x1c8] sm:$0xff] }
 0x964   :  { %3191 = vmatprep.subr.mxu0 %v2926_v51  ;;  %v2940_v51 = vld [vmem:[#allocation2 + $0x148] sm:$0xff] }
 0x965   :  { %3192 = vmatpush3.msra.mxu0 %v2910_v22  ;;  %v2955_v22 = vld [vmem:[#allocation2 + $0x1c0] sm:$0xff] }
 0x966   :  { %3193 = vmatprep.subr.mxu0 %v2925_v8  ;;  %v2939_v8 = vld [vmem:[#allocation2 + $0x140] sm:$0xff] }
 0x967   :  { %3194 = vmatpush3.msra.mxu0 %v2909_v24  ;;  %v2954_v24 = vld [vmem:[#allocation2 + $0x1b8] sm:$0xff] }
 0x968   :  { %3195 = vmatprep.subr.mxu0 %v2924_v16  ;;  %v2938_v16 = vld [vmem:[#allocation2 + $0x138] sm:$0xff] }
 0x969   :  { %3196 = vmatpush3.msra.mxu0 %v2908_v61  ;;  %v2953_v61 = vld [vmem:[#allocation2 + $0x1b0] sm:$0xff] }
 0x96a   :  { %3197 = vmatprep.subr.mxu0 %v2923_v10  ;;  %v2937_v10 = vld [vmem:[#allocation2 + $0x130] sm:$0xff] }
 0x96b   :  { %3198 = vmatpush3.msra.mxu0 %v2907_v33  ;;  %v2952_v33 = vld [vmem:[#allocation2 + $0x1a8] sm:$0xff] }
 0x96c   :  { %3199 = vmatprep.subr.mxu0 %v2922_v44  ;;  %v2936_v44 = vld [vmem:[#allocation2 + $0x128] sm:$0xff] }
 0x96d   :  { %3200 = vmatpush3.msra.mxu0 %v2906_v18  ;;  %v2951_v18 = vld [vmem:[#allocation2 + $0x1a0] sm:$0xff] }
 0x96e   :  { %3201 = vmatprep.subr.mxu0 %v2921_v31  ;;  %v2935_v31 = vld [vmem:[#allocation2 + $0x120] sm:$0xff] }
 0x96f   :  { %3202 = vmatpush3.msra.mxu0 %v2905_v19  ;;  %v2950_v19 = vld [vmem:[#allocation2 + $0x198] sm:$0xff] }
 0x970   :  { %3203 = vmatprep.subr.mxu0 %v2920_v12  ;;  %v2934_v12 = vld [vmem:[#allocation2 + $0x118] sm:$0xff] }
 0x971   :  { %3204 = vmatpush3.msra.mxu0 %v2904_v6  ;;  %v2949_v6 = vld [vmem:[#allocation2 + $0x190] sm:$0xff] }
 0x972   :  { %3205 = vmatprep.subr.mxu0 %v2919_v20  ;;  %v2933_v20 = vld [vmem:[#allocation2 + $0x110] sm:$0xff] }
 0x973   :  { %3206 = vmatpush3.msra.mxu0 %v2903_v28  ;;  %v2948_v28 = vld [vmem:[#allocation2 + $0x188] sm:$0xff] }
 0x974   :  { %3207 = vmatprep.subr.mxu0 %v2918_v25  ;;  %v2932_v25 = vld [vmem:[#allocation2 + $0x108] sm:$0xff] }
 0x975   :  { %3208 = vmatpush3.msra.mxu0 %v2902_v46 }
 0x976   :  { %3209 = vmatprep.subr.mxu0 %v2917_v35  ;;  %v2947_v35 = vld [vmem:[#allocation2 + $0x180] sm:$0xff] }
 0x977   :  { %3210 = vmatpush3.msra.mxu0 %v2901_v50 }
 0x978   :  { %3211 = vmatprep.subr.mxu0 %v2916_v45 }
 0x979   :  { %3212 = vmatpush3.msra.mxu0 %v2900_v47 }
 0x97a   :  { %3213 = vmatprep.subr.mxu0 %v2915_v23 }
 0x97b   :  { %3214 = vmatpush3.msra.mxu0 %v2899_v4 }
 0x97c   :  { %3218 = vmatprep.subr.mxu0 %v2962_v38 }
 0xa1c   :  { %v5462_v5 = vpop.f32.mrf.mxu0 }
 0xa1d   :  { %v3267_v27 = vpack.i.bf16 %v5462_v5, %v5668_v39 }
 0xa1e   :  { %v5466_v7 = vpop.f32.mrf.mxu0 }
 0xa1f   :  { %v3272_v17 = vpack.i.bf16 %v5669_v52, %v5466_v7  ;;  %3268 = vrot.lane.b32.xlu0 %v3267_v27, %s3575_s2 }
 0xa21   :  { %3273 = vrot.lane.b32.xlu1 %v3272_v17, %s3575_s2  ;;  %v2960_v17 = vld [vmem:[#allocation2 + $0x1e8] sm:$0xff] }
 0xa91   :  { %v3269_v56 = vpop.permute.xlu0 %3268 }
 0xa92   :  { %v3271_v57 = vunpack.i.h.bf16 %v3269_v56  ;;  %v3270_v43 = vunpack.i.l.bf16 %v3269_v56  ;;  %v2931_v56 = vld [vmem:[#allocation2 + $0x100] sm:$0xff] }
 0xa93   :  { %v3274_v41 = vpop.permute.xlu1 %3273 }
 0xa94   :  { %v2876_v48 = vsel %vm199_vm3, %v3270_v43, %v3271_v57  ;;  %v3276_v29 = vunpack.i.h.bf16 %v3274_v41  ;;  %v3275_v37 = vunpack.i.l.bf16 %v3274_v41 }
 0xa95   :  { %v2880_v59 = vmax.f32 %v5668_v39, %v2876_v48  ;;  %v2946_v39 = vld [vmem:[#allocation2 + $0x178] sm:$0xff] }
 0xa96   :  { %v2877_v32 = vsel %vm199_vm3, %v3276_v29, %v3270_v43  ;;  %v2875_v60 = vsel %vm199_vm3, %v3271_v57, %v3275_v37  ;;  %v2878_v9 = vsel %vm199_vm3, %v3275_v37, %v3276_v29 }
 0xa97   :  { %v2879_v2 = vmax.f32 %v5669_v52, %v2877_v32  ;;  %v5481_v21 = vmax.f32 %v5462_v5, %v2875_v60  ;;  %v2882_v34 = vmax.f32 %v5466_v7, %v2878_v9  ;;  %v2961_v7 = vld [vmem:[#allocation2 + $0x1f0] sm:$0xff] }
 0xa98   :  { %v2945_v52 = vld [vmem:[#allocation2 + $0x170] sm:$0xff] }
 0xa99   :  { %2883 = vrot.lane.b32.xlu0 %v2879_v2, %s3573_s26  ;;  %v3277_v54 = vpack.i.bf16 %v5481_v21, %v2880_v59 }
 0xa9b   :  { %3278 = vrot.lane.b32.xlu1 %v3277_v54, %s3573_s26 }
 0xa9f   :  { %2889 = vrot.lane.b32.xlu1 %v2882_v34, %s3573_s26 }
 0xb0b   :  { %v2884_v30 = vpop.permute.xlu0 %2883 }
 0xb0d   :  { %v5490_v55 = vpop.permute.xlu1 %3278 }
 0xb0e   :  { %v3281_v53 = vunpack.i.h.bf16 %v5490_v55  ;;  %v3280_v3 = vunpack.i.l.bf16 %v5490_v55 }
 0xb10   :  { %v2893_v0 = vsel %vm265_vm1, %v2884_v30, %v3280_v3  ;;  %v2892_v63 = vsel %vm265_vm1, %v3280_v3, %v3281_v53 }
 0xb11   :  { %v2895_v62 = vmax.f32 %v2879_v2, %v2893_v0  ;;  %v5500_v13 = vpop.permute.xlu1 %2889  ;;  %v2896_v26 = vmax.f32 %v2880_v59, %v2892_v63 }
 0xb12   :  { %v2894_v5 = vsel %vm265_vm1, %v5500_v13, %v2884_v30  ;;  %v2891_v46 = vsel %vm265_vm1, %v3281_v53, %v5500_v13 }
 0xb13   :  { %v2898_v27 = vmax.f32 %v2882_v34, %v2894_v5  ;;  %3027 = vmatprep.mubr.f32.mxu0 %v2896_v26  ;;  %v2897_v50 = vmax.f32 %v5481_v21, %v2891_v46 }
 0xb14   :  { %3028 = vmatmul.mubr.f32.vlgmr.msra.gmra.mxu0 %v2895_v62 }
 0xb15   :  { %3219 = vmatpush3.msra.mxu0 %v2946_v39  ;;  %3097 = vmatprep.mubr.f32.mxu0 %v2898_v27 }
 0xb16   :  { %3220 = vmatprep.subr.mxu0 %v2961_v7 }
 0xb17   :  { %3221 = vmatpush3.msra.mxu0 %v2945_v52 }
 0xb18   :  { %3222 = vmatprep.subr.mxu0 %v2960_v17 }
 0xb19   :  { %3223 = vmatpush3.msra.mxu0 %v2944_v40 }
 0xb1a   :  { %3224 = vmatprep.subr.mxu0 %v2959_v58 }
 0xb1b   :  { %3225 = vmatpush3.msra.mxu0 %v2943_v36 }
 0xb1c   :  { %3226 = vmatprep.subr.mxu0 %v2958_v15 }
 0xb1d   :  { %3227 = vmatpush3.msra.mxu0 %v2942_v49 }
 0xb1e   :  { %3228 = vmatprep.subr.mxu0 %v2957_v14 }
 0xb1f   :  { %3229 = vmatpush3.msra.mxu0 %v2941_v42 }
 0xb20   :  { %3230 = vmatprep.subr.mxu0 %v2956_v11 }
 0xb21   :  { %3231 = vmatpush3.msra.mxu0 %v2940_v51 }
 0xb22   :  { %3232 = vmatprep.subr.mxu0 %v2955_v22 }
 0xb23   :  { %3233 = vmatpush3.msra.mxu0 %v2939_v8 }
 0xb24   :  { %3234 = vmatprep.subr.mxu0 %v2954_v24 }
 0xb25   :  { %3235 = vmatpush3.msra.mxu0 %v2938_v16 }
 0xb26   :  { %3236 = vmatprep.subr.mxu0 %v2953_v61 }
 0xb27   :  { %3237 = vmatpush3.msra.mxu0 %v2937_v10 }
 0xb28   :  { %3238 = vmatprep.subr.mxu0 %v2952_v33 }
 0xb29   :  { %3239 = vmatpush3.msra.mxu0 %v2936_v44 }
 0xb2a   :  { %3240 = vmatprep.subr.mxu0 %v2951_v18 }
 0xb2b   :  { %3241 = vmatpush3.msra.mxu0 %v2935_v31 }
 0xb2c   :  { %3242 = vmatprep.subr.mxu0 %v2950_v19 }
 0xb2d   :  { %3243 = vmatpush3.msra.mxu0 %v2934_v12 }
 0xb2e   :  { %3244 = vmatprep.subr.mxu0 %v2949_v6 }
 0xb2f   :  { %3245 = vmatpush3.msra.mxu0 %v2933_v20 }
 0xb30   :  { %3246 = vmatprep.subr.mxu0 %v2948_v28 }
 0xb31   :  { %3247 = vmatpush3.msra.mxu0 %v2932_v25 }
 0xb32   :  { %3248 = vmatprep.subr.mxu0 %v2947_v35 }
 0xb33   :  { %3249 = vmatpush3.msra.mxu0 %v2931_v56 }
 0xb34   :  { %3098 = vmatmul.mubr.f32.vlgmr.msra.gmra.mxu0 %v2897_v50 }
 0xbd4   :  { %v3215_v45 = vpop.f32.mrf.mxu0 }
 0xbd6   :  { %v3216_v47 = vpop.f32.mrf.mxu0 }
 0xbd7   :  { %v3217_v23 = vadd.f32 %v3216_v47, %v3215_v45 }
 0xbf4   :  { %v3250_v57 = vpop.f32.mrf.mxu0 }
 0xbf6   :  { %v3251_v43 = vpop.f32.mrf.mxu0 }
 0xbf7   :  { %v3252_v41 = vadd.f32 %v3251_v43, %v3250_v57 }
 0xbf9   :  { %v3100_v4 = vadd.f32 %v3252_v41, %v3217_v23 }
 0xbfb   :  { %3103 = vst [vmem:[%s5524_s10] sm:$0xff] %v3100_v4 }
 0xbfc   :  { %3108 = vsyncpa [#allocation3], 1 }

</bundles_post_ra>
